<compile_context>
chip_gen: v7x
topology: tpu7x:2x2x1
jax: 0.10.0
libtpu: 0.0.40
codegen_flags: <defaults>
</compile_context>

<pallas_src>
import functools

import jax
import jax.numpy as jnp
from jax.experimental import pallas as pl
from jax.experimental.pallas import tpu as pltpu


# ---------------------------------------------------------------------------
# Kernel 1: channel-attention gate (AdaptiveMax/AvgPool -> shared SE -> sigmoid)
# ---------------------------------------------------------------------------
def _ca_gate_kernel(x_ref, w1_ref, w2_ref, o_ref, m_sc, s_sc, *, hw_total, hw_tile):
    hw_id = pl.program_id(1)

    @pl.when(hw_id == 0)
    def _init():
        m_sc[...] = jnp.full_like(m_sc, -jnp.inf)
        s_sc[...] = jnp.zeros_like(s_sc)

    x = x_ref[0].astype(jnp.float32)                                  # (C, T)
    # Mask the (possibly) ragged tail tile: -inf for max, 0 for sum.
    lane = jax.lax.broadcasted_iota(jnp.int32, x.shape, 1)
    valid = lane < (hw_total - hw_id * hw_tile)
    m_sc[...] = jnp.maximum(
        m_sc[...], jnp.max(jnp.where(valid, x, -jnp.inf), axis=1, keepdims=True))
    s_sc[...] += jnp.sum(jnp.where(valid, x, 0.0), axis=1, keepdims=True)

    @pl.when(hw_id == pl.num_programs(1) - 1)
    def _finalize():
        # Fused SE: max- and avg-pooled vectors go through the MLP as one (C,2) matmul pair.
        pooled = jnp.concatenate(
            [m_sc[...], s_sc[...] * (1.0 / float(hw_total))], axis=1)  # (C, 2)
        w1 = w1_ref[...].astype(jnp.float32)                           # (Cr, C)
        w2 = w2_ref[...].astype(jnp.float32)                           # (C, Cr)
        h = jnp.maximum(
            jnp.dot(w1, pooled, preferred_element_type=jnp.float32), 0.0)  # (Cr, 2)
        se = jnp.dot(w2, h, preferred_element_type=jnp.float32)            # (C, 2)
        gate = jax.nn.sigmoid(se[:, 0:1] + se[:, 1:2])                     # (C, 1)
        o_ref[0] = gate.astype(o_ref.dtype)


# ---------------------------------------------------------------------------
# Kernel 2: per-pixel channel max/mean of (x * gate_c)  ->  (B, 2, HW) stats
# ---------------------------------------------------------------------------
def _spatial_stats_kernel(x_ref, gc_ref, o_ref):
    x = x_ref[0].astype(jnp.float32)      # (C, T)
    gc = gc_ref[0].astype(jnp.float32)    # (C, 1)
    xg = x * gc
    smax = jnp.max(xg, axis=0, keepdims=True)    # (1, T)
    smean = jnp.mean(xg, axis=0, keepdims=True)  # (1, T)
    o_ref[0] = jnp.concatenate([smax, smean], axis=0).astype(o_ref.dtype)


# ---------------------------------------------------------------------------
# Kernel 3: spatial attention - KxK conv (2 -> 1 channel) + sigmoid
# ---------------------------------------------------------------------------
def _sa_conv_kernel(p_ref, w_ref, b_ref, o_ref, *, H, W, K):
    acc = jnp.zeros((H, W), jnp.float32) + b_ref[0]
    for c in range(2):
        for ky in range(K):
            for kx in range(K):
                tap = w_ref[(c * K + ky) * K + kx]                       # SMEM scalar
                acc = acc + tap * p_ref[0, c, ky:ky + H, kx:kx + W].astype(jnp.float32)
    o_ref[0, 0] = jax.nn.sigmoid(acc).astype(o_ref.dtype)


# ---------------------------------------------------------------------------
# Kernel 4: y = W_1x1 @ (x * (1 + gate_c * gate_s)) + 2*bias   (== conv1(x)+conv1(out))
# ---------------------------------------------------------------------------
def _fused_out_conv1_kernel(x_ref, gc_ref, gs_ref, w_ref, b_ref, o_ref):
    x = x_ref[0].astype(jnp.float32)       # (C, T)
    gc = gc_ref[0].astype(jnp.float32)     # (C, 1)
    gs = gs_ref[0].astype(jnp.float32)     # (1, T)
    z = x * (1.0 + gc * gs)                # x + (x*gc)*gs
    w = w_ref[...].astype(jnp.float32)     # (Co, C)
    y = jnp.dot(w, z, preferred_element_type=jnp.float32)   # (Co, T)
    y = y + 2.0 * b_ref[...].astype(jnp.float32)            # bias as (Co, 1)
    o_ref[0] = y.astype(o_ref.dtype)


# ---------------------------------------------------------------------------
# Wrapper
# ---------------------------------------------------------------------------
def _choose_hw_tile(hw, c, itemsize, budget_bytes=2 << 20):
    # Biggest multiple-of-128 lane tile with ~2 MiB x-block (double-buffer safe on 64 MiB v7x).
    t = max(128, (budget_bytes // max(c * itemsize, 1)) // 128 * 128)
    t = min(t, 8192)
    if t >= hw:
        return hw          # single full-extent block is always layout-legal
    return int(t)


def cbam_block2_forward(x, params, *, kernel_size, hw_tile=None):
    """x: (B, C, H, W) NCHW. Returns (B, C//2, H, W) = conv1(x) + conv1(sa(ca(x)*x)*ca(x)*x)."""
    B, C, H, W = x.shape
    HW = H * W
    K = kernel_size
    w1, w2 = params["ca_w1"], params["ca_w2"]            # (Cr, C), (C, Cr)
    w_sp, b_sp = params["sa_w"], params["sa_b"]          # (1, 2, K, K), (1,)
    w_c1, b_c1 = params["conv1_w"], params["conv1_b"]    # (Co, C), (Co,)
    Cr = w1.shape[0]
    Co = w_c1.shape[0]

    x_flat = x.reshape(B, C, HW)
    T = hw_tile if hw_tile is not None else _choose_hw_tile(HW, C, x.dtype.itemsize)
    n_hw = pl.cdiv(HW, T)
    vmem_limit = 32 * 1024 * 1024

    # ---- 1. channel-attention gate: (B, C, 1) -------------------------------
    ca_gate = pl.pallas_call(
        functools.partial(_ca_gate_kernel, hw_total=HW, hw_tile=T),
        out_shape=jax.ShapeDtypeStruct((B, C, 1), jnp.float32),
        grid_spec=pltpu.PrefetchScalarGridSpec(
            num_scalar_prefetch=0,
            grid=(B, n_hw),
            in_specs=[
                pl.BlockSpec((1, C, T), lambda b, t: (b, 0, t)),
                pl.BlockSpec((Cr, C), lambda b, t: (0, 0)),   # VMEM-resident weights
                pl.BlockSpec((C, Cr), lambda b, t: (0, 0)),
            ],
            out_specs=pl.BlockSpec((1, C, 1), lambda b, t: (b, 0, 0)),
            scratch_shapes=[pltpu.VMEM((C, 1), jnp.float32),
                            pltpu.VMEM((C, 1), jnp.float32)],
        ),
        compiler_params=pltpu.CompilerParams(
            dimension_semantics=("parallel", "arbitrary"),
            vmem_limit_bytes=vmem_limit),
        cost_estimate=pl.CostEstimate(
            flops=int(2 * B * C * HW + 8 * B * C * Cr),
            transcendentals=int(B * C),
            bytes_accessed=int(B * C * HW * x.dtype.itemsize)),
    )(x_flat, w1, w2)

    # ---- 2. channel-gated spatial stats: (B, 2, HW) --------------------------
    stats = pl.pallas_call(
        _spatial_stats_kernel,
        out_shape=jax.ShapeDtypeStruct((B, 2, HW), jnp.float32),
        grid_spec=pltpu.PrefetchScalarGridSpec(
            num_scalar_prefetch=0,
            grid=(B, n_hw),
            in_specs=[
                pl.BlockSpec((1, C, T), lambda b, t: (b, 0, t)),
                pl.BlockSpec((1, C, 1), lambda b, t: (b, 0, 0)),
            ],
            out_specs=pl.BlockSpec((1, 2, T), lambda b, t: (b, 0, t)),
        ),
        compiler_params=pltpu.CompilerParams(
            dimension_semantics=("parallel", "parallel"),
            vmem_limit_bytes=vmem_limit),
        cost_estimate=pl.CostEstimate(
            flops=int(3 * B * C * HW),
            transcendentals=0,
            bytes_accessed=int(B * C * HW * x.dtype.itemsize)),
    )(x_flat, ca_gate)

    # ---- 3. spatial attention gate: (B, 1, H, W) -----------------------------
    pad = K // 2
    stats_padded = jnp.pad(stats.reshape(B, 2, H, W),
                           ((0, 0), (0, 0), (pad, pad), (pad, pad)))
    Hp, Wp = H + 2 * pad, W + 2 * pad
    w_sp_flat = w_sp.reshape(-1).astype(jnp.float32)      # (2*K*K,) -> SMEM scalars
    sa_gate = pl.pallas_call(
        functools.partial(_sa_conv_kernel, H=H, W=W, K=K),
        out_shape=jax.ShapeDtypeStruct((B, 1, H, W), jnp.float32),
        grid_spec=pltpu.PrefetchScalarGridSpec(
            num_scalar_prefetch=0,
            grid=(B,),
            in_specs=[
                pl.BlockSpec((1, 2, Hp, Wp), lambda b: (b, 0, 0, 0)),
                pl.BlockSpec(memory_space=pltpu.SMEM),
                pl.BlockSpec(memory_space=pltpu.SMEM),
            ],
            out_specs=pl.BlockSpec((1, 1, H, W), lambda b: (b, 0, 0, 0)),
        ),
        compiler_params=pltpu.CompilerParams(
            dimension_semantics=("parallel",),
            vmem_limit_bytes=vmem_limit),
    )(stats_padded, w_sp_flat, b_sp.astype(jnp.float32))

    # ---- 4. fused finalize: conv1(x) + conv1(out) -----------------------------
    sa_flat = sa_gate.reshape(B, 1, HW)
    b_c1_col = b_c1.reshape(Co, 1)
    y_flat = pl.pallas_call(
        _fused_out_conv1_kernel,
        out_shape=jax.ShapeDtypeStruct((B, Co, HW), x.dtype),
        grid_spec=pltpu.PrefetchScalarGridSpec(
            num_scalar_prefetch=0,
            grid=(B, n_hw),
            in_specs=[
                pl.BlockSpec((1, C, T), lambda b, t: (b, 0, t)),
                pl.BlockSpec((1, C, 1), lambda b, t: (b, 0, 0)),
                pl.BlockSpec((1, 1, T), lambda b, t: (b, 0, t)),
                pl.BlockSpec((Co, C), lambda b, t: (0, 0)),
                pl.BlockSpec((Co, 1), lambda b, t: (0, 0)),
            ],
            out_specs=pl.BlockSpec((1, Co, T), lambda b, t: (b, 0, t)),
        ),
        compiler_params=pltpu.CompilerParams(
            dimension_semantics=("parallel", "parallel"),
            vmem_limit_bytes=vmem_limit),
        cost_estimate=pl.CostEstimate(
            flops=int(2 * B * Co * C * HW + 3 * B * C * HW),
            transcendentals=0,
            bytes_accessed=int((B * C * HW + B * Co * HW) * x.dtype.itemsize)),
    )(x_flat, ca_gate, sa_flat, w_c1, b_c1_col)

    return y_flat.reshape(B, Co, H, W)


# ---------------------------------------------------------------------------
# Pure-JAX reference mirroring the PyTorch CBAMBlock2 forward
# ---------------------------------------------------------------------------
def cbam_block2_reference(x, params, *, kernel_size):
    w1, w2 = params["ca_w1"], params["ca_w2"]
    w_sp, b_sp = params["sa_w"], params["sa_b"]
    w_c1, b_c1 = params["conv1_w"], params["conv1_b"]
    K = kernel_size

    max_p = jnp.max(x, axis=(2, 3))
    avg_p = jnp.mean(x, axis=(2, 3))
    se = lambda v: jnp.maximum(v @ w1.T, 0.0) @ w2.T
    ca = jax.nn.sigmoid(se(max_p) + se(avg_p))[:, :, None, None]

    out = x * ca
    smax = jnp.max(out, axis=1, keepdims=True)
    smean = jnp.mean(out, axis=1, keepdims=True)
    s = jnp.concatenate([smax, smean], axis=1)
    conv = jax.lax.conv_general_dilated(
        s, w_sp, window_strides=(1, 1),
        padding=[(K // 2, K // 2), (K // 2, K // 2)],
        dimension_numbers=("NCHW", "OIHW", "NCHW"),
        precision=jax.lax.Precision.HIGHEST)
    sa = jax.nn.sigmoid(conv + b_sp.reshape(1, 1, 1, 1))
    out = out * sa

    def conv1(v):
        return (jnp.einsum("oc,bchw->bohw", w_c1, v,
                           precision=jax.lax.Precision.HIGHEST)
                + b_c1.reshape(1, -1, 1, 1))

    return conv1(x) + conv1(out)


if __name__ == "__main__":
    jax.config.update("jax_default_matmul_precision", "highest")

    # Small shapes consistent with CBAMBlock2: internal channel = channel*2 = 32,
    # reduction=4 -> SE hidden = 8, spatial kernel_size=7, conv1: 32 -> 16.
    B = 2
    channel = 16
    C = channel * 2
    reduction = 4
    Cr = C // reduction
    kernel_size = 7
    H = W = 32
    Co = C // 2

    key = jax.random.PRNGKey(0)
    kx, k1, k2, k3, k4, k5, k6 = jax.random.split(key, 7)
    x = jax.random.normal(kx, (B, C, H, W), dtype=jnp.float32)
    params = {
        "ca_w1": jax.random.normal(k1, (Cr, C), jnp.float32) * (1.0 / C) ** 0.5,
        "ca_w2": jax.random.normal(k2, (C, Cr), jnp.float32) * (1.0 / Cr) ** 0.5,
        "sa_w": (jax.random.normal(k3, (1, 2, kernel_size, kernel_size), jnp.float32)
                 * (1.0 / (2 * kernel_size * kernel_size)) ** 0.5),
        "sa_b": jax.random.normal(k4, (1,), jnp.float32) * 0.1,
        "conv1_w": jax.random.normal(k5, (Co, C), jnp.float32) * (1.0 / C) ** 0.5,
        "conv1_b": jax.random.normal(k6, (Co,), jnp.float32) * 0.1,
    }

    # hw_tile=256 forces 4 HW grid steps (HW=1024) so the scratch accumulator path is exercised.
    fwd = jax.jit(functools.partial(cbam_block2_forward,
                                    kernel_size=kernel_size, hw_tile=256))
    out = jax.block_until_ready(fwd(x, params))

    ref = cbam_block2_reference(x, params, kernel_size=kernel_size)
    assert out.shape == (B, Co, H, W), out.shape
    max_err = float(jnp.max(jnp.abs(out - ref)))
    assert jnp.allclose(out, ref, atol=2e-3, rtol=2e-3), f"mismatch vs reference: {max_err}"
    print("KERNEL_OK")
</pallas_src>

<mosaic_0001>
module attributes {stable_mosaic.version = 11 : i64} {
  func.func @_sa_conv_kernel(%arg0: i32, %arg1: memref<1x2x38x38xf32, #tpu.memory_space<vmem>>, %arg2: memref<98xf32, #tpu.memory_space<smem>>, %arg3: memref<1xf32, #tpu.memory_space<smem>>, %arg4: memref<1x1x32x32xf32, #tpu.memory_space<vmem>>) attributes {dimension_semantics = [#tpu.dimension_semantics<parallel>], iteration_bounds = array<i64: 2>, scalar_prefetch = 0 : i64, scratch_operands = 0 : i64, tpu.core_type = #tpu.core_type<tc>, window_params = [{transform_indices = @transform_0, window_bounds = array<i64: 1, 2, 38, 38>}, {transform_indices = @transform_1, window_bounds = array<i64: 98>}, {transform_indices = @transform_2, window_bounds = array<i64: 1>}, {transform_indices = @transform_3, window_bounds = array<i64: 1, 1, 32, 32>}]} {
    %cst = arith.constant 0.000000e+00 : f32
    %0 = vector.broadcast %cst : f32 to vector<32x32xf32>
    %c0 = arith.constant 0 : index
    %1 = memref.load %arg3[%c0] : memref<1xf32, #tpu.memory_space<smem>>
    %2 = vector.broadcast %1 : f32 to vector<32x32xf32>
    %3 = arith.addf %0, %2 : vector<32x32xf32>
    %c0_0 = arith.constant 0 : index
    %4 = memref.load %arg2[%c0_0] : memref<98xf32, #tpu.memory_space<smem>>
    %c0_1 = arith.constant 0 : index
    %c0_2 = arith.constant 0 : index
    %c0_3 = arith.constant 0 : index
    %c0_4 = arith.constant 0 : index
    %5 = vector.load %arg1[%c0_1, %c0_2, %c0_3, %c0_4] : memref<1x2x38x38xf32, #tpu.memory_space<vmem>>, vector<1x1x32x32xf32>
    %6 = vector.shape_cast %5 : vector<1x1x32x32xf32> to vector<32x32xf32>
    %7 = vector.broadcast %4 : f32 to vector<32x32xf32>
    %8 = arith.mulf %7, %6 : vector<32x32xf32>
    %9 = arith.addf %3, %8 : vector<32x32xf32>
    %c1 = arith.constant 1 : index
    %10 = memref.load %arg2[%c1] : memref<98xf32, #tpu.memory_space<smem>>
    %c0_5 = arith.constant 0 : index
    %c0_6 = arith.constant 0 : index
    %c0_7 = arith.constant 0 : index
    %c1_8 = arith.constant 1 : index
    %11 = vector.load %arg1[%c0_5, %c0_6, %c0_7, %c1_8] : memref<1x2x38x38xf32, #tpu.memory_space<vmem>>, vector<1x1x32x32xf32>
    %12 = vector.shape_cast %11 : vector<1x1x32x32xf32> to vector<32x32xf32>
    %13 = vector.broadcast %10 : f32 to vector<32x32xf32>
    %14 = arith.mulf %13, %12 : vector<32x32xf32>
    %15 = arith.addf %9, %14 : vector<32x32xf32>
    %c2 = arith.constant 2 : index
    %16 = memref.load %arg2[%c2] : memref<98xf32, #tpu.memory_space<smem>>
    %c0_9 = arith.constant 0 : index
    %c0_10 = arith.constant 0 : index
    %c0_11 = arith.constant 0 : index
    %c2_12 = arith.constant 2 : index
    %17 = vector.load %arg1[%c0_9, %c0_10, %c0_11, %c2_12] : memref<1x2x38x38xf32, #tpu.memory_space<vmem>>, vector<1x1x32x32xf32>
    %18 = vector.shape_cast %17 : vector<1x1x32x32xf32> to vector<32x32xf32>
    %19 = vector.broadcast %16 : f32 to vector<32x32xf32>
    %20 = arith.mulf %19, %18 : vector<32x32xf32>
    %21 = arith.addf %15, %20 : vector<32x32xf32>
    %c3 = arith.constant 3 : index
    %22 = memref.load %arg2[%c3] : memref<98xf32, #tpu.memory_space<smem>>
    %c0_13 = arith.constant 0 : index
    %c0_14 = arith.constant 0 : index
    %c0_15 = arith.constant 0 : index
    %c3_16 = arith.constant 3 : index
    %23 = vector.load %arg1[%c0_13, %c0_14, %c0_15, %c3_16] : memref<1x2x38x38xf32, #tpu.memory_space<vmem>>, vector<1x1x32x32xf32>
    %24 = vector.shape_cast %23 : vector<1x1x32x32xf32> to vector<32x32xf32>
    %25 = vector.broadcast %22 : f32 to vector<32x32xf32>
    %26 = arith.mulf %25, %24 : vector<32x32xf32>
    %27 = arith.addf %21, %26 : vector<32x32xf32>
    %c4 = arith.constant 4 : index
    %28 = memref.load %arg2[%c4] : memref<98xf32, #tpu.memory_space<smem>>
    %c0_17 = arith.constant 0 : index
    %c0_18 = arith.constant 0 : index
    %c0_19 = arith.constant 0 : index
    %c4_20 = arith.constant 4 : index
    %29 = vector.load %arg1[%c0_17, %c0_18, %c0_19, %c4_20] : memref<1x2x38x38xf32, #tpu.memory_space<vmem>>, vector<1x1x32x32xf32>
    %30 = vector.shape_cast %29 : vector<1x1x32x32xf32> to vector<32x32xf32>
    %31 = vector.broadcast %28 : f32 to vector<32x32xf32>
    %32 = arith.mulf %31, %30 : vector<32x32xf32>
    %33 = arith.addf %27, %32 : vector<32x32xf32>
    %c5 = arith.constant 5 : index
    %34 = memref.load %arg2[%c5] : memref<98xf32, #tpu.memory_space<smem>>
    %c0_21 = arith.constant 0 : index
    %c0_22 = arith.constant 0 : index
    %c0_23 = arith.constant 0 : index
    %c5_24 = arith.constant 5 : index
    %35 = vector.load %arg1[%c0_21, %c0_22, %c0_23, %c5_24] : memref<1x2x38x38xf32, #tpu.memory_space<vmem>>, vector<1x1x32x32xf32>
    %36 = vector.shape_cast %35 : vector<1x1x32x32xf32> to vector<32x32xf32>
    %37 = vector.broadcast %34 : f32 to vector<32x32xf32>
    %38 = arith.mulf %37, %36 : vector<32x32xf32>
    %39 = arith.addf %33, %38 : vector<32x32xf32>
    %c6 = arith.constant 6 : index
    %40 = memref.load %arg2[%c6] : memref<98xf32, #tpu.memory_space<smem>>
    %c0_25 = arith.constant 0 : index
    %c0_26 = arith.constant 0 : index
    %c0_27 = arith.constant 0 : index
    %c6_28 = arith.constant 6 : index
    %41 = vector.load %arg1[%c0_25, %c0_26, %c0_27, %c6_28] : memref<1x2x38x38xf32, #tpu.memory_space<vmem>>, vector<1x1x32x32xf32>
    %42 = vector.shape_cast %41 : vector<1x1x32x32xf32> to vector<32x32xf32>
    %43 = vector.broadcast %40 : f32 to vector<32x32xf32>
    %44 = arith.mulf %43, %42 : vector<32x32xf32>
    %45 = arith.addf %39, %44 : vector<32x32xf32>
    %c7 = arith.constant 7 : index
    %46 = memref.load %arg2[%c7] : memref<98xf32, #tpu.memory_space<smem>>
    %c0_29 = arith.constant 0 : index
    %c0_30 = arith.constant 0 : index
    %c1_31 = arith.constant 1 : index
    %c0_32 = arith.constant 0 : index
    %47 = vector.load %arg1[%c0_29, %c0_30, %c1_31, %c0_32] : memref<1x2x38x38xf32, #tpu.memory_space<vmem>>, vector<1x1x32x32xf32>
    %48 = vector.shape_cast %47 : vector<1x1x32x32xf32> to vector<32x32xf32>
    %49 = vector.broadcast %46 : f32 to vector<32x32xf32>
    %50 = arith.mulf %49, %48 : vector<32x32xf32>
    %51 = arith.addf %45, %50 : vector<32x32xf32>
    %c8 = arith.constant 8 : index
    %52 = memref.load %arg2[%c8] : memref<98xf32, #tpu.memory_space<smem>>
    %c0_33 = arith.constant 0 : index
    %c0_34 = arith.constant 0 : index
    %c1_35 = arith.constant 1 : index
    %c1_36 = arith.constant 1 : index
    %53 = vector.load %arg1[%c0_33, %c0_34, %c1_35, %c1_36] : memref<1x2x38x38xf32, #tpu.memory_space<vmem>>, vector<1x1x32x32xf32>
    %54 = vector.shape_cast %53 : vector<1x1x32x32xf32> to vector<32x32xf32>
    %55 = vector.broadcast %52 : f32 to vector<32x32xf32>
    %56 = arith.mulf %55, %54 : vector<32x32xf32>
    %57 = arith.addf %51, %56 : vector<32x32xf32>
    %c9 = arith.constant 9 : index
    %58 = memref.load %arg2[%c9] : memref<98xf32, #tpu.memory_space<smem>>
    %c0_37 = arith.constant 0 : index
    %c0_38 = arith.constant 0 : index
    %c1_39 = arith.constant 1 : index
    %c2_40 = arith.constant 2 : index
    %59 = vector.load %arg1[%c0_37, %c0_38, %c1_39, %c2_40] : memref<1x2x38x38xf32, #tpu.memory_space<vmem>>, vector<1x1x32x32xf32>
    %60 = vector.shape_cast %59 : vector<1x1x32x32xf32> to vector<32x32xf32>
    %61 = vector.broadcast %58 : f32 to vector<32x32xf32>
    %62 = arith.mulf %61, %60 : vector<32x32xf32>
    %63 = arith.addf %57, %62 : vector<32x32xf32>
    %c10 = arith.constant 10 : index
    %64 = memref.load %arg2[%c10] : memref<98xf32, #tpu.memory_space<smem>>
    %c0_41 = arith.constant 0 : index
    %c0_42 = arith.constant 0 : index
    %c1_43 = arith.constant 1 : index
    %c3_44 = arith.constant 3 : index
    %65 = vector.load %arg1[%c0_41, %c0_42, %c1_43, %c3_44] : memref<1x2x38x38xf32, #tpu.memory_space<vmem>>, vector<1x1x32x32xf32>
    %66 = vector.shape_cast %65 : vector<1x1x32x32xf32> to vector<32x32xf32>
    %67 = vector.broadcast %64 : f32 to vector<32x32xf32>
    %68 = arith.mulf %67, %66 : vector<32x32xf32>
    %69 = arith.addf %63, %68 : vector<32x32xf32>
    %c11 = arith.constant 11 : index
    %70 = memref.load %arg2[%c11] : memref<98xf32, #tpu.memory_space<smem>>
    %c0_45 = arith.constant 0 : index
    %c0_46 = arith.constant 0 : index
    %c1_47 = arith.constant 1 : index
    %c4_48 = arith.constant 4 : index
    %71 = vector.load %arg1[%c0_45, %c0_46, %c1_47, %c4_48] : memref<1x2x38x38xf32, #tpu.memory_space<vmem>>, vector<1x1x32x32xf32>
    %72 = vector.shape_cast %71 : vector<1x1x32x32xf32> to vector<32x32xf32>
    %73 = vector.broadcast %70 : f32 to vector<32x32xf32>
    %74 = arith.mulf %73, %72 : vector<32x32xf32>
    %75 = arith.addf %69, %74 : vector<32x32xf32>
    %c12 = arith.constant 12 : index
    %76 = memref.load %arg2[%c12] : memref<98xf32, #tpu.memory_space<smem>>
    %c0_49 = arith.constant 0 : index
    %c0_50 = arith.constant 0 : index
    %c1_51 = arith.constant 1 : index
    %c5_52 = arith.constant 5 : index
    %77 = vector.load %arg1[%c0_49, %c0_50, %c1_51, %c5_52] : memref<1x2x38x38xf32, #tpu.memory_space<vmem>>, vector<1x1x32x32xf32>
    %78 = vector.shape_cast %77 : vector<1x1x32x32xf32> to vector<32x32xf32>
    %79 = vector.broadcast %76 : f32 to vector<32x32xf32>
    %80 = arith.mulf %79, %78 : vector<32x32xf32>
    %81 = arith.addf %75, %80 : vector<32x32xf32>
    %c13 = arith.constant 13 : index
    %82 = memref.load %arg2[%c13] : memref<98xf32, #tpu.memory_space<smem>>
    %c0_53 = arith.constant 0 : index
    %c0_54 = arith.constant 0 : index
    %c1_55 = arith.constant 1 : index
    %c6_56 = arith.constant 6 : index
    %83 = vector.load %arg1[%c0_53, %c0_54, %c1_55, %c6_56] : memref<1x2x38x38xf32, #tpu.memory_space<vmem>>, vector<1x1x32x32xf32>
    %84 = vector.shape_cast %83 : vector<1x1x32x32xf32> to vector<32x32xf32>
    %85 = vector.broadcast %82 : f32 to vector<32x32xf32>
    %86 = arith.mulf %85, %84 : vector<32x32xf32>
    %87 = arith.addf %81, %86 : vector<32x32xf32>
    %c14 = arith.constant 14 : index
    %88 = memref.load %arg2[%c14] : memref<98xf32, #tpu.memory_space<smem>>
    %c0_57 = arith.constant 0 : index
    %c0_58 = arith.constant 0 : index
    %c2_59 = arith.constant 2 : index
    %c0_60 = arith.constant 0 : index
    %89 = vector.load %arg1[%c0_57, %c0_58, %c2_59, %c0_60] : memref<1x2x38x38xf32, #tpu.memory_space<vmem>>, vector<1x1x32x32xf32>
    %90 = vector.shape_cast %89 : vector<1x1x32x32xf32> to vector<32x32xf32>
    %91 = vector.broadcast %88 : f32 to vector<32x32xf32>
    %92 = arith.mulf %91, %90 : vector<32x32xf32>
    %93 = arith.addf %87, %92 : vector<32x32xf32>
    %c15 = arith.constant 15 : index
    %94 = memref.load %arg2[%c15] : memref<98xf32, #tpu.memory_space<smem>>
    %c0_61 = arith.constant 0 : index
    %c0_62 = arith.constant 0 : index
    %c2_63 = arith.constant 2 : index
    %c1_64 = arith.constant 1 : index
    %95 = vector.load %arg1[%c0_61, %c0_62, %c2_63, %c1_64] : memref<1x2x38x38xf32, #tpu.memory_space<vmem>>, vector<1x1x32x32xf32>
    %96 = vector.shape_cast %95 : vector<1x1x32x32xf32> to vector<32x32xf32>
    %97 = vector.broadcast %94 : f32 to vector<32x32xf32>
    %98 = arith.mulf %97, %96 : vector<32x32xf32>
    %99 = arith.addf %93, %98 : vector<32x32xf32>
    %c16 = arith.constant 16 : index
    %100 = memref.load %arg2[%c16] : memref<98xf32, #tpu.memory_space<smem>>
    %c0_65 = arith.constant 0 : index
    %c0_66 = arith.constant 0 : index
    %c2_67 = arith.constant 2 : index
    %c2_68 = arith.constant 2 : index
    %101 = vector.load %arg1[%c0_65, %c0_66, %c2_67, %c2_68] : memref<1x2x38x38xf32, #tpu.memory_space<vmem>>, vector<1x1x32x32xf32>
    %102 = vector.shape_cast %101 : vector<1x1x32x32xf32> to vector<32x32xf32>
    %103 = vector.broadcast %100 : f32 to vector<32x32xf32>
    %104 = arith.mulf %103, %102 : vector<32x32xf32>
    %105 = arith.addf %99, %104 : vector<32x32xf32>
    %c17 = arith.constant 17 : index
    %106 = memref.load %arg2[%c17] : memref<98xf32, #tpu.memory_space<smem>>
    %c0_69 = arith.constant 0 : index
    %c0_70 = arith.constant 0 : index
    %c2_71 = arith.constant 2 : index
    %c3_72 = arith.constant 3 : index
    %107 = vector.load %arg1[%c0_69, %c0_70, %c2_71, %c3_72] : memref<1x2x38x38xf32, #tpu.memory_space<vmem>>, vector<1x1x32x32xf32>
    %108 = vector.shape_cast %107 : vector<1x1x32x32xf32> to vector<32x32xf32>
    %109 = vector.broadcast %106 : f32 to vector<32x32xf32>
    %110 = arith.mulf %109, %108 : vector<32x32xf32>
    %111 = arith.addf %105, %110 : vector<32x32xf32>
    %c18 = arith.constant 18 : index
    %112 = memref.load %arg2[%c18] : memref<98xf32, #tpu.memory_space<smem>>
    %c0_73 = arith.constant 0 : index
    %c0_74 = arith.constant 0 : index
    %c2_75 = arith.constant 2 : index
    %c4_76 = arith.constant 4 : index
    %113 = vector.load %arg1[%c0_73, %c0_74, %c2_75, %c4_76] : memref<1x2x38x38xf32, #tpu.memory_space<vmem>>, vector<1x1x32x32xf32>
    %114 = vector.shape_cast %113 : vector<1x1x32x32xf32> to vector<32x32xf32>
    %115 = vector.broadcast %112 : f32 to vector<32x32xf32>
    %116 = arith.mulf %115, %114 : vector<32x32xf32>
    %117 = arith.addf %111, %116 : vector<32x32xf32>
    %c19 = arith.constant 19 : index
    %118 = memref.load %arg2[%c19] : memref<98xf32, #tpu.memory_space<smem>>
    %c0_77 = arith.constant 0 : index
    %c0_78 = arith.constant 0 : index
    %c2_79 = arith.constant 2 : index
    %c5_80 = arith.constant 5 : index
    %119 = vector.load %arg1[%c0_77, %c0_78, %c2_79, %c5_80] : memref<1x2x38x38xf32, #tpu.memory_space<vmem>>, vector<1x1x32x32xf32>
    %120 = vector.shape_cast %119 : vector<1x1x32x32xf32> to vector<32x32xf32>
    %121 = vector.broadcast %118 : f32 to vector<32x32xf32>
    %122 = arith.mulf %121, %120 : vector<32x32xf32>
    %123 = arith.addf %117, %122 : vector<32x32xf32>
    %c20 = arith.constant 20 : index
    %124 = memref.load %arg2[%c20] : memref<98xf32, #tpu.memory_space<smem>>
    %c0_81 = arith.constant 0 : index
    %c0_82 = arith.constant 0 : index
    %c2_83 = arith.constant 2 : index
    %c6_84 = arith.constant 6 : index
    %125 = vector.load %arg1[%c0_81, %c0_82, %c2_83, %c6_84] : memref<1x2x38x38xf32, #tpu.memory_space<vmem>>, vector<1x1x32x32xf32>
    %126 = vector.shape_cast %125 : vector<1x1x32x32xf32> to vector<32x32xf32>
    %127 = vector.broadcast %124 : f32 to vector<32x32xf32>
    %128 = arith.mulf %127, %126 : vector<32x32xf32>
    %129 = arith.addf %123, %128 : vector<32x32xf32>
    %c21 = arith.constant 21 : index
    %130 = memref.load %arg2[%c21] : memref<98xf32, #tpu.memory_space<smem>>
    %c0_85 = arith.constant 0 : index
    %c0_86 = arith.constant 0 : index
    %c3_87 = arith.constant 3 : index
    %c0_88 = arith.constant 0 : index
    %131 = vector.load %arg1[%c0_85, %c0_86, %c3_87, %c0_88] : memref<1x2x38x38xf32, #tpu.memory_space<vmem>>, vector<1x1x32x32xf32>
    %132 = vector.shape_cast %131 : vector<1x1x32x32xf32> to vector<32x32xf32>
    %133 = vector.broadcast %130 : f32 to vector<32x32xf32>
    %134 = arith.mulf %133, %132 : vector<32x32xf32>
    %135 = arith.addf %129, %134 : vector<32x32xf32>
    %c22 = arith.constant 22 : index
    %136 = memref.load %arg2[%c22] : memref<98xf32, #tpu.memory_space<smem>>
    %c0_89 = arith.constant 0 : index
    %c0_90 = arith.constant 0 : index
    %c3_91 = arith.constant 3 : index
    %c1_92 = arith.constant 1 : index
    %137 = vector.load %arg1[%c0_89, %c0_90, %c3_91, %c1_92] : memref<1x2x38x38xf32, #tpu.memory_space<vmem>>, vector<1x1x32x32xf32>
    %138 = vector.shape_cast %137 : vector<1x1x32x32xf32> to vector<32x32xf32>
    %139 = vector.broadcast %136 : f32 to vector<32x32xf32>
    %140 = arith.mulf %139, %138 : vector<32x32xf32>
    %141 = arith.addf %135, %140 : vector<32x32xf32>
    %c23 = arith.constant 23 : index
    %142 = memref.load %arg2[%c23] : memref<98xf32, #tpu.memory_space<smem>>
    %c0_93 = arith.constant 0 : index
    %c0_94 = arith.constant 0 : index
    %c3_95 = arith.constant 3 : index
    %c2_96 = arith.constant 2 : index
    %143 = vector.load %arg1[%c0_93, %c0_94, %c3_95, %c2_96] : memref<1x2x38x38xf32, #tpu.memory_space<vmem>>, vector<1x1x32x32xf32>
    %144 = vector.shape_cast %143 : vector<1x1x32x32xf32> to vector<32x32xf32>
    %145 = vector.broadcast %142 : f32 to vector<32x32xf32>
    %146 = arith.mulf %145, %144 : vector<32x32xf32>
    %147 = arith.addf %141, %146 : vector<32x32xf32>
    %c24 = arith.constant 24 : index
    %148 = memref.load %arg2[%c24] : memref<98xf32, #tpu.memory_space<smem>>
    %c0_97 = arith.constant 0 : index
    %c0_98 = arith.constant 0 : index
    %c3_99 = arith.constant 3 : index
    %c3_100 = arith.constant 3 : index
    %149 = vector.load %arg1[%c0_97, %c0_98, %c3_99, %c3_100] : memref<1x2x38x38xf32, #tpu.memory_space<vmem>>, vector<1x1x32x32xf32>
    %150 = vector.shape_cast %149 : vector<1x1x32x32xf32> to vector<32x32xf32>
    %151 = vector.broadcast %148 : f32 to vector<32x32xf32>
    %152 = arith.mulf %151, %150 : vector<32x32xf32>
    %153 = arith.addf %147, %152 : vector<32x32xf32>
    %c25 = arith.constant 25 : index
    %154 = memref.load %arg2[%c25] : memref<98xf32, #tpu.memory_space<smem>>
    %c0_101 = arith.constant 0 : index
    %c0_102 = arith.constant 0 : index
    %c3_103 = arith.constant 3 : index
    %c4_104 = arith.constant 4 : index
    %155 = vector.load %arg1[%c0_101, %c0_102, %c3_103, %c4_104] : memref<1x2x38x38xf32, #tpu.memory_space<vmem>>, vector<1x1x32x32xf32>
    %156 = vector.shape_cast %155 : vector<1x1x32x32xf32> to vector<32x32xf32>
    %157 = vector.broadcast %154 : f32 to vector<32x32xf32>
    %158 = arith.mulf %157, %156 : vector<32x32xf32>
    %159 = arith.addf %153, %158 : vector<32x32xf32>
    %c26 = arith.constant 26 : index
    %160 = memref.load %arg2[%c26] : memref<98xf32, #tpu.memory_space<smem>>
    %c0_105 = arith.constant 0 : index
    %c0_106 = arith.constant 0 : index
    %c3_107 = arith.constant 3 : index
    %c5_108 = arith.constant 5 : index
    %161 = vector.load %arg1[%c0_105, %c0_106, %c3_107, %c5_108] : memref<1x2x38x38xf32, #tpu.memory_space<vmem>>, vector<1x1x32x32xf32>
    %162 = vector.shape_cast %161 : vector<1x1x32x32xf32> to vector<32x32xf32>
    %163 = vector.broadcast %160 : f32 to vector<32x32xf32>
    %164 = arith.mulf %163, %162 : vector<32x32xf32>
    %165 = arith.addf %159, %164 : vector<32x32xf32>
    %c27 = arith.constant 27 : index
    %166 = memref.load %arg2[%c27] : memref<98xf32, #tpu.memory_space<smem>>
    %c0_109 = arith.constant 0 : index
    %c0_110 = arith.constant 0 : index
    %c3_111 = arith.constant 3 : index
    %c6_112 = arith.constant 6 : index
    %167 = vector.load %arg1[%c0_109, %c0_110, %c3_111, %c6_112] : memref<1x2x38x38xf32, #tpu.memory_space<vmem>>, vector<1x1x32x32xf32>
    %168 = vector.shape_cast %167 : vector<1x1x32x32xf32> to vector<32x32xf32>
    %169 = vector.broadcast %166 : f32 to vector<32x32xf32>
    %170 = arith.mulf %169, %168 : vector<32x32xf32>
    %171 = arith.addf %165, %170 : vector<32x32xf32>
    %c28 = arith.constant 28 : index
    %172 = memref.load %arg2[%c28] : memref<98xf32, #tpu.memory_space<smem>>
    %c0_113 = arith.constant 0 : index
    %c0_114 = arith.constant 0 : index
    %c4_115 = arith.constant 4 : index
    %c0_116 = arith.constant 0 : index
    %173 = vector.load %arg1[%c0_113, %c0_114, %c4_115, %c0_116] : memref<1x2x38x38xf32, #tpu.memory_space<vmem>>, vector<1x1x32x32xf32>
    %174 = vector.shape_cast %173 : vector<1x1x32x32xf32> to vector<32x32xf32>
    %175 = vector.broadcast %172 : f32 to vector<32x32xf32>
    %176 = arith.mulf %175, %174 : vector<32x32xf32>
    %177 = arith.addf %171, %176 : vector<32x32xf32>
    %c29 = arith.constant 29 : index
    %178 = memref.load %arg2[%c29] : memref<98xf32, #tpu.memory_space<smem>>
    %c0_117 = arith.constant 0 : index
    %c0_118 = arith.constant 0 : index
    %c4_119 = arith.constant 4 : index
    %c1_120 = arith.constant 1 : index
    %179 = vector.load %arg1[%c0_117, %c0_118, %c4_119, %c1_120] : memref<1x2x38x38xf32, #tpu.memory_space<vmem>>, vector<1x1x32x32xf32>
    %180 = vector.shape_cast %179 : vector<1x1x32x32xf32> to vector<32x32xf32>
    %181 = vector.broadcast %178 : f32 to vector<32x32xf32>
    %182 = arith.mulf %181, %180 : vector<32x32xf32>
    %183 = arith.addf %177, %182 : vector<32x32xf32>
    %c30 = arith.constant 30 : index
    %184 = memref.load %arg2[%c30] : memref<98xf32, #tpu.memory_space<smem>>
    %c0_121 = arith.constant 0 : index
    %c0_122 = arith.constant 0 : index
    %c4_123 = arith.constant 4 : index
    %c2_124 = arith.constant 2 : index
    %185 = vector.load %arg1[%c0_121, %c0_122, %c4_123, %c2_124] : memref<1x2x38x38xf32, #tpu.memory_space<vmem>>, vector<1x1x32x32xf32>
    %186 = vector.shape_cast %185 : vector<1x1x32x32xf32> to vector<32x32xf32>
    %187 = vector.broadcast %184 : f32 to vector<32x32xf32>
    %188 = arith.mulf %187, %186 : vector<32x32xf32>
    %189 = arith.addf %183, %188 : vector<32x32xf32>
    %c31 = arith.constant 31 : index
    %190 = memref.load %arg2[%c31] : memref<98xf32, #tpu.memory_space<smem>>
    %c0_125 = arith.constant 0 : index
    %c0_126 = arith.constant 0 : index
    %c4_127 = arith.constant 4 : index
    %c3_128 = arith.constant 3 : index
    %191 = vector.load %arg1[%c0_125, %c0_126, %c4_127, %c3_128] : memref<1x2x38x38xf32, #tpu.memory_space<vmem>>, vector<1x1x32x32xf32>
    %192 = vector.shape_cast %191 : vector<1x1x32x32xf32> to vector<32x32xf32>
    %193 = vector.broadcast %190 : f32 to vector<32x32xf32>
    %194 = arith.mulf %193, %192 : vector<32x32xf32>
    %195 = arith.addf %189, %194 : vector<32x32xf32>
    %c32 = arith.constant 32 : index
    %196 = memref.load %arg2[%c32] : memref<98xf32, #tpu.memory_space<smem>>
    %c0_129 = arith.constant 0 : index
    %c0_130 = arith.constant 0 : index
    %c4_131 = arith.constant 4 : index
    %c4_132 = arith.constant 4 : index
    %197 = vector.load %arg1[%c0_129, %c0_130, %c4_131, %c4_132] : memref<1x2x38x38xf32, #tpu.memory_space<vmem>>, vector<1x1x32x32xf32>
    %198 = vector.shape_cast %197 : vector<1x1x32x32xf32> to vector<32x32xf32>
    %199 = vector.broadcast %196 : f32 to vector<32x32xf32>
    %200 = arith.mulf %199, %198 : vector<32x32xf32>
    %201 = arith.addf %195, %200 : vector<32x32xf32>
    %c33 = arith.constant 33 : index
    %202 = memref.load %arg2[%c33] : memref<98xf32, #tpu.memory_space<smem>>
    %c0_133 = arith.constant 0 : index
    %c0_134 = arith.constant 0 : index
    %c4_135 = arith.constant 4 : index
    %c5_136 = arith.constant 5 : index
    %203 = vector.load %arg1[%c0_133, %c0_134, %c4_135, %c5_136] : memref<1x2x38x38xf32, #tpu.memory_space<vmem>>, vector<1x1x32x32xf32>
    %204 = vector.shape_cast %203 : vector<1x1x32x32xf32> to vector<32x32xf32>
    %205 = vector.broadcast %202 : f32 to vector<32x32xf32>
    %206 = arith.mulf %205, %204 : vector<32x32xf32>
    %207 = arith.addf %201, %206 : vector<32x32xf32>
    %c34 = arith.constant 34 : index
    %208 = memref.load %arg2[%c34] : memref<98xf32, #tpu.memory_space<smem>>
    %c0_137 = arith.constant 0 : index
    %c0_138 = arith.constant 0 : index
    %c4_139 = arith.constant 4 : index
    %c6_140 = arith.constant 6 : index
    %209 = vector.load %arg1[%c0_137, %c0_138, %c4_139, %c6_140] : memref<1x2x38x38xf32, #tpu.memory_space<vmem>>, vector<1x1x32x32xf32>
    %210 = vector.shape_cast %209 : vector<1x1x32x32xf32> to vector<32x32xf32>
    %211 = vector.broadcast %208 : f32 to vector<32x32xf32>
    %212 = arith.mulf %211, %210 : vector<32x32xf32>
    %213 = arith.addf %207, %212 : vector<32x32xf32>
    %c35 = arith.constant 35 : index
    %214 = memref.load %arg2[%c35] : memref<98xf32, #tpu.memory_space<smem>>
    %c0_141 = arith.constant 0 : index
    %c0_142 = arith.constant 0 : index
    %c5_143 = arith.constant 5 : index
    %c0_144 = arith.constant 0 : index
    %215 = vector.load %arg1[%c0_141, %c0_142, %c5_143, %c0_144] : memref<1x2x38x38xf32, #tpu.memory_space<vmem>>, vector<1x1x32x32xf32>
    %216 = vector.shape_cast %215 : vector<1x1x32x32xf32> to vector<32x32xf32>
    %217 = vector.broadcast %214 : f32 to vector<32x32xf32>
    %218 = arith.mulf %217, %216 : vector<32x32xf32>
    %219 = arith.addf %213, %218 : vector<32x32xf32>
    %c36 = arith.constant 36 : index
    %220 = memref.load %arg2[%c36] : memref<98xf32, #tpu.memory_space<smem>>
    %c0_145 = arith.constant 0 : index
    %c0_146 = arith.constant 0 : index
    %c5_147 = arith.constant 5 : index
    %c1_148 = arith.constant 1 : index
    %221 = vector.load %arg1[%c0_145, %c0_146, %c5_147, %c1_148] : memref<1x2x38x38xf32, #tpu.memory_space<vmem>>, vector<1x1x32x32xf32>
    %222 = vector.shape_cast %221 : vector<1x1x32x32xf32> to vector<32x32xf32>
    %223 = vector.broadcast %220 : f32 to vector<32x32xf32>
    %224 = arith.mulf %223, %222 : vector<32x32xf32>
    %225 = arith.addf %219, %224 : vector<32x32xf32>
    %c37 = arith.constant 37 : index
    %226 = memref.load %arg2[%c37] : memref<98xf32, #tpu.memory_space<smem>>
    %c0_149 = arith.constant 0 : index
    %c0_150 = arith.constant 0 : index
    %c5_151 = arith.constant 5 : index
    %c2_152 = arith.constant 2 : index
    %227 = vector.load %arg1[%c0_149, %c0_150, %c5_151, %c2_152] : memref<1x2x38x38xf32, #tpu.memory_space<vmem>>, vector<1x1x32x32xf32>
    %228 = vector.shape_cast %227 : vector<1x1x32x32xf32> to vector<32x32xf32>
    %229 = vector.broadcast %226 : f32 to vector<32x32xf32>
    %230 = arith.mulf %229, %228 : vector<32x32xf32>
    %231 = arith.addf %225, %230 : vector<32x32xf32>
    %c38 = arith.constant 38 : index
    %232 = memref.load %arg2[%c38] : memref<98xf32, #tpu.memory_space<smem>>
    %c0_153 = arith.constant 0 : index
    %c0_154 = arith.constant 0 : index
    %c5_155 = arith.constant 5 : index
    %c3_156 = arith.constant 3 : index
    %233 = vector.load %arg1[%c0_153, %c0_154, %c5_155, %c3_156] : memref<1x2x38x38xf32, #tpu.memory_space<vmem>>, vector<1x1x32x32xf32>
    %234 = vector.shape_cast %233 : vector<1x1x32x32xf32> to vector<32x32xf32>
    %235 = vector.broadcast %232 : f32 to vector<32x32xf32>
    %236 = arith.mulf %235, %234 : vector<32x32xf32>
    %237 = arith.addf %231, %236 : vector<32x32xf32>
    %c39 = arith.constant 39 : index
    %238 = memref.load %arg2[%c39] : memref<98xf32, #tpu.memory_space<smem>>
    %c0_157 = arith.constant 0 : index
    %c0_158 = arith.constant 0 : index
    %c5_159 = arith.constant 5 : index
    %c4_160 = arith.constant 4 : index
    %239 = vector.load %arg1[%c0_157, %c0_158, %c5_159, %c4_160] : memref<1x2x38x38xf32, #tpu.memory_space<vmem>>, vector<1x1x32x32xf32>
    %240 = vector.shape_cast %239 : vector<1x1x32x32xf32> to vector<32x32xf32>
    %241 = vector.broadcast %238 : f32 to vector<32x32xf32>
    %242 = arith.mulf %241, %240 : vector<32x32xf32>
    %243 = arith.addf %237, %242 : vector<32x32xf32>
    %c40 = arith.constant 40 : index
    %244 = memref.load %arg2[%c40] : memref<98xf32, #tpu.memory_space<smem>>
    %c0_161 = arith.constant 0 : index
    %c0_162 = arith.constant 0 : index
    %c5_163 = arith.constant 5 : index
    %c5_164 = arith.constant 5 : index
    %245 = vector.load %arg1[%c0_161, %c0_162, %c5_163, %c5_164] : memref<1x2x38x38xf32, #tpu.memory_space<vmem>>, vector<1x1x32x32xf32>
    %246 = vector.shape_cast %245 : vector<1x1x32x32xf32> to vector<32x32xf32>
    %247 = vector.broadcast %244 : f32 to vector<32x32xf32>
    %248 = arith.mulf %247, %246 : vector<32x32xf32>
    %249 = arith.addf %243, %248 : vector<32x32xf32>
    %c41 = arith.constant 41 : index
    %250 = memref.load %arg2[%c41] : memref<98xf32, #tpu.memory_space<smem>>
    %c0_165 = arith.constant 0 : index
    %c0_166 = arith.constant 0 : index
    %c5_167 = arith.constant 5 : index
    %c6_168 = arith.constant 6 : index
    %251 = vector.load %arg1[%c0_165, %c0_166, %c5_167, %c6_168] : memref<1x2x38x38xf32, #tpu.memory_space<vmem>>, vector<1x1x32x32xf32>
    %252 = vector.shape_cast %251 : vector<1x1x32x32xf32> to vector<32x32xf32>
    %253 = vector.broadcast %250 : f32 to vector<32x32xf32>
    %254 = arith.mulf %253, %252 : vector<32x32xf32>
    %255 = arith.addf %249, %254 : vector<32x32xf32>
    %c42 = arith.constant 42 : index
    %256 = memref.load %arg2[%c42] : memref<98xf32, #tpu.memory_space<smem>>
    %c0_169 = arith.constant 0 : index
    %c0_170 = arith.constant 0 : index
    %c6_171 = arith.constant 6 : index
    %c0_172 = arith.constant 0 : index
    %257 = vector.load %arg1[%c0_169, %c0_170, %c6_171, %c0_172] : memref<1x2x38x38xf32, #tpu.memory_space<vmem>>, vector<1x1x32x32xf32>
    %258 = vector.shape_cast %257 : vector<1x1x32x32xf32> to vector<32x32xf32>
    %259 = vector.broadcast %256 : f32 to vector<32x32xf32>
    %260 = arith.mulf %259, %258 : vector<32x32xf32>
    %261 = arith.addf %255, %260 : vector<32x32xf32>
    %c43 = arith.constant 43 : index
    %262 = memref.load %arg2[%c43] : memref<98xf32, #tpu.memory_space<smem>>
    %c0_173 = arith.constant 0 : index
    %c0_174 = arith.constant 0 : index
    %c6_175 = arith.constant 6 : index
    %c1_176 = arith.constant 1 : index
    %263 = vector.load %arg1[%c0_173, %c0_174, %c6_175, %c1_176] : memref<1x2x38x38xf32, #tpu.memory_space<vmem>>, vector<1x1x32x32xf32>
    %264 = vector.shape_cast %263 : vector<1x1x32x32xf32> to vector<32x32xf32>
    %265 = vector.broadcast %262 : f32 to vector<32x32xf32>
    %266 = arith.mulf %265, %264 : vector<32x32xf32>
    %267 = arith.addf %261, %266 : vector<32x32xf32>
    %c44 = arith.constant 44 : index
    %268 = memref.load %arg2[%c44] : memref<98xf32, #tpu.memory_space<smem>>
    %c0_177 = arith.constant 0 : index
    %c0_178 = arith.constant 0 : index
    %c6_179 = arith.constant 6 : index
    %c2_180 = arith.constant 2 : index
    %269 = vector.load %arg1[%c0_177, %c0_178, %c6_179, %c2_180] : memref<1x2x38x38xf32, #tpu.memory_space<vmem>>, vector<1x1x32x32xf32>
    %270 = vector.shape_cast %269 : vector<1x1x32x32xf32> to vector<32x32xf32>
    %271 = vector.broadcast %268 : f32 to vector<32x32xf32>
    %272 = arith.mulf %271, %270 : vector<32x32xf32>
    %273 = arith.addf %267, %272 : vector<32x32xf32>
    %c45 = arith.constant 45 : index
    %274 = memref.load %arg2[%c45] : memref<98xf32, #tpu.memory_space<smem>>
    %c0_181 = arith.constant 0 : index
    %c0_182 = arith.constant 0 : index
    %c6_183 = arith.constant 6 : index
    %c3_184 = arith.constant 3 : index
    %275 = vector.load %arg1[%c0_181, %c0_182, %c6_183, %c3_184] : memref<1x2x38x38xf32, #tpu.memory_space<vmem>>, vector<1x1x32x32xf32>
    %276 = vector.shape_cast %275 : vector<1x1x32x32xf32> to vector<32x32xf32>
    %277 = vector.broadcast %274 : f32 to vector<32x32xf32>
    %278 = arith.mulf %277, %276 : vector<32x32xf32>
    %279 = arith.addf %273, %278 : vector<32x32xf32>
    %c46 = arith.constant 46 : index
    %280 = memref.load %arg2[%c46] : memref<98xf32, #tpu.memory_space<smem>>
    %c0_185 = arith.constant 0 : index
    %c0_186 = arith.constant 0 : index
    %c6_187 = arith.constant 6 : index
    %c4_188 = arith.constant 4 : index
    %281 = vector.load %arg1[%c0_185, %c0_186, %c6_187, %c4_188] : memref<1x2x38x38xf32, #tpu.memory_space<vmem>>, vector<1x1x32x32xf32>
    %282 = vector.shape_cast %281 : vector<1x1x32x32xf32> to vector<32x32xf32>
    %283 = vector.broadcast %280 : f32 to vector<32x32xf32>
    %284 = arith.mulf %283, %282 : vector<32x32xf32>
    %285 = arith.addf %279, %284 : vector<32x32xf32>
    %c47 = arith.constant 47 : index
    %286 = memref.load %arg2[%c47] : memref<98xf32, #tpu.memory_space<smem>>
    %c0_189 = arith.constant 0 : index
    %c0_190 = arith.constant 0 : index
    %c6_191 = arith.constant 6 : index
    %c5_192 = arith.constant 5 : index
    %287 = vector.load %arg1[%c0_189, %c0_190, %c6_191, %c5_192] : memref<1x2x38x38xf32, #tpu.memory_space<vmem>>, vector<1x1x32x32xf32>
    %288 = vector.shape_cast %287 : vector<1x1x32x32xf32> to vector<32x32xf32>
    %289 = vector.broadcast %286 : f32 to vector<32x32xf32>
    %290 = arith.mulf %289, %288 : vector<32x32xf32>
    %291 = arith.addf %285, %290 : vector<32x32xf32>
    %c48 = arith.constant 48 : index
    %292 = memref.load %arg2[%c48] : memref<98xf32, #tpu.memory_space<smem>>
    %c0_193 = arith.constant 0 : index
    %c0_194 = arith.constant 0 : index
    %c6_195 = arith.constant 6 : index
    %c6_196 = arith.constant 6 : index
    %293 = vector.load %arg1[%c0_193, %c0_194, %c6_195, %c6_196] : memref<1x2x38x38xf32, #tpu.memory_space<vmem>>, vector<1x1x32x32xf32>
    %294 = vector.shape_cast %293 : vector<1x1x32x32xf32> to vector<32x32xf32>
    %295 = vector.broadcast %292 : f32 to vector<32x32xf32>
    %296 = arith.mulf %295, %294 : vector<32x32xf32>
    %297 = arith.addf %291, %296 : vector<32x32xf32>
    %c49 = arith.constant 49 : index
    %298 = memref.load %arg2[%c49] : memref<98xf32, #tpu.memory_space<smem>>
    %c0_197 = arith.constant 0 : index
    %c1_198 = arith.constant 1 : index
    %c0_199 = arith.constant 0 : index
    %c0_200 = arith.constant 0 : index
    %299 = vector.load %arg1[%c0_197, %c1_198, %c0_199, %c0_200] : memref<1x2x38x38xf32, #tpu.memory_space<vmem>>, vector<1x1x32x32xf32>
    %300 = vector.shape_cast %299 : vector<1x1x32x32xf32> to vector<32x32xf32>
    %301 = vector.broadcast %298 : f32 to vector<32x32xf32>
    %302 = arith.mulf %301, %300 : vector<32x32xf32>
    %303 = arith.addf %297, %302 : vector<32x32xf32>
    %c50 = arith.constant 50 : index
    %304 = memref.load %arg2[%c50] : memref<98xf32, #tpu.memory_space<smem>>
    %c0_201 = arith.constant 0 : index
    %c1_202 = arith.constant 1 : index
    %c0_203 = arith.constant 0 : index
    %c1_204 = arith.constant 1 : index
    %305 = vector.load %arg1[%c0_201, %c1_202, %c0_203, %c1_204] : memref<1x2x38x38xf32, #tpu.memory_space<vmem>>, vector<1x1x32x32xf32>
    %306 = vector.shape_cast %305 : vector<1x1x32x32xf32> to vector<32x32xf32>
    %307 = vector.broadcast %304 : f32 to vector<32x32xf32>
    %308 = arith.mulf %307, %306 : vector<32x32xf32>
    %309 = arith.addf %303, %308 : vector<32x32xf32>
    %c51 = arith.constant 51 : index
    %310 = memref.load %arg2[%c51] : memref<98xf32, #tpu.memory_space<smem>>
    %c0_205 = arith.constant 0 : index
    %c1_206 = arith.constant 1 : index
    %c0_207 = arith.constant 0 : index
    %c2_208 = arith.constant 2 : index
    %311 = vector.load %arg1[%c0_205, %c1_206, %c0_207, %c2_208] : memref<1x2x38x38xf32, #tpu.memory_space<vmem>>, vector<1x1x32x32xf32>
    %312 = vector.shape_cast %311 : vector<1x1x32x32xf32> to vector<32x32xf32>
    %313 = vector.broadcast %310 : f32 to vector<32x32xf32>
    %314 = arith.mulf %313, %312 : vector<32x32xf32>
    %315 = arith.addf %309, %314 : vector<32x32xf32>
    %c52 = arith.constant 52 : index
    %316 = memref.load %arg2[%c52] : memref<98xf32, #tpu.memory_space<smem>>
    %c0_209 = arith.constant 0 : index
    %c1_210 = arith.constant 1 : index
    %c0_211 = arith.constant 0 : index
    %c3_212 = arith.constant 3 : index
    %317 = vector.load %arg1[%c0_209, %c1_210, %c0_211, %c3_212] : memref<1x2x38x38xf32, #tpu.memory_space<vmem>>, vector<1x1x32x32xf32>
    %318 = vector.shape_cast %317 : vector<1x1x32x32xf32> to vector<32x32xf32>
    %319 = vector.broadcast %316 : f32 to vector<32x32xf32>
    %320 = arith.mulf %319, %318 : vector<32x32xf32>
    %321 = arith.addf %315, %320 : vector<32x32xf32>
    %c53 = arith.constant 53 : index
    %322 = memref.load %arg2[%c53] : memref<98xf32, #tpu.memory_space<smem>>
    %c0_213 = arith.constant 0 : index
    %c1_214 = arith.constant 1 : index
    %c0_215 = arith.constant 0 : index
    %c4_216 = arith.constant 4 : index
    %323 = vector.load %arg1[%c0_213, %c1_214, %c0_215, %c4_216] : memref<1x2x38x38xf32, #tpu.memory_space<vmem>>, vector<1x1x32x32xf32>
    %324 = vector.shape_cast %323 : vector<1x1x32x32xf32> to vector<32x32xf32>
    %325 = vector.broadcast %322 : f32 to vector<32x32xf32>
    %326 = arith.mulf %325, %324 : vector<32x32xf32>
    %327 = arith.addf %321, %326 : vector<32x32xf32>
    %c54 = arith.constant 54 : index
    %328 = memref.load %arg2[%c54] : memref<98xf32, #tpu.memory_space<smem>>
    %c0_217 = arith.constant 0 : index
    %c1_218 = arith.constant 1 : index
    %c0_219 = arith.constant 0 : index
    %c5_220 = arith.constant 5 : index
    %329 = vector.load %arg1[%c0_217, %c1_218, %c0_219, %c5_220] : memref<1x2x38x38xf32, #tpu.memory_space<vmem>>, vector<1x1x32x32xf32>
    %330 = vector.shape_cast %329 : vector<1x1x32x32xf32> to vector<32x32xf32>
    %331 = vector.broadcast %328 : f32 to vector<32x32xf32>
    %332 = arith.mulf %331, %330 : vector<32x32xf32>
    %333 = arith.addf %327, %332 : vector<32x32xf32>
    %c55 = arith.constant 55 : index
    %334 = memref.load %arg2[%c55] : memref<98xf32, #tpu.memory_space<smem>>
    %c0_221 = arith.constant 0 : index
    %c1_222 = arith.constant 1 : index
    %c0_223 = arith.constant 0 : index
    %c6_224 = arith.constant 6 : index
    %335 = vector.load %arg1[%c0_221, %c1_222, %c0_223, %c6_224] : memref<1x2x38x38xf32, #tpu.memory_space<vmem>>, vector<1x1x32x32xf32>
    %336 = vector.shape_cast %335 : vector<1x1x32x32xf32> to vector<32x32xf32>
    %337 = vector.broadcast %334 : f32 to vector<32x32xf32>
    %338 = arith.mulf %337, %336 : vector<32x32xf32>
    %339 = arith.addf %333, %338 : vector<32x32xf32>
    %c56 = arith.constant 56 : index
    %340 = memref.load %arg2[%c56] : memref<98xf32, #tpu.memory_space<smem>>
    %c0_225 = arith.constant 0 : index
    %c1_226 = arith.constant 1 : index
    %c1_227 = arith.constant 1 : index
    %c0_228 = arith.constant 0 : index
    %341 = vector.load %arg1[%c0_225, %c1_226, %c1_227, %c0_228] : memref<1x2x38x38xf32, #tpu.memory_space<vmem>>, vector<1x1x32x32xf32>
    %342 = vector.shape_cast %341 : vector<1x1x32x32xf32> to vector<32x32xf32>
    %343 = vector.broadcast %340 : f32 to vector<32x32xf32>
    %344 = arith.mulf %343, %342 : vector<32x32xf32>
    %345 = arith.addf %339, %344 : vector<32x32xf32>
    %c57 = arith.constant 57 : index
    %346 = memref.load %arg2[%c57] : memref<98xf32, #tpu.memory_space<smem>>
    %c0_229 = arith.constant 0 : index
    %c1_230 = arith.constant 1 : index
    %c1_231 = arith.constant 1 : index
    %c1_232 = arith.constant 1 : index
    %347 = vector.load %arg1[%c0_229, %c1_230, %c1_231, %c1_232] : memref<1x2x38x38xf32, #tpu.memory_space<vmem>>, vector<1x1x32x32xf32>
    %348 = vector.shape_cast %347 : vector<1x1x32x32xf32> to vector<32x32xf32>
    %349 = vector.broadcast %346 : f32 to vector<32x32xf32>
    %350 = arith.mulf %349, %348 : vector<32x32xf32>
    %351 = arith.addf %345, %350 : vector<32x32xf32>
    %c58 = arith.constant 58 : index
    %352 = memref.load %arg2[%c58] : memref<98xf32, #tpu.memory_space<smem>>
    %c0_233 = arith.constant 0 : index
    %c1_234 = arith.constant 1 : index
    %c1_235 = arith.constant 1 : index
    %c2_236 = arith.constant 2 : index
    %353 = vector.load %arg1[%c0_233, %c1_234, %c1_235, %c2_236] : memref<1x2x38x38xf32, #tpu.memory_space<vmem>>, vector<1x1x32x32xf32>
    %354 = vector.shape_cast %353 : vector<1x1x32x32xf32> to vector<32x32xf32>
    %355 = vector.broadcast %352 : f32 to vector<32x32xf32>
    %356 = arith.mulf %355, %354 : vector<32x32xf32>
    %357 = arith.addf %351, %356 : vector<32x32xf32>
    %c59 = arith.constant 59 : index
    %358 = memref.load %arg2[%c59] : memref<98xf32, #tpu.memory_space<smem>>
    %c0_237 = arith.constant 0 : index
    %c1_238 = arith.constant 1 : index
    %c1_239 = arith.constant 1 : index
    %c3_240 = arith.constant 3 : index
    %359 = vector.load %arg1[%c0_237, %c1_238, %c1_239, %c3_240] : memref<1x2x38x38xf32, #tpu.memory_space<vmem>>, vector<1x1x32x32xf32>
    %360 = vector.shape_cast %359 : vector<1x1x32x32xf32> to vector<32x32xf32>
    %361 = vector.broadcast %358 : f32 to vector<32x32xf32>
    %362 = arith.mulf %361, %360 : vector<32x32xf32>
    %363 = arith.addf %357, %362 : vector<32x32xf32>
    %c60 = arith.constant 60 : index
    %364 = memref.load %arg2[%c60] : memref<98xf32, #tpu.memory_space<smem>>
    %c0_241 = arith.constant 0 : index
    %c1_242 = arith.constant 1 : index
    %c1_243 = arith.constant 1 : index
    %c4_244 = arith.constant 4 : index
    %365 = vector.load %arg1[%c0_241, %c1_242, %c1_243, %c4_244] : memref<1x2x38x38xf32, #tpu.memory_space<vmem>>, vector<1x1x32x32xf32>
    %366 = vector.shape_cast %365 : vector<1x1x32x32xf32> to vector<32x32xf32>
    %367 = vector.broadcast %364 : f32 to vector<32x32xf32>
    %368 = arith.mulf %367, %366 : vector<32x32xf32>
    %369 = arith.addf %363, %368 : vector<32x32xf32>
    %c61 = arith.constant 61 : index
    %370 = memref.load %arg2[%c61] : memref<98xf32, #tpu.memory_space<smem>>
    %c0_245 = arith.constant 0 : index
    %c1_246 = arith.constant 1 : index
    %c1_247 = arith.constant 1 : index
    %c5_248 = arith.constant 5 : index
    %371 = vector.load %arg1[%c0_245, %c1_246, %c1_247, %c5_248] : memref<1x2x38x38xf32, #tpu.memory_space<vmem>>, vector<1x1x32x32xf32>
    %372 = vector.shape_cast %371 : vector<1x1x32x32xf32> to vector<32x32xf32>
    %373 = vector.broadcast %370 : f32 to vector<32x32xf32>
    %374 = arith.mulf %373, %372 : vector<32x32xf32>
    %375 = arith.addf %369, %374 : vector<32x32xf32>
    %c62 = arith.constant 62 : index
    %376 = memref.load %arg2[%c62] : memref<98xf32, #tpu.memory_space<smem>>
    %c0_249 = arith.constant 0 : index
    %c1_250 = arith.constant 1 : index
    %c1_251 = arith.constant 1 : index
    %c6_252 = arith.constant 6 : index
    %377 = vector.load %arg1[%c0_249, %c1_250, %c1_251, %c6_252] : memref<1x2x38x38xf32, #tpu.memory_space<vmem>>, vector<1x1x32x32xf32>
    %378 = vector.shape_cast %377 : vector<1x1x32x32xf32> to vector<32x32xf32>
    %379 = vector.broadcast %376 : f32 to vector<32x32xf32>
    %380 = arith.mulf %379, %378 : vector<32x32xf32>
    %381 = arith.addf %375, %380 : vector<32x32xf32>
    %c63 = arith.constant 63 : index
    %382 = memref.load %arg2[%c63] : memref<98xf32, #tpu.memory_space<smem>>
    %c0_253 = arith.constant 0 : index
    %c1_254 = arith.constant 1 : index
    %c2_255 = arith.constant 2 : index
    %c0_256 = arith.constant 0 : index
    %383 = vector.load %arg1[%c0_253, %c1_254, %c2_255, %c0_256] : memref<1x2x38x38xf32, #tpu.memory_space<vmem>>, vector<1x1x32x32xf32>
    %384 = vector.shape_cast %383 : vector<1x1x32x32xf32> to vector<32x32xf32>
    %385 = vector.broadcast %382 : f32 to vector<32x32xf32>
    %386 = arith.mulf %385, %384 : vector<32x32xf32>
    %387 = arith.addf %381, %386 : vector<32x32xf32>
    %c64 = arith.constant 64 : index
    %388 = memref.load %arg2[%c64] : memref<98xf32, #tpu.memory_space<smem>>
    %c0_257 = arith.constant 0 : index
    %c1_258 = arith.constant 1 : index
    %c2_259 = arith.constant 2 : index
    %c1_260 = arith.constant 1 : index
    %389 = vector.load %arg1[%c0_257, %c1_258, %c2_259, %c1_260] : memref<1x2x38x38xf32, #tpu.memory_space<vmem>>, vector<1x1x32x32xf32>
    %390 = vector.shape_cast %389 : vector<1x1x32x32xf32> to vector<32x32xf32>
    %391 = vector.broadcast %388 : f32 to vector<32x32xf32>
    %392 = arith.mulf %391, %390 : vector<32x32xf32>
    %393 = arith.addf %387, %392 : vector<32x32xf32>
    %c65 = arith.constant 65 : index
    %394 = memref.load %arg2[%c65] : memref<98xf32, #tpu.memory_space<smem>>
    %c0_261 = arith.constant 0 : index
    %c1_262 = arith.constant 1 : index
    %c2_263 = arith.constant 2 : index
    %c2_264 = arith.constant 2 : index
    %395 = vector.load %arg1[%c0_261, %c1_262, %c2_263, %c2_264] : memref<1x2x38x38xf32, #tpu.memory_space<vmem>>, vector<1x1x32x32xf32>
    %396 = vector.shape_cast %395 : vector<1x1x32x32xf32> to vector<32x32xf32>
    %397 = vector.broadcast %394 : f32 to vector<32x32xf32>
    %398 = arith.mulf %397, %396 : vector<32x32xf32>
    %399 = arith.addf %393, %398 : vector<32x32xf32>
    %c66 = arith.constant 66 : index
    %400 = memref.load %arg2[%c66] : memref<98xf32, #tpu.memory_space<smem>>
    %c0_265 = arith.constant 0 : index
    %c1_266 = arith.constant 1 : index
    %c2_267 = arith.constant 2 : index
    %c3_268 = arith.constant 3 : index
    %401 = vector.load %arg1[%c0_265, %c1_266, %c2_267, %c3_268] : memref<1x2x38x38xf32, #tpu.memory_space<vmem>>, vector<1x1x32x32xf32>
    %402 = vector.shape_cast %401 : vector<1x1x32x32xf32> to vector<32x32xf32>
    %403 = vector.broadcast %400 : f32 to vector<32x32xf32>
    %404 = arith.mulf %403, %402 : vector<32x32xf32>
    %405 = arith.addf %399, %404 : vector<32x32xf32>
    %c67 = arith.constant 67 : index
    %406 = memref.load %arg2[%c67] : memref<98xf32, #tpu.memory_space<smem>>
    %c0_269 = arith.constant 0 : index
    %c1_270 = arith.constant 1 : index
    %c2_271 = arith.constant 2 : index
    %c4_272 = arith.constant 4 : index
    %407 = vector.load %arg1[%c0_269, %c1_270, %c2_271, %c4_272] : memref<1x2x38x38xf32, #tpu.memory_space<vmem>>, vector<1x1x32x32xf32>
    %408 = vector.shape_cast %407 : vector<1x1x32x32xf32> to vector<32x32xf32>
    %409 = vector.broadcast %406 : f32 to vector<32x32xf32>
    %410 = arith.mulf %409, %408 : vector<32x32xf32>
    %411 = arith.addf %405, %410 : vector<32x32xf32>
    %c68 = arith.constant 68 : index
    %412 = memref.load %arg2[%c68] : memref<98xf32, #tpu.memory_space<smem>>
    %c0_273 = arith.constant 0 : index
    %c1_274 = arith.constant 1 : index
    %c2_275 = arith.constant 2 : index
    %c5_276 = arith.constant 5 : index
    %413 = vector.load %arg1[%c0_273, %c1_274, %c2_275, %c5_276] : memref<1x2x38x38xf32, #tpu.memory_space<vmem>>, vector<1x1x32x32xf32>
    %414 = vector.shape_cast %413 : vector<1x1x32x32xf32> to vector<32x32xf32>
    %415 = vector.broadcast %412 : f32 to vector<32x32xf32>
    %416 = arith.mulf %415, %414 : vector<32x32xf32>
    %417 = arith.addf %411, %416 : vector<32x32xf32>
    %c69 = arith.constant 69 : index
    %418 = memref.load %arg2[%c69] : memref<98xf32, #tpu.memory_space<smem>>
    %c0_277 = arith.constant 0 : index
    %c1_278 = arith.constant 1 : index
    %c2_279 = arith.constant 2 : index
    %c6_280 = arith.constant 6 : index
    %419 = vector.load %arg1[%c0_277, %c1_278, %c2_279, %c6_280] : memref<1x2x38x38xf32, #tpu.memory_space<vmem>>, vector<1x1x32x32xf32>
    %420 = vector.shape_cast %419 : vector<1x1x32x32xf32> to vector<32x32xf32>
    %421 = vector.broadcast %418 : f32 to vector<32x32xf32>
    %422 = arith.mulf %421, %420 : vector<32x32xf32>
    %423 = arith.addf %417, %422 : vector<32x32xf32>
    %c70 = arith.constant 70 : index
    %424 = memref.load %arg2[%c70] : memref<98xf32, #tpu.memory_space<smem>>
    %c0_281 = arith.constant 0 : index
    %c1_282 = arith.constant 1 : index
    %c3_283 = arith.constant 3 : index
    %c0_284 = arith.constant 0 : index
    %425 = vector.load %arg1[%c0_281, %c1_282, %c3_283, %c0_284] : memref<1x2x38x38xf32, #tpu.memory_space<vmem>>, vector<1x1x32x32xf32>
    %426 = vector.shape_cast %425 : vector<1x1x32x32xf32> to vector<32x32xf32>
    %427 = vector.broadcast %424 : f32 to vector<32x32xf32>
    %428 = arith.mulf %427, %426 : vector<32x32xf32>
    %429 = arith.addf %423, %428 : vector<32x32xf32>
    %c71 = arith.constant 71 : index
    %430 = memref.load %arg2[%c71] : memref<98xf32, #tpu.memory_space<smem>>
    %c0_285 = arith.constant 0 : index
    %c1_286 = arith.constant 1 : index
    %c3_287 = arith.constant 3 : index
    %c1_288 = arith.constant 1 : index
    %431 = vector.load %arg1[%c0_285, %c1_286, %c3_287, %c1_288] : memref<1x2x38x38xf32, #tpu.memory_space<vmem>>, vector<1x1x32x32xf32>
    %432 = vector.shape_cast %431 : vector<1x1x32x32xf32> to vector<32x32xf32>
    %433 = vector.broadcast %430 : f32 to vector<32x32xf32>
    %434 = arith.mulf %433, %432 : vector<32x32xf32>
    %435 = arith.addf %429, %434 : vector<32x32xf32>
    %c72 = arith.constant 72 : index
    %436 = memref.load %arg2[%c72] : memref<98xf32, #tpu.memory_space<smem>>
    %c0_289 = arith.constant 0 : index
    %c1_290 = arith.constant 1 : index
    %c3_291 = arith.constant 3 : index
    %c2_292 = arith.constant 2 : index
    %437 = vector.load %arg1[%c0_289, %c1_290, %c3_291, %c2_292] : memref<1x2x38x38xf32, #tpu.memory_space<vmem>>, vector<1x1x32x32xf32>
    %438 = vector.shape_cast %437 : vector<1x1x32x32xf32> to vector<32x32xf32>
    %439 = vector.broadcast %436 : f32 to vector<32x32xf32>
    %440 = arith.mulf %439, %438 : vector<32x32xf32>
    %441 = arith.addf %435, %440 : vector<32x32xf32>
    %c73 = arith.constant 73 : index
    %442 = memref.load %arg2[%c73] : memref<98xf32, #tpu.memory_space<smem>>
    %c0_293 = arith.constant 0 : index
    %c1_294 = arith.constant 1 : index
    %c3_295 = arith.constant 3 : index
    %c3_296 = arith.constant 3 : index
    %443 = vector.load %arg1[%c0_293, %c1_294, %c3_295, %c3_296] : memref<1x2x38x38xf32, #tpu.memory_space<vmem>>, vector<1x1x32x32xf32>
    %444 = vector.shape_cast %443 : vector<1x1x32x32xf32> to vector<32x32xf32>
    %445 = vector.broadcast %442 : f32 to vector<32x32xf32>
    %446 = arith.mulf %445, %444 : vector<32x32xf32>
    %447 = arith.addf %441, %446 : vector<32x32xf32>
    %c74 = arith.constant 74 : index
    %448 = memref.load %arg2[%c74] : memref<98xf32, #tpu.memory_space<smem>>
    %c0_297 = arith.constant 0 : index
    %c1_298 = arith.constant 1 : index
    %c3_299 = arith.constant 3 : index
    %c4_300 = arith.constant 4 : index
    %449 = vector.load %arg1[%c0_297, %c1_298, %c3_299, %c4_300] : memref<1x2x38x38xf32, #tpu.memory_space<vmem>>, vector<1x1x32x32xf32>
    %450 = vector.shape_cast %449 : vector<1x1x32x32xf32> to vector<32x32xf32>
    %451 = vector.broadcast %448 : f32 to vector<32x32xf32>
    %452 = arith.mulf %451, %450 : vector<32x32xf32>
    %453 = arith.addf %447, %452 : vector<32x32xf32>
    %c75 = arith.constant 75 : index
    %454 = memref.load %arg2[%c75] : memref<98xf32, #tpu.memory_space<smem>>
    %c0_301 = arith.constant 0 : index
    %c1_302 = arith.constant 1 : index
    %c3_303 = arith.constant 3 : index
    %c5_304 = arith.constant 5 : index
    %455 = vector.load %arg1[%c0_301, %c1_302, %c3_303, %c5_304] : memref<1x2x38x38xf32, #tpu.memory_space<vmem>>, vector<1x1x32x32xf32>
    %456 = vector.shape_cast %455 : vector<1x1x32x32xf32> to vector<32x32xf32>
    %457 = vector.broadcast %454 : f32 to vector<32x32xf32>
    %458 = arith.mulf %457, %456 : vector<32x32xf32>
    %459 = arith.addf %453, %458 : vector<32x32xf32>
    %c76 = arith.constant 76 : index
    %460 = memref.load %arg2[%c76] : memref<98xf32, #tpu.memory_space<smem>>
    %c0_305 = arith.constant 0 : index
    %c1_306 = arith.constant 1 : index
    %c3_307 = arith.constant 3 : index
    %c6_308 = arith.constant 6 : index
    %461 = vector.load %arg1[%c0_305, %c1_306, %c3_307, %c6_308] : memref<1x2x38x38xf32, #tpu.memory_space<vmem>>, vector<1x1x32x32xf32>
    %462 = vector.shape_cast %461 : vector<1x1x32x32xf32> to vector<32x32xf32>
    %463 = vector.broadcast %460 : f32 to vector<32x32xf32>
    %464 = arith.mulf %463, %462 : vector<32x32xf32>
    %465 = arith.addf %459, %464 : vector<32x32xf32>
    %c77 = arith.constant 77 : index
    %466 = memref.load %arg2[%c77] : memref<98xf32, #tpu.memory_space<smem>>
    %c0_309 = arith.constant 0 : index
    %c1_310 = arith.constant 1 : index
    %c4_311 = arith.constant 4 : index
    %c0_312 = arith.constant 0 : index
    %467 = vector.load %arg1[%c0_309, %c1_310, %c4_311, %c0_312] : memref<1x2x38x38xf32, #tpu.memory_space<vmem>>, vector<1x1x32x32xf32>
    %468 = vector.shape_cast %467 : vector<1x1x32x32xf32> to vector<32x32xf32>
    %469 = vector.broadcast %466 : f32 to vector<32x32xf32>
    %470 = arith.mulf %469, %468 : vector<32x32xf32>
    %471 = arith.addf %465, %470 : vector<32x32xf32>
    %c78 = arith.constant 78 : index
    %472 = memref.load %arg2[%c78] : memref<98xf32, #tpu.memory_space<smem>>
    %c0_313 = arith.constant 0 : index
    %c1_314 = arith.constant 1 : index
    %c4_315 = arith.constant 4 : index
    %c1_316 = arith.constant 1 : index
    %473 = vector.load %arg1[%c0_313, %c1_314, %c4_315, %c1_316] : memref<1x2x38x38xf32, #tpu.memory_space<vmem>>, vector<1x1x32x32xf32>
    %474 = vector.shape_cast %473 : vector<1x1x32x32xf32> to vector<32x32xf32>
    %475 = vector.broadcast %472 : f32 to vector<32x32xf32>
    %476 = arith.mulf %475, %474 : vector<32x32xf32>
    %477 = arith.addf %471, %476 : vector<32x32xf32>
    %c79 = arith.constant 79 : index
    %478 = memref.load %arg2[%c79] : memref<98xf32, #tpu.memory_space<smem>>
    %c0_317 = arith.constant 0 : index
    %c1_318 = arith.constant 1 : index
    %c4_319 = arith.constant 4 : index
    %c2_320 = arith.constant 2 : index
    %479 = vector.load %arg1[%c0_317, %c1_318, %c4_319, %c2_320] : memref<1x2x38x38xf32, #tpu.memory_space<vmem>>, vector<1x1x32x32xf32>
    %480 = vector.shape_cast %479 : vector<1x1x32x32xf32> to vector<32x32xf32>
    %481 = vector.broadcast %478 : f32 to vector<32x32xf32>
    %482 = arith.mulf %481, %480 : vector<32x32xf32>
    %483 = arith.addf %477, %482 : vector<32x32xf32>
    %c80 = arith.constant 80 : index
    %484 = memref.load %arg2[%c80] : memref<98xf32, #tpu.memory_space<smem>>
    %c0_321 = arith.constant 0 : index
    %c1_322 = arith.constant 1 : index
    %c4_323 = arith.constant 4 : index
    %c3_324 = arith.constant 3 : index
    %485 = vector.load %arg1[%c0_321, %c1_322, %c4_323, %c3_324] : memref<1x2x38x38xf32, #tpu.memory_space<vmem>>, vector<1x1x32x32xf32>
    %486 = vector.shape_cast %485 : vector<1x1x32x32xf32> to vector<32x32xf32>
    %487 = vector.broadcast %484 : f32 to vector<32x32xf32>
    %488 = arith.mulf %487, %486 : vector<32x32xf32>
    %489 = arith.addf %483, %488 : vector<32x32xf32>
    %c81 = arith.constant 81 : index
    %490 = memref.load %arg2[%c81] : memref<98xf32, #tpu.memory_space<smem>>
    %c0_325 = arith.constant 0 : index
    %c1_326 = arith.constant 1 : index
    %c4_327 = arith.constant 4 : index
    %c4_328 = arith.constant 4 : index
    %491 = vector.load %arg1[%c0_325, %c1_326, %c4_327, %c4_328] : memref<1x2x38x38xf32, #tpu.memory_space<vmem>>, vector<1x1x32x32xf32>
    %492 = vector.shape_cast %491 : vector<1x1x32x32xf32> to vector<32x32xf32>
    %493 = vector.broadcast %490 : f32 to vector<32x32xf32>
    %494 = arith.mulf %493, %492 : vector<32x32xf32>
    %495 = arith.addf %489, %494 : vector<32x32xf32>
    %c82 = arith.constant 82 : index
    %496 = memref.load %arg2[%c82] : memref<98xf32, #tpu.memory_space<smem>>
    %c0_329 = arith.constant 0 : index
    %c1_330 = arith.constant 1 : index
    %c4_331 = arith.constant 4 : index
    %c5_332 = arith.constant 5 : index
    %497 = vector.load %arg1[%c0_329, %c1_330, %c4_331, %c5_332] : memref<1x2x38x38xf32, #tpu.memory_space<vmem>>, vector<1x1x32x32xf32>
    %498 = vector.shape_cast %497 : vector<1x1x32x32xf32> to vector<32x32xf32>
    %499 = vector.broadcast %496 : f32 to vector<32x32xf32>
    %500 = arith.mulf %499, %498 : vector<32x32xf32>
    %501 = arith.addf %495, %500 : vector<32x32xf32>
    %c83 = arith.constant 83 : index
    %502 = memref.load %arg2[%c83] : memref<98xf32, #tpu.memory_space<smem>>
    %c0_333 = arith.constant 0 : index
    %c1_334 = arith.constant 1 : index
    %c4_335 = arith.constant 4 : index
    %c6_336 = arith.constant 6 : index
    %503 = vector.load %arg1[%c0_333, %c1_334, %c4_335, %c6_336] : memref<1x2x38x38xf32, #tpu.memory_space<vmem>>, vector<1x1x32x32xf32>
    %504 = vector.shape_cast %503 : vector<1x1x32x32xf32> to vector<32x32xf32>
    %505 = vector.broadcast %502 : f32 to vector<32x32xf32>
    %506 = arith.mulf %505, %504 : vector<32x32xf32>
    %507 = arith.addf %501, %506 : vector<32x32xf32>
    %c84 = arith.constant 84 : index
    %508 = memref.load %arg2[%c84] : memref<98xf32, #tpu.memory_space<smem>>
    %c0_337 = arith.constant 0 : index
    %c1_338 = arith.constant 1 : index
    %c5_339 = arith.constant 5 : index
    %c0_340 = arith.constant 0 : index
    %509 = vector.load %arg1[%c0_337, %c1_338, %c5_339, %c0_340] : memref<1x2x38x38xf32, #tpu.memory_space<vmem>>, vector<1x1x32x32xf32>
    %510 = vector.shape_cast %509 : vector<1x1x32x32xf32> to vector<32x32xf32>
    %511 = vector.broadcast %508 : f32 to vector<32x32xf32>
    %512 = arith.mulf %511, %510 : vector<32x32xf32>
    %513 = arith.addf %507, %512 : vector<32x32xf32>
    %c85 = arith.constant 85 : index
    %514 = memref.load %arg2[%c85] : memref<98xf32, #tpu.memory_space<smem>>
    %c0_341 = arith.constant 0 : index
    %c1_342 = arith.constant 1 : index
    %c5_343 = arith.constant 5 : index
    %c1_344 = arith.constant 1 : index
    %515 = vector.load %arg1[%c0_341, %c1_342, %c5_343, %c1_344] : memref<1x2x38x38xf32, #tpu.memory_space<vmem>>, vector<1x1x32x32xf32>
    %516 = vector.shape_cast %515 : vector<1x1x32x32xf32> to vector<32x32xf32>
    %517 = vector.broadcast %514 : f32 to vector<32x32xf32>
    %518 = arith.mulf %517, %516 : vector<32x32xf32>
    %519 = arith.addf %513, %518 : vector<32x32xf32>
    %c86 = arith.constant 86 : index
    %520 = memref.load %arg2[%c86] : memref<98xf32, #tpu.memory_space<smem>>
    %c0_345 = arith.constant 0 : index
    %c1_346 = arith.constant 1 : index
    %c5_347 = arith.constant 5 : index
    %c2_348 = arith.constant 2 : index
    %521 = vector.load %arg1[%c0_345, %c1_346, %c5_347, %c2_348] : memref<1x2x38x38xf32, #tpu.memory_space<vmem>>, vector<1x1x32x32xf32>
    %522 = vector.shape_cast %521 : vector<1x1x32x32xf32> to vector<32x32xf32>
    %523 = vector.broadcast %520 : f32 to vector<32x32xf32>
    %524 = arith.mulf %523, %522 : vector<32x32xf32>
    %525 = arith.addf %519, %524 : vector<32x32xf32>
    %c87 = arith.constant 87 : index
    %526 = memref.load %arg2[%c87] : memref<98xf32, #tpu.memory_space<smem>>
    %c0_349 = arith.constant 0 : index
    %c1_350 = arith.constant 1 : index
    %c5_351 = arith.constant 5 : index
    %c3_352 = arith.constant 3 : index
    %527 = vector.load %arg1[%c0_349, %c1_350, %c5_351, %c3_352] : memref<1x2x38x38xf32, #tpu.memory_space<vmem>>, vector<1x1x32x32xf32>
    %528 = vector.shape_cast %527 : vector<1x1x32x32xf32> to vector<32x32xf32>
    %529 = vector.broadcast %526 : f32 to vector<32x32xf32>
    %530 = arith.mulf %529, %528 : vector<32x32xf32>
    %531 = arith.addf %525, %530 : vector<32x32xf32>
    %c88 = arith.constant 88 : index
    %532 = memref.load %arg2[%c88] : memref<98xf32, #tpu.memory_space<smem>>
    %c0_353 = arith.constant 0 : index
    %c1_354 = arith.constant 1 : index
    %c5_355 = arith.constant 5 : index
    %c4_356 = arith.constant 4 : index
    %533 = vector.load %arg1[%c0_353, %c1_354, %c5_355, %c4_356] : memref<1x2x38x38xf32, #tpu.memory_space<vmem>>, vector<1x1x32x32xf32>
    %534 = vector.shape_cast %533 : vector<1x1x32x32xf32> to vector<32x32xf32>
    %535 = vector.broadcast %532 : f32 to vector<32x32xf32>
    %536 = arith.mulf %535, %534 : vector<32x32xf32>
    %537 = arith.addf %531, %536 : vector<32x32xf32>
    %c89 = arith.constant 89 : index
    %538 = memref.load %arg2[%c89] : memref<98xf32, #tpu.memory_space<smem>>
    %c0_357 = arith.constant 0 : index
    %c1_358 = arith.constant 1 : index
    %c5_359 = arith.constant 5 : index
    %c5_360 = arith.constant 5 : index
    %539 = vector.load %arg1[%c0_357, %c1_358, %c5_359, %c5_360] : memref<1x2x38x38xf32, #tpu.memory_space<vmem>>, vector<1x1x32x32xf32>
    %540 = vector.shape_cast %539 : vector<1x1x32x32xf32> to vector<32x32xf32>
    %541 = vector.broadcast %538 : f32 to vector<32x32xf32>
    %542 = arith.mulf %541, %540 : vector<32x32xf32>
    %543 = arith.addf %537, %542 : vector<32x32xf32>
    %c90 = arith.constant 90 : index
    %544 = memref.load %arg2[%c90] : memref<98xf32, #tpu.memory_space<smem>>
    %c0_361 = arith.constant 0 : index
    %c1_362 = arith.constant 1 : index
    %c5_363 = arith.constant 5 : index
    %c6_364 = arith.constant 6 : index
    %545 = vector.load %arg1[%c0_361, %c1_362, %c5_363, %c6_364] : memref<1x2x38x38xf32, #tpu.memory_space<vmem>>, vector<1x1x32x32xf32>
    %546 = vector.shape_cast %545 : vector<1x1x32x32xf32> to vector<32x32xf32>
    %547 = vector.broadcast %544 : f32 to vector<32x32xf32>
    %548 = arith.mulf %547, %546 : vector<32x32xf32>
    %549 = arith.addf %543, %548 : vector<32x32xf32>
    %c91 = arith.constant 91 : index
    %550 = memref.load %arg2[%c91] : memref<98xf32, #tpu.memory_space<smem>>
    %c0_365 = arith.constant 0 : index
    %c1_366 = arith.constant 1 : index
    %c6_367 = arith.constant 6 : index
    %c0_368 = arith.constant 0 : index
    %551 = vector.load %arg1[%c0_365, %c1_366, %c6_367, %c0_368] : memref<1x2x38x38xf32, #tpu.memory_space<vmem>>, vector<1x1x32x32xf32>
    %552 = vector.shape_cast %551 : vector<1x1x32x32xf32> to vector<32x32xf32>
    %553 = vector.broadcast %550 : f32 to vector<32x32xf32>
    %554 = arith.mulf %553, %552 : vector<32x32xf32>
    %555 = arith.addf %549, %554 : vector<32x32xf32>
    %c92 = arith.constant 92 : index
    %556 = memref.load %arg2[%c92] : memref<98xf32, #tpu.memory_space<smem>>
    %c0_369 = arith.constant 0 : index
    %c1_370 = arith.constant 1 : index
    %c6_371 = arith.constant 6 : index
    %c1_372 = arith.constant 1 : index
    %557 = vector.load %arg1[%c0_369, %c1_370, %c6_371, %c1_372] : memref<1x2x38x38xf32, #tpu.memory_space<vmem>>, vector<1x1x32x32xf32>
    %558 = vector.shape_cast %557 : vector<1x1x32x32xf32> to vector<32x32xf32>
    %559 = vector.broadcast %556 : f32 to vector<32x32xf32>
    %560 = arith.mulf %559, %558 : vector<32x32xf32>
    %561 = arith.addf %555, %560 : vector<32x32xf32>
    %c93 = arith.constant 93 : index
    %562 = memref.load %arg2[%c93] : memref<98xf32, #tpu.memory_space<smem>>
    %c0_373 = arith.constant 0 : index
    %c1_374 = arith.constant 1 : index
    %c6_375 = arith.constant 6 : index
    %c2_376 = arith.constant 2 : index
    %563 = vector.load %arg1[%c0_373, %c1_374, %c6_375, %c2_376] : memref<1x2x38x38xf32, #tpu.memory_space<vmem>>, vector<1x1x32x32xf32>
    %564 = vector.shape_cast %563 : vector<1x1x32x32xf32> to vector<32x32xf32>
    %565 = vector.broadcast %562 : f32 to vector<32x32xf32>
    %566 = arith.mulf %565, %564 : vector<32x32xf32>
    %567 = arith.addf %561, %566 : vector<32x32xf32>
    %c94 = arith.constant 94 : index
    %568 = memref.load %arg2[%c94] : memref<98xf32, #tpu.memory_space<smem>>
    %c0_377 = arith.constant 0 : index
    %c1_378 = arith.constant 1 : index
    %c6_379 = arith.constant 6 : index
    %c3_380 = arith.constant 3 : index
    %569 = vector.load %arg1[%c0_377, %c1_378, %c6_379, %c3_380] : memref<1x2x38x38xf32, #tpu.memory_space<vmem>>, vector<1x1x32x32xf32>
    %570 = vector.shape_cast %569 : vector<1x1x32x32xf32> to vector<32x32xf32>
    %571 = vector.broadcast %568 : f32 to vector<32x32xf32>
    %572 = arith.mulf %571, %570 : vector<32x32xf32>
    %573 = arith.addf %567, %572 : vector<32x32xf32>
    %c95 = arith.constant 95 : index
    %574 = memref.load %arg2[%c95] : memref<98xf32, #tpu.memory_space<smem>>
    %c0_381 = arith.constant 0 : index
    %c1_382 = arith.constant 1 : index
    %c6_383 = arith.constant 6 : index
    %c4_384 = arith.constant 4 : index
    %575 = vector.load %arg1[%c0_381, %c1_382, %c6_383, %c4_384] : memref<1x2x38x38xf32, #tpu.memory_space<vmem>>, vector<1x1x32x32xf32>
    %576 = vector.shape_cast %575 : vector<1x1x32x32xf32> to vector<32x32xf32>
    %577 = vector.broadcast %574 : f32 to vector<32x32xf32>
    %578 = arith.mulf %577, %576 : vector<32x32xf32>
    %579 = arith.addf %573, %578 : vector<32x32xf32>
    %c96 = arith.constant 96 : index
    %580 = memref.load %arg2[%c96] : memref<98xf32, #tpu.memory_space<smem>>
    %c0_385 = arith.constant 0 : index
    %c1_386 = arith.constant 1 : index
    %c6_387 = arith.constant 6 : index
    %c5_388 = arith.constant 5 : index
    %581 = vector.load %arg1[%c0_385, %c1_386, %c6_387, %c5_388] : memref<1x2x38x38xf32, #tpu.memory_space<vmem>>, vector<1x1x32x32xf32>
    %582 = vector.shape_cast %581 : vector<1x1x32x32xf32> to vector<32x32xf32>
    %583 = vector.broadcast %580 : f32 to vector<32x32xf32>
    %584 = arith.mulf %583, %582 : vector<32x32xf32>
    %585 = arith.addf %579, %584 : vector<32x32xf32>
    %c97 = arith.constant 97 : index
    %586 = memref.load %arg2[%c97] : memref<98xf32, #tpu.memory_space<smem>>
    %c0_389 = arith.constant 0 : index
    %c1_390 = arith.constant 1 : index
    %c6_391 = arith.constant 6 : index
    %c6_392 = arith.constant 6 : index
    %587 = vector.load %arg1[%c0_389, %c1_390, %c6_391, %c6_392] : memref<1x2x38x38xf32, #tpu.memory_space<vmem>>, vector<1x1x32x32xf32>
    %588 = vector.shape_cast %587 : vector<1x1x32x32xf32> to vector<32x32xf32>
    %589 = vector.broadcast %586 : f32 to vector<32x32xf32>
    %590 = arith.mulf %589, %588 : vector<32x32xf32>
    %591 = arith.addf %585, %590 : vector<32x32xf32>
    %592 = arith.negf %591 : vector<32x32xf32>
    %593 = math.exp %592 : vector<32x32xf32>
    %cst_393 = arith.constant 1.000000e+00 : f32
    %594 = vector.broadcast %cst_393 : f32 to vector<32x32xf32>
    %595 = arith.addf %594, %593 : vector<32x32xf32>
    %596 = arith.divf %594, %595 : vector<32x32xf32>
    %c0_394 = arith.constant 0 : index
    %c0_395 = arith.constant 0 : index
    %c0_396 = arith.constant 0 : index
    %c0_397 = arith.constant 0 : index
    %597 = vector.load %arg4[%c0_394, %c0_395, %c0_396, %c0_397] : memref<1x1x32x32xf32, #tpu.memory_space<vmem>>, vector<1x1x32x32xf32>
    %598 = vector.shape_cast %597 : vector<1x1x32x32xf32> to vector<32x32xf32>
    %599 = vector.shape_cast %596 : vector<32x32xf32> to vector<1x1x32x32xf32>
    tpu.vector_store %arg4[%c0_394, %c0_395, %c0_396, %c0_397], %599 {strides = array<i32>} : memref<1x1x32x32xf32, #tpu.memory_space<vmem>>, vector<1x1x32x32xf32>,
    return
  }
  func.func @transform_0(%arg0: i32) -> (i32, i32, i32, i32) {
    %c0_i32 = arith.constant 0 : i32
    %c0_i32_0 = arith.constant 0 : i32
    %c0_i32_1 = arith.constant 0 : i32
    %c0_i32_2 = arith.constant 0 : i32
    return %arg0, %c0_i32, %c0_i32_0, %c0_i32_1 : i32, i32, i32, i32
  }
  func.func @transform_1(%arg0: i32) -> i32 {
    %c0_i32 = arith.constant 0 : i32
    %c0_i32_0 = arith.constant 0 : i32
    return %c0_i32 : i32
  }
  func.func @transform_2(%arg0: i32) -> i32 {
    %c0_i32 = arith.constant 0 : i32
    %c0_i32_0 = arith.constant 0 : i32
    return %c0_i32 : i32
  }
  func.func @transform_3(%arg0: i32) -> (i32, i32, i32, i32) {
    %c0_i32 = arith.constant 0 : i32
    %c0_i32_0 = arith.constant 0 : i32
    %c0_i32_1 = arith.constant 0 : i32
    %c0_i32_2 = arith.constant 0 : i32
    return %arg0, %c0_i32, %c0_i32_0, %c0_i32_1 : i32, i32, i32, i32
  }
}

module attributes {stable_mosaic.version = 11 : i64} {
  func.func @_spatial_stats_kernel(%arg0: i32, %arg1: i32, %arg2: memref<1x32x256xf32, #tpu.memory_space<vmem>>, %arg3: memref<1x32x1xf32, #tpu.memory_space<vmem>>, %arg4: memref<1x2x256xf32, #tpu.memory_space<vmem>>) attributes {dimension_semantics = [#tpu.dimension_semantics<parallel>, #tpu.dimension_semantics<parallel>], iteration_bounds = array<i64: 2, 4>, scalar_prefetch = 0 : i64, scratch_operands = 0 : i64, tpu.core_type = #tpu.core_type<tc>, window_params = [{transform_indices = @transform_0, window_bounds = array<i64: 1, 32, 256>}, {transform_indices = @transform_1, window_bounds = array<i64: 1, 32, 1>}, {transform_indices = @transform_2, window_bounds = array<i64: 1, 2, 256>}]} {
    %c0 = arith.constant 0 : index
    %c0_0 = arith.constant 0 : index
    %c0_1 = arith.constant 0 : index
    %0 = vector.load %arg2[%c0, %c0_0, %c0_1] : memref<1x32x256xf32, #tpu.memory_space<vmem>>, vector<1x32x256xf32>
    %1 = vector.shape_cast %0 : vector<1x32x256xf32> to vector<32x256xf32>
    %c0_2 = arith.constant 0 : index
    %c0_3 = arith.constant 0 : index
    %c0_4 = arith.constant 0 : index
    %2 = vector.load %arg3[%c0_2, %c0_3, %c0_4] : memref<1x32x1xf32, #tpu.memory_space<vmem>>, vector<1x32x1xf32>
    %3 = vector.shape_cast %2 : vector<1x32x1xf32> to vector<32x1xf32>
    %4 = vector.broadcast %3 : vector<32x1xf32> to vector<32x256xf32>
    %5 = arith.mulf %1, %4 : vector<32x256xf32>
    %cst = arith.constant dense<0xFF800000> : vector<256xf32>
    %6 = vector.multi_reduction <maximumf>, %5, %cst [0] : vector<32x256xf32> to vector<256xf32>
    %7 = vector.shape_cast %6 : vector<256xf32> to vector<1x256xf32>
    %cst_5 = arith.constant dense<0.000000e+00> : vector<256xf32>
    %8 = vector.multi_reduction <add>, %5, %cst_5 [0] : vector<32x256xf32> to vector<256xf32>
    %9 = vector.shape_cast %8 : vector<256xf32> to vector<1x256xf32>
    %cst_6 = arith.constant 3.200000e+01 : f32
    %10 = vector.broadcast %cst_6 : f32 to vector<1x256xf32>
    %11 = arith.divf %9, %10 : vector<1x256xf32>
    %12 = tpu.concatenate %7, %11 in 0 : vector<1x256xf32>, vector<1x256xf32> -> vector<2x256xf32>
    %c0_7 = arith.constant 0 : index
    %c0_8 = arith.constant 0 : index
    %c0_9 = arith.constant 0 : index
    %13 = vector.load %arg4[%c0_7, %c0_8, %c0_9] : memref<1x2x256xf32, #tpu.memory_space<vmem>>, vector<1x2x256xf32>
    %14 = vector.shape_cast %13 : vector<1x2x256xf32> to vector<2x256xf32>
    %15 = vector.shape_cast %12 : vector<2x256xf32> to vector<1x2x256xf32>
    tpu.vector_store %arg4[%c0_7, %c0_8, %c0_9], %15 {strides = array<i32>} : memref<1x2x256xf32, #tpu.memory_space<vmem>>, vector<1x2x256xf32>,
    return
  }
  func.func @transform_0(%arg0: i32, %arg1: i32) -> (i32, i32, i32) {
    %c0_i32 = arith.constant 0 : i32
    %c0_i32_0 = arith.constant 0 : i32
    return %arg0, %c0_i32, %arg1 : i32, i32, i32
  }
  func.func @transform_1(%arg0: i32, %arg1: i32) -> (i32, i32, i32) {
    %c0_i32 = arith.constant 0 : i32
    %c0_i32_0 = arith.constant 0 : i32
    %c0_i32_1 = arith.constant 0 : i32
    return %arg0, %c0_i32, %c0_i32_0 : i32, i32, i32
  }
  func.func @transform_2(%arg0: i32, %arg1: i32) -> (i32, i32, i32) {
    %c0_i32 = arith.constant 0 : i32
    %c0_i32_0 = arith.constant 0 : i32
    return %arg0, %c0_i32, %arg1 : i32, i32, i32
  }
}

module attributes {stable_mosaic.version = 11 : i64} {
  func.func @_ca_gate_kernel(%arg0: i32, %arg1: i32, %arg2: memref<1x32x256xf32, #tpu.memory_space<vmem>>, %arg3: memref<8x32xf32, #tpu.memory_space<vmem>>, %arg4: memref<32x8xf32, #tpu.memory_space<vmem>>, %arg5: memref<1x32x1xf32, #tpu.memory_space<vmem>>, %arg6: memref<32x1xf32, #tpu.memory_space<vmem>>, %arg7: memref<32x1xf32, #tpu.memory_space<vmem>>) attributes {dimension_semantics = [#tpu.dimension_semantics<parallel>, #tpu.dimension_semantics<arbitrary>], iteration_bounds = array<i64: 2, 4>, scalar_prefetch = 0 : i64, scratch_operands = 2 : i64, tpu.core_type = #tpu.core_type<tc>, window_params = [{transform_indices = @transform_0, window_bounds = array<i64: 1, 32, 256>}, {pipeline_mode = #tpu.pipeline_mode<synchronous>, transform_indices = @transform_1, window_bounds = array<i64: 8, 32>}, {pipeline_mode = #tpu.pipeline_mode<synchronous>, transform_indices = @transform_2, window_bounds = array<i64: 32, 8>}, {transform_indices = @transform_3, window_bounds = array<i64: 1, 32, 1>}]} {
    %c0_i32 = arith.constant 0 : i32
    %0 = arith.cmpi eq, %arg1, %c0_i32 : i32
    %1 = arith.extui %0 : i1 to i32
    %c0_i32_0 = arith.constant 0 : i32
    %2 = arith.cmpi ne, %1, %c0_i32_0 : i32
    scf.if %2 {
      %cst_15 = arith.constant 0xFF800000 : f32
      %27 = vector.broadcast %cst_15 : f32 to vector<32x1xf32>
      %c0_16 = arith.constant 0 : index
      %c0_17 = arith.constant 0 : index
      %28 = vector.load %arg6[%c0_16, %c0_17] : memref<32x1xf32, #tpu.memory_space<vmem>>, vector<32x1xf32>
      tpu.vector_store %arg6[%c0_16, %c0_17], %27 {strides = array<i32>} : memref<32x1xf32, #tpu.memory_space<vmem>>, vector<32x1xf32>,
      %cst_18 = arith.constant 0.000000e+00 : f32
      %29 = vector.broadcast %cst_18 : f32 to vector<32x1xf32>
      %c0_19 = arith.constant 0 : index
      %c0_20 = arith.constant 0 : index
      %30 = vector.load %arg7[%c0_19, %c0_20] : memref<32x1xf32, #tpu.memory_space<vmem>>, vector<32x1xf32>
      tpu.vector_store %arg7[%c0_19, %c0_20], %29 {strides = array<i32>} : memref<32x1xf32, #tpu.memory_space<vmem>>, vector<32x1xf32>,
    } else {
    }
    %c0 = arith.constant 0 : index
    %c0_1 = arith.constant 0 : index
    %c0_2 = arith.constant 0 : index
    %3 = vector.load %arg2[%c0, %c0_1, %c0_2] : memref<1x32x256xf32, #tpu.memory_space<vmem>>, vector<1x32x256xf32>
    %4 = vector.shape_cast %3 : vector<1x32x256xf32> to vector<32x256xf32>
    %5 = tpu.iota {dimensions = array<i32: 1>} : vector<32x256xi32>
    %c256_i32 = arith.constant 256 : i32
    %6 = arith.muli %arg1, %c256_i32 : i32
    %c1024_i32 = arith.constant 1024 : i32
    %7 = arith.subi %c1024_i32, %6 : i32
    %8 = vector.broadcast %7 : i32 to vector<32x256xi32>
    %9 = arith.cmpi slt, %5, %8 : vector<32x256xi32>
    %c0_3 = arith.constant 0 : index
    %c0_4 = arith.constant 0 : index
    %10 = vector.load %arg6[%c0_3, %c0_4] : memref<32x1xf32, #tpu.memory_space<vmem>>, vector<32x1xf32>
    %cst = arith.constant 0xFF800000 : f32
    %11 = vector.broadcast %cst : f32 to vector<32x256xf32>
    %12 = arith.select %9, %4, %11 : vector<32x256xi1>, vector<32x256xf32>
    %cst_5 = arith.constant dense<0xFF800000> : vector<32xf32>
    %13 = vector.multi_reduction <maximumf>, %12, %cst_5 [1] : vector<32x256xf32> to vector<32xf32>
    %14 = vector.shape_cast %13 : vector<32xf32> to vector<32x1xf32>
    %15 = arith.maximumf %10, %14 : vector<32x1xf32>
    %c0_6 = arith.constant 0 : index
    %c0_7 = arith.constant 0 : index
    %16 = vector.load %arg6[%c0_6, %c0_7] : memref<32x1xf32, #tpu.memory_space<vmem>>, vector<32x1xf32>
    tpu.vector_store %arg6[%c0_6, %c0_7], %15 {strides = array<i32>} : memref<32x1xf32, #tpu.memory_space<vmem>>, vector<32x1xf32>,
    %c0_8 = arith.constant 0 : index
    %c0_9 = arith.constant 0 : index
    %17 = vector.load %arg7[%c0_8, %c0_9] : memref<32x1xf32, #tpu.memory_space<vmem>>, vector<32x1xf32>
    %cst_10 = arith.constant 0.000000e+00 : f32
    %18 = vector.broadcast %cst_10 : f32 to vector<32x256xf32>
    %19 = arith.select %9, %4, %18 : vector<32x256xi1>, vector<32x256xf32>
    %cst_11 = arith.constant dense<0.000000e+00> : vector<32xf32>
    %20 = vector.multi_reduction <add>, %19, %cst_11 [1] : vector<32x256xf32> to vector<32xf32>
    %21 = vector.shape_cast %20 : vector<32xf32> to vector<32x1xf32>
    %22 = arith.addf %17, %21 : vector<32x1xf32>
    %c0_12 = arith.constant 0 : index
    %c0_13 = arith.constant 0 : index
    %23 = vector.load %arg7[%c0_12, %c0_13] : memref<32x1xf32, #tpu.memory_space<vmem>>, vector<32x1xf32>
    tpu.vector_store %arg7[%c0_12, %c0_13], %22 {strides = array<i32>} : memref<32x1xf32, #tpu.memory_space<vmem>>, vector<32x1xf32>,
    %c3_i32 = arith.constant 3 : i32
    %24 = arith.cmpi eq, %arg1, %c3_i32 : i32
    %25 = arith.extui %24 : i1 to i32
    %c0_i32_14 = arith.constant 0 : i32
    %26 = arith.cmpi ne, %25, %c0_i32_14 : i32
    scf.if %26 {
      %c0_15 = arith.constant 0 : index
      %c0_16 = arith.constant 0 : index
      %27 = vector.load %arg6[%c0_15, %c0_16] : memref<32x1xf32, #tpu.memory_space<vmem>>, vector<32x1xf32>
      %c0_17 = arith.constant 0 : index
      %c0_18 = arith.constant 0 : index
      %28 = vector.load %arg7[%c0_17, %c0_18] : memref<32x1xf32, #tpu.memory_space<vmem>>, vector<32x1xf32>
      %cst_19 = arith.constant 9.765625E-4 : f32
      %29 = vector.broadcast %cst_19 : f32 to vector<32x1xf32>
      %30 = arith.mulf %28, %29 : vector<32x1xf32>
      %31 = tpu.concatenate %27, %30 in 1 : vector<32x1xf32>, vector<32x1xf32> -> vector<32x2xf32>
      %c0_20 = arith.constant 0 : index
      %c0_21 = arith.constant 0 : index
      %32 = vector.load %arg3[%c0_20, %c0_21] : memref<8x32xf32, #tpu.memory_space<vmem>>, vector<8x32xf32>
      %c0_22 = arith.constant 0 : index
      %c0_23 = arith.constant 0 : index
      %33 = vector.load %arg4[%c0_22, %c0_23] : memref<32x8xf32, #tpu.memory_space<vmem>>, vector<32x8xf32>
      %cst_24 = arith.constant dense<0.000000e+00> : vector<8x2xf32>
      %34 = tpu.matmul %32, %31, %cst_24 {dimension_numbers = #tpu.dot_dimension_numbers<[1], [0], [0], [1], [0, 0, 1, 1], [], []>, precision = #tpu.contract_precision<fp32>} : vector<8x32xf32>, vector<32x2xf32>, vector<8x2xf32> -> vector<8x2xf32>
      %cst_25 = arith.constant 0.000000e+00 : f32
      %35 = vector.broadcast %cst_25 : f32 to vector<8x2xf32>
      %36 = arith.maximumf %34, %35 : vector<8x2xf32>
      %cst_26 = arith.constant dense<0.000000e+00> : vector<32x2xf32>
      %37 = tpu.matmul %33, %36, %cst_26 {dimension_numbers = #tpu.dot_dimension_numbers<[1], [0], [0], [1], [0, 0, 1, 1], [], []>, precision = #tpu.contract_precision<fp32>} : vector<32x8xf32>, vector<8x2xf32>, vector<32x2xf32> -> vector<32x2xf32>
      %38 = vector.extract_strided_slice %37 {offsets = [0, 0], sizes = [32, 1], strides = [1, 1]} : vector<32x2xf32> to vector<32x1xf32>
      %39 = vector.extract_strided_slice %37 {offsets = [0, 1], sizes = [32, 1], strides = [1, 1]} : vector<32x2xf32> to vector<32x1xf32>
      %40 = arith.addf %38, %39 : vector<32x1xf32>
      %41 = arith.negf %40 : vector<32x1xf32>
      %42 = math.exp %41 : vector<32x1xf32>
      %cst_27 = arith.constant 1.000000e+00 : f32
      %43 = vector.broadcast %cst_27 : f32 to vector<32x1xf32>
      %44 = arith.addf %43, %42 : vector<32x1xf32>
      %45 = arith.divf %43, %44 : vector<32x1xf32>
      %c0_28 = arith.constant 0 : index
      %c0_29 = arith.constant 0 : index
      %c0_30 = arith.constant 0 : index
      %46 = vector.load %arg5[%c0_28, %c0_29, %c0_30] : memref<1x32x1xf32, #tpu.memory_space<vmem>>, vector<1x32x1xf32>
      %47 = vector.shape_cast %46 : vector<1x32x1xf32> to vector<32x1xf32>
      %48 = vector.shape_cast %45 : vector<32x1xf32> to vector<1x32x1xf32>
      tpu.vector_store %arg5[%c0_28, %c0_29, %c0_30], %48 {strides = array<i32>} : memref<1x32x1xf32, #tpu.memory_space<vmem>>, vector<1x32x1xf32>,
    } else {
    }
    return
  }
  func.func @transform_0(%arg0: i32, %arg1: i32) -> (i32, i32, i32) {
    %c0_i32 = arith.constant 0 : i32
    %c0_i32_0 = arith.constant 0 : i32
    return %arg0, %c0_i32, %arg1 : i32, i32, i32
  }
  func.func @transform_1(%arg0: i32, %arg1: i32) -> (i32, i32) {
    %c0_i32 = arith.constant 0 : i32
    %c0_i32_0 = arith.constant 0 : i32
    %c0_i32_1 = arith.constant 0 : i32
    return %c0_i32, %c0_i32_0 : i32, i32
  }
  func.func @transform_2(%arg0: i32, %arg1: i32) -> (i32, i32) {
    %c0_i32 = arith.constant 0 : i32
    %c0_i32_0 = arith.constant 0 : i32
    %c0_i32_1 = arith.constant 0 : i32
    return %c0_i32, %c0_i32_0 : i32, i32
  }
  func.func @transform_3(%arg0: i32, %arg1: i32) -> (i32, i32, i32) {
    %c0_i32 = arith.constant 0 : i32
    %c0_i32_0 = arith.constant 0 : i32
    %c0_i32_1 = arith.constant 0 : i32
    return %arg0, %c0_i32, %c0_i32_0 : i32, i32, i32
  }
}

module attributes {stable_mosaic.version = 11 : i64} {
  func.func @_fused_out_conv1_kernel(%arg0: i32, %arg1: i32, %arg2: memref<1x32x256xf32, #tpu.memory_space<vmem>>, %arg3: memref<1x32x1xf32, #tpu.memory_space<vmem>>, %arg4: memref<1x1x256xf32, #tpu.memory_space<vmem>>, %arg5: memref<16x32xf32, #tpu.memory_space<vmem>>, %arg6: memref<16x1xf32, #tpu.memory_space<vmem>>, %arg7: memref<1x16x256xf32, #tpu.memory_space<vmem>>) attributes {dimension_semantics = [#tpu.dimension_semantics<parallel>, #tpu.dimension_semantics<parallel>], iteration_bounds = array<i64: 2, 4>, scalar_prefetch = 0 : i64, scratch_operands = 0 : i64, tpu.core_type = #tpu.core_type<tc>, window_params = [{transform_indices = @transform_0, window_bounds = array<i64: 1, 32, 256>}, {transform_indices = @transform_1, window_bounds = array<i64: 1, 32, 1>}, {transform_indices = @transform_2, window_bounds = array<i64: 1, 1, 256>}, {pipeline_mode = #tpu.pipeline_mode<synchronous>, transform_indices = @transform_3, window_bounds = array<i64: 16, 32>}, {pipeline_mode = #tpu.pipeline_mode<synchronous>, transform_indices = @transform_4, window_bounds = array<i64: 16, 1>}, {transform_indices = @transform_5, window_bounds = array<i64: 1, 16, 256>}]} {
    %c0 = arith.constant 0 : index
    %c0_0 = arith.constant 0 : index
    %c0_1 = arith.constant 0 : index
    %0 = vector.load %arg2[%c0, %c0_0, %c0_1] : memref<1x32x256xf32, #tpu.memory_space<vmem>>, vector<1x32x256xf32>
    %1 = vector.shape_cast %0 : vector<1x32x256xf32> to vector<32x256xf32>
    %c0_2 = arith.constant 0 : index
    %c0_3 = arith.constant 0 : index
    %c0_4 = arith.constant 0 : index
    %2 = vector.load %arg3[%c0_2, %c0_3, %c0_4] : memref<1x32x1xf32, #tpu.memory_space<vmem>>, vector<1x32x1xf32>
    %3 = vector.shape_cast %2 : vector<1x32x1xf32> to vector<32x1xf32>
    %c0_5 = arith.constant 0 : index
    %c0_6 = arith.constant 0 : index
    %c0_7 = arith.constant 0 : index
    %4 = vector.load %arg4[%c0_5, %c0_6, %c0_7] : memref<1x1x256xf32, #tpu.memory_space<vmem>>, vector<1x1x256xf32>
    %5 = vector.shape_cast %4 : vector<1x1x256xf32> to vector<1x256xf32>
    %6 = vector.broadcast %3 : vector<32x1xf32> to vector<32x256xf32>
    %7 = vector.broadcast %5 : vector<1x256xf32> to vector<32x256xf32>
    %8 = arith.mulf %6, %7 : vector<32x256xf32>
    %cst = arith.constant 1.000000e+00 : f32
    %9 = vector.broadcast %cst : f32 to vector<32x256xf32>
    %10 = arith.addf %9, %8 : vector<32x256xf32>
    %11 = arith.mulf %1, %10 : vector<32x256xf32>
    %c0_8 = arith.constant 0 : index
    %c0_9 = arith.constant 0 : index
    %12 = vector.load %arg5[%c0_8, %c0_9] : memref<16x32xf32, #tpu.memory_space<vmem>>, vector<16x32xf32>
    %cst_10 = arith.constant dense<0.000000e+00> : vector<16x256xf32>
    %13 = tpu.matmul %12, %11, %cst_10 {dimension_numbers = #tpu.dot_dimension_numbers<[1], [0], [0], [1], [0, 0, 1, 1], [], []>, precision = #tpu.contract_precision<fp32>} : vector<16x32xf32>, vector<32x256xf32>, vector<16x256xf32> -> vector<16x256xf32>
    %c0_11 = arith.constant 0 : index
    %c0_12 = arith.constant 0 : index
    %14 = vector.load %arg6[%c0_11, %c0_12] : memref<16x1xf32, #tpu.memory_space<vmem>>, vector<16x1xf32>
    %cst_13 = arith.constant 2.000000e+00 : f32
    %15 = vector.broadcast %cst_13 : f32 to vector<16x1xf32>
    %16 = arith.mulf %15, %14 : vector<16x1xf32>
    %17 = vector.broadcast %16 : vector<16x1xf32> to vector<16x256xf32>
    %18 = arith.addf %13, %17 : vector<16x256xf32>
    %c0_14 = arith.constant 0 : index
    %c0_15 = arith.constant 0 : index
    %c0_16 = arith.constant 0 : index
    %19 = vector.load %arg7[%c0_14, %c0_15, %c0_16] : memref<1x16x256xf32, #tpu.memory_space<vmem>>, vector<1x16x256xf32>
    %20 = vector.shape_cast %19 : vector<1x16x256xf32> to vector<16x256xf32>
    %21 = vector.shape_cast %18 : vector<16x256xf32> to vector<1x16x256xf32>
    tpu.vector_store %arg7[%c0_14, %c0_15, %c0_16], %21 {strides = array<i32>} : memref<1x16x256xf32, #tpu.memory_space<vmem>>, vector<1x16x256xf32>,
    return
  }
  func.func @transform_0(%arg0: i32, %arg1: i32) -> (i32, i32, i32) {
    %c0_i32 = arith.constant 0 : i32
    %c0_i32_0 = arith.constant 0 : i32
    return %arg0, %c0_i32, %arg1 : i32, i32, i32
  }
  func.func @transform_1(%arg0: i32, %arg1: i32) -> (i32, i32, i32) {
    %c0_i32 = arith.constant 0 : i32
    %c0_i32_0 = arith.constant 0 : i32
    %c0_i32_1 = arith.constant 0 : i32
    return %arg0, %c0_i32, %c0_i32_0 : i32, i32, i32
  }
  func.func @transform_2(%arg0: i32, %arg1: i32) -> (i32, i32, i32) {
    %c0_i32 = arith.constant 0 : i32
    %c0_i32_0 = arith.constant 0 : i32
    return %arg0, %c0_i32, %arg1 : i32, i32, i32
  }
  func.func @transform_3(%arg0: i32, %arg1: i32) -> (i32, i32) {
    %c0_i32 = arith.constant 0 : i32
    %c0_i32_0 = arith.constant 0 : i32
    %c0_i32_1 = arith.constant 0 : i32
    return %c0_i32, %c0_i32_0 : i32, i32
  }
  func.func @transform_4(%arg0: i32, %arg1: i32) -> (i32, i32) {
    %c0_i32 = arith.constant 0 : i32
    %c0_i32_0 = arith.constant 0 : i32
    %c0_i32_1 = arith.constant 0 : i32
    return %c0_i32, %c0_i32_0 : i32, i32
  }
  func.func @transform_5(%arg0: i32, %arg1: i32) -> (i32, i32, i32) {
    %c0_i32 = arith.constant 0 : i32
    %c0_i32_0 = arith.constant 0 : i32
    return %arg0, %c0_i32, %arg1 : i32, i32, i32
  }
}

</mosaic_0001>

<bundles_post_ra>
// kernel: cbam_block2_forward.5
= control target key start
LH: loop header
LB: loop body
LE: loop exit
PB: predicated region body
PF: predicated region fallthrough
CT: control target
= control target key end

     0   :  { %s575_s9 = smov 0   ;;  %s577_s10 = smov 0   ;;  %s672_s0 = inlined_call_operand.vmem [shape: f32[2,32,1024], index: 0, kind: input, shape index: {}]   ;;  %s673_s1 = inlined_call_operand.vmem [shape: f32[2,32,1], index: 1, kind: input, shape index: {}]   ;;  %s674_s2 = inlined_call_operand.vmem [shape: f32[2,2,1024], index: 2, kind: output, shape index: {}]  }
   0x1   :  { %s579_s11 = smov 0   ;;  %s581_s12 = smov 0  }
   0x2   :  { %s583_s13 = smov 0   ;;  %s585_s14 = smov 0  }
   0x3   :  { %s587_s15 = smov 0  }
   0x4 LB: > { %s21_s16 = sadd.s32 1, %s549_s13  ;;  %s24_s17 = sadd.s32 1, %s553_s14  ;;  %s557_s15 = sphi %s587_s15, %s12_s15   ;;  %s553_s14 = sphi %s585_s14, %s680_s14   ;;  %s549_s13 = sphi %s583_s13, %s679_s13   ;;  %s545_s12 = sphi %s581_s12, %s678_s12   ;;  %s541_s11 = sphi %s579_s11, %s677_s11   ;;  %s537_s10 = sphi %s577_s10, %s676_s10   ;;  %s533_s9 = sphi %s575_s9, %s675_s9  }
   0x5   : > { %p22_p0 = scmp.ge.s32.totalorder %s21_s16, 4  ;;  %p40_p1 = scmp.ne.s32.totalorder %s537_s10, %s533_s9 }
   0x6   : > { %p41_p2 = scmp.eq.s32.totalorder %s557_s15, 0  ;;  %s33_s21 = sadd.s32 1, %s537_s10 }
   0x7   : > { %s682_s16 = smov (%p22_p0, %s21_s16), 0  ;;  %s684_s17 = smov (!%p22_p0, %s24_s17), %s553_s14 }
   0x8   : > { %p42_p3 = por %p41_p2, %p40_p1  ;;  %p26_p4 = scmp.ge.s32.totalorder %s684_s17, 2 }
   0x9   : > { %s29_s18 = ssub.s32 %s549_s13, %s682_s16  ;;  %p428_p6 = scmp.ge.s32.totalorder %s557_s15, 8 }
   0xa   : > { %s686_s17 = smov (%p26_p4, %s684_s17), 0 }
   0xb   : > { %s28_s19 = ssub.s32 %s553_s14, %s686_s17  ;;  %120 = sbr.rel (%p428_p6) target bundleno = 29 (0x1d), region = 16 }
   0xc   : > { %s30_s20 = sor.u32 %s29_s18, %s28_s19 }
   0xd   : > { %p31_p5 = scmp.eq.s32.totalorder %s30_s20, 0 }
   0xf   : > { %s626_s22 = scalar_select %p31_p5, %s537_s10, %s33_s21  }
  0x12   : > { %123 = sbr.rel (!%p42_p3) target bundleno = 29 (0x1d), region = 20  ;;  %s125_s23 = sand.u32 (%p42_p3), 1, %s537_s10  }
  0x13   : > { %s430_s24 = sshll.u32 (%p42_p3), %s549_s13, 1  ;;  %s429_s25 = sshll.u32 (%p42_p3), %s125_s23, 6 }
  0x14   : > { %s431_s26 = sshll.u32 (%p42_p3), %s553_s14, 5  ;;  %s127_s4 = scalar_lea.vmem (%p42_p3), [#allocation2], %s429_s25 }
  0x15   : > { %s130_s27 = sadd.s32 (%p42_p3), %s431_s26, %s430_s24 }
  0x16   : > { %s432_s28 = sshll.u32 (%p42_p3), %s130_s27, 3 }
  0x17   : > { %s132_s3 = scalar_lea.vmem (%p42_p3), %s672_s0, %s432_s28 }
  0x18   : > { %v145_v0 = vld [vmem:[%s132_s3] sm:$0xff] (%p42_p3)  ;;  %v147_v1 = vld [vmem:[%s132_s3 + $0x8] sm:$0xff] (%p42_p3) }
  0x19   : > { %v149_v2 = vld [vmem:[%s132_s3 + $0x40] sm:$0xff]  ;;  %146 = vst [vmem:[%s127_s4] sm:$0xff] %v145_v0  ;;  %148 = vst [vmem:[%s127_s4 + $0x8] sm:$0xff] %v147_v1  ;;  %v151_v3 = vld [vmem:[%s132_s3 + $0x48] sm:$0xff] }
  0x1a   : > { %150 = vst [vmem:[%s127_s4 + $0x10] sm:$0xff] %v149_v2  ;;  %v153_v4 = vld [vmem:[%s132_s3 + $0x80] sm:$0xff]  ;;  %v155_v5 = vld [vmem:[%s132_s3 + $0x88] sm:$0xff]  ;;  %152 = vst [vmem:[%s127_s4 + $0x18] sm:$0xff] %v151_v3 }
  0x1b   : > { %154 = vst [vmem:[%s127_s4 + $0x20] sm:$0xff] %v153_v4  ;;  %156 = vst [vmem:[%s127_s4 + $0x28] sm:$0xff] %v155_v5  ;;  %v157_v6 = vld [vmem:[%s132_s3 + $0xc0] sm:$0xff]  ;;  %v159_v7 = vld [vmem:[%s132_s3 + $0xc8] sm:$0xff] }
  0x1c   : > { %158 = vst [vmem:[%s127_s4 + $0x30] sm:$0xff] %v157_v6  ;;  %160 = vst [vmem:[%s127_s4 + $0x38] sm:$0xff] %v159_v7 }
  0x1d PF: > { %p433_p7 = scmp.ge.s32.totalorder %s557_s15, 1  ;;  %p173_p8 = scmp.lt.s32.totalorder %s557_s15, 9 }
  0x1f   : > { %p174_p9 = pnand %p433_p7, %p173_p8 }
  0x20   : > { %p211_p10 = scmp.lt.s32.totalorder (!%p174_p9), %s545_s12, 1  ;;  %v559_v8 = vmov (!%p174_p9), 0   ;;  %s180_s18 = sand.u32 (!%p174_p9), 1, %s533_s9   ;;  %vm305_vm0 = vcmask (!%p174_p9), 1040384  }
  0x21   : > { %177 = sbr.rel (%p174_p9) target bundleno = 202 (0xca), region = 47  ;;  %502 = vset.pattern.permute.xlu1 (!%p174_p9), %v559_v8  ;;  %501 = vset.pattern.permute.xlu0 (!%p174_p9), %v559_v8  ;;  %s434_s19 = sshll.u32 (!%p174_p9), %s180_s18, 6 }
  0x22   : > { %s182_s20 = scalar_lea.vmem (!%p174_p9), [#allocation2], %s434_s19  ;;  %s437_s9 = sshll.u32 (!%p174_p9), %s541_s11, 1 }
  0x23   : > { %v230_v13 = vld [vmem:[%s182_s20 + $0x20] sm:$0xff] (!%p174_p9)  ;;  %v231_v14 = vld [vmem:[%s182_s20 + $0x28] sm:$0xff] (!%p174_p9)  ;;  %v232_v19 = vld [vmem:[%s182_s20 + $0x30] sm:$0xff] (!%p174_p9)  ;;  %p219_p11 = scmp.lt.s32.totalorder (!%p174_p9), %s437_s9, 7 }
  0x24   : > { %v226_v15 = vld [vmem:[%s182_s20] sm:$0xff] (!%p174_p9)  ;;  %v227_v16 = vld [vmem:[%s182_s20 + $0x8] sm:$0xff] (!%p174_p9)  ;;  %v233_v24 = vld [vmem:[%s182_s20 + $0x38] sm:$0xff] (!%p174_p9) }
  0x25   : > { %v228_v25 = vld [vmem:[%s182_s20 + $0x10] sm:$0xff] (!%p174_p9)  ;;  %v229_v26 = vld [vmem:[%s182_s20 + $0x18] sm:$0xff] (!%p174_p9) }
  0x28   : > { %s688_s12 = smov (!%p211_p10, %s545_s12), 1  ;;  %s690_s9 = smov (!%p219_p11, %s437_s9), 7 }
  0x29   : > { %s443_s5 = sshll.u32 %s688_s12, 5  ;;  %s438_s11 = sshll.u32 %s688_s12, 3 }
  0x2a   : > { %s215_s8 = scalar_lea.vmem %s673_s1, %s443_s5  ;;  %s222_s21 = sadd.s32 %s438_s11, %s690_s9 }
  0x2b   : > { %v236_v9 = vld [vmem:[%s215_s8 + $0x10] sm:$0xff]  ;;  %v234_v10 = vld [vmem:[%s215_s8] sm:$0xff]  ;;  %v237_v11 = vld [vmem:[%s215_s8 + $0x18] sm:$0xff]  ;;  %s439_s23 = sshll.u32 %s222_s21, 1 }
  0x2c   : > { %250 = vperm.xlu1 %502, %v236_v9   ;;  %240 = vperm.xlu0 %501, %v234_v10   ;;  %v235_v12 = vld [vmem:[%s215_s8 + $0x8] sm:$0xff]  ;;  %s224_s26 = scalar_lea.vmem %s674_s2, %s439_s23 }
  0x30   : > { %255 = vperm.xlu1 %502, %v237_v11   ;;  %245 = vperm.xlu0 %501, %v235_v12  }
  0xab   : > { %v251_v17 = vpop.permute.xlu1 %250  ;;  %v241_v18 = vpop.permute.xlu0 %240 }
  0xac   : > { %v262_v20 = vmul.f32 %v251_v17, %v230_v13  ;;  %v263_v21 = vmul.f32 %v251_v17, %v231_v14  ;;  %v258_v22 = vmul.f32 %v241_v18, %v226_v15  ;;  %v259_v23 = vmul.f32 %v241_v18, %v227_v16 }
  0xae   : > { %v266_v33 = vmax.f32 %v258_v22, %v262_v20  ;;  %v275_v34 = vmax.f32 %v259_v23, %v263_v21 }
  0xaf   : > { %v256_v27 = vpop.permute.xlu1 %255  ;;  %v246_v28 = vpop.permute.xlu0 %245 }
  0xb0   : > { %v264_v29 = vmul.f32 %v256_v27, %v232_v19  ;;  %v265_v30 = vmul.f32 %v256_v27, %v233_v24  ;;  %v260_v31 = vmul.f32 %v246_v28, %v228_v25  ;;  %v261_v32 = vmul.f32 %v246_v28, %v229_v26 }
  0xb2   : > { %v267_v35 = vmax.f32 %v260_v31, %v264_v29  ;;  %v276_v36 = vmax.f32 %v261_v32, %v265_v30  ;;  %v284_v37 = vadd.f32 %v260_v31, %v258_v22  ;;  %v293_v38 = vadd.f32 %v261_v32, %v259_v23 }
  0xb4   : > { %v268_v39 = vmax.f32 %v266_v33, %v267_v35  ;;  %v277_v40 = vmax.f32 %v275_v34, %v276_v36  ;;  %v285_v41 = vadd.f32 %v284_v37, %v262_v20  ;;  %v294_v42 = vadd.f32 %v293_v38, %v263_v21 }
  0xb6   : > { %v269_v43 = vrot.slane %v268_v39, 4  ;;  %v278_v44 = vrot.slane %v277_v40, 4  ;;  %v286_v45 = vadd.f32 %v285_v41, %v264_v29  ;;  %v295_v46 = vadd.f32 %v294_v42, %v265_v30 }
  0xb8   : > { %v270_v47 = vmax.f32 %v268_v39, %v269_v43  ;;  %v279_v48 = vmax.f32 %v277_v40, %v278_v44  ;;  %v287_v49 = vrot.slane %v286_v45, 4  ;;  %v296_v50 = vrot.slane %v295_v46, 4 }
  0xba   : > { %v271_v51 = vrot.slane %v270_v47, 2  ;;  %v280_v52 = vrot.slane %v279_v48, 2  ;;  %v288_v53 = vadd.f32 %v287_v49, %v286_v45  ;;  %v297_v54 = vadd.f32 %v296_v50, %v295_v46 }
  0xbc   : > { %v272_v55 = vmax.f32 %v270_v47, %v271_v51  ;;  %v281_v56 = vmax.f32 %v279_v48, %v280_v52  ;;  %v289_v57 = vrot.slane %v288_v53, 2  ;;  %v298_v58 = vrot.slane %v297_v54, 2 }
  0xbe   : > { %v290_v59 = vadd.f32 %v289_v57, %v288_v53  ;;  %v299_v60 = vadd.f32 %v298_v58, %v297_v54  ;;  %v273_v61 = vrot.slane %v272_v55, 1  ;;  %v282_v62 = vrot.slane %v281_v56, 1 }
  0xc0   : > { %v291_v63 = vrot.slane %v290_v59, 1  ;;  %v300_v0 = vrot.slane %v299_v60, 1  ;;  %v274_v3 = vmax.f32 %v272_v55, %v273_v61  ;;  %v283_v4 = vmax.f32 %v281_v56, %v282_v62 }
  0xc2   : > { %v292_v1 = vadd.f32 %v291_v63, %v290_v59  ;;  %v301_v2 = vadd.f32 %v300_v0, %v299_v60 }
  0xc4   : > { %v303_v5 = vmul.f32 0.03125, %v292_v1  ;;  %v304_v6 = vmul.f32 0.03125, %v301_v2 }
  0xc6   : > { %v306_v7 = vsel %vm305_vm0, %v274_v3, %v303_v5  ;;  %v307_v8 = vsel %vm305_vm0, %v283_v4, %v304_v6 }
  0xc7   : > { %v310_v9 = vcombine.low %v306_v7, %v307_v8 }
  0xc9   : > { %440 = vst.sshfl [vmem:[%s224_s26] sm:$0x33 pattern:$0x76325410] %v310_v9 }
  0xca PF: > { %s12_s15 = sadd.s32 1, %s557_s15   ;;  %s675_s9 = smov %s537_s10 }
  0xcb   : > { %p9_p12 = scmp.ge.s32.totalorder %s12_s15, 10   ;;  %s676_s10 = smov %s626_s22 }
  0xcc   : > { %s677_s11 = smov %s549_s13  ;;  %s678_s12 = smov %s553_s14 }
  0xcd   : > { %s679_s13 = smov %s682_s16  ;;  %s680_s14 = smov %s686_s17 }
  0xce   :  { %11 = sbr.rel (!%p9_p12) target bundleno = 4 (0x4), region = 89 }

// kernel: cbam_block2_forward.4
= control target key start
LH: loop header
LB: loop body
LE: loop exit
PB: predicated region body
PF: predicated region fallthrough
CT: control target
= control target key end

     0   :  { %s1982_s12 = smov 0   ;;  %s1984_s13 = smov 0   ;;  %s2187_s0 = inlined_call_operand.vmem [shape: f32[2,32,1024], index: 0, kind: input, shape index: {}]   ;;  %s2188_s1 = inlined_call_operand.vmem [shape: f32[8,32], index: 1, kind: input, shape index: {}]   ;;  %s2189_s2 = inlined_call_operand.vmem [shape: f32[32,8], index: 2, kind: input, shape index: {}]   ;;  %s2190_s3 = inlined_call_operand.vmem [shape: f32[2,32,1], index: 3, kind: output, shape index: {}]  }
   0x1   :  { %s1986_s14 = smov 0   ;;  %s1988_s15 = smov 0  }
   0x2   :  { %s1990_s16 = smov 0   ;;  %s1992_s17 = smov 0  }
   0x3   :  { %s1994_s18 = smov 0  }
   0x4 LB: > { %s22_s19 = sadd.s32 1, %s1945_s16  ;;  %s25_s20 = sadd.s32 1, %s1949_s17  ;;  %s1953_s18 = sphi %s1994_s18, %s13_s18   ;;  %s1949_s17 = sphi %s1992_s17, %s2200_s17   ;;  %s1945_s16 = sphi %s1990_s16, %s2199_s16   ;;  %s1941_s15 = sphi %s1988_s15, %s2198_s15   ;;  %s1937_s14 = sphi %s1986_s14, %s2197_s14   ;;  %s1933_s13 = sphi %s1984_s13, %s2196_s13   ;;  %s1929_s12 = sphi %s1982_s12, %s2195_s12  }
   0x5   : > { %p23_p0 = scmp.ge.s32.totalorder %s22_s19, 4  ;;  %p41_p1 = scmp.ne.s32.totalorder %s1933_s13, %s1929_s12 }
   0x6   : > { %p42_p2 = scmp.eq.s32.totalorder %s1953_s18, 0  ;;  %s34_s24 = sadd.s32 1, %s1933_s13 }
   0x7   : > { %s2202_s19 = smov (%p23_p0, %s22_s19), 0  ;;  %s2204_s20 = smov (!%p23_p0, %s25_s20), %s1949_s17 }
   0x8   : > { %p43_p3 = por %p42_p2, %p41_p1  ;;  %p27_p4 = scmp.ge.s32.totalorder %s2204_s20, 2 }
   0x9   : > { %s30_s21 = ssub.s32 %s1945_s16, %s2202_s19  ;;  %p1561_p6 = scmp.ge.s32.totalorder %s1953_s18, 8 }
   0xa   : > { %s2206_s20 = smov (%p27_p4, %s2204_s20), 0 }
   0xb   : > { %s29_s22 = ssub.s32 %s1949_s17, %s2206_s20  ;;  %141 = sbr.rel (%p1561_p6) target bundleno = 29 (0x1d), region = 24 }
   0xc   : > { %s31_s23 = sor.u32 %s30_s21, %s29_s22 }
   0xd   : > { %p32_p5 = scmp.eq.s32.totalorder %s31_s23, 0 }
   0xf   : > { %s2033_s25 = scalar_select %p32_p5, %s1933_s13, %s34_s24  }
  0x12   : > { %144 = sbr.rel (!%p43_p3) target bundleno = 29 (0x1d), region = 28  ;;  %s146_s26 = sand.u32 (%p43_p3), 1, %s1933_s13  }
  0x13   : > { %s1563_s27 = sshll.u32 (%p43_p3), %s1945_s16, 1  ;;  %s1562_s28 = sshll.u32 (%p43_p3), %s146_s26, 6 }
  0x14   : > { %s1564_s29 = sshll.u32 (%p43_p3), %s1949_s17, 5  ;;  %s148_s8 = scalar_lea.vmem (%p43_p3), [#allocation4], %s1562_s28 }
  0x15   : > { %s151_s30 = sadd.s32 (%p43_p3), %s1564_s29, %s1563_s27 }
  0x16   : > { %s1565_s4 = sshll.u32 (%p43_p3), %s151_s30, 3 }
  0x17   : > { %s153_s7 = scalar_lea.vmem (%p43_p3), %s2187_s0, %s1565_s4 }
  0x18   : > { %v166_v0 = vld [vmem:[%s153_s7] sm:$0xff] (%p43_p3)  ;;  %v168_v1 = vld [vmem:[%s153_s7 + $0x8] sm:$0xff] (%p43_p3) }
  0x19   : > { %v170_v2 = vld [vmem:[%s153_s7 + $0x40] sm:$0xff]  ;;  %167 = vst [vmem:[%s148_s8] sm:$0xff] %v166_v0  ;;  %169 = vst [vmem:[%s148_s8 + $0x8] sm:$0xff] %v168_v1  ;;  %v172_v3 = vld [vmem:[%s153_s7 + $0x48] sm:$0xff] }
  0x1a   : > { %171 = vst [vmem:[%s148_s8 + $0x10] sm:$0xff] %v170_v2  ;;  %v174_v4 = vld [vmem:[%s153_s7 + $0x80] sm:$0xff]  ;;  %v176_v5 = vld [vmem:[%s153_s7 + $0x88] sm:$0xff]  ;;  %173 = vst [vmem:[%s148_s8 + $0x18] sm:$0xff] %v172_v3 }
  0x1b   : > { %175 = vst [vmem:[%s148_s8 + $0x20] sm:$0xff] %v174_v4  ;;  %177 = vst [vmem:[%s148_s8 + $0x28] sm:$0xff] %v176_v5  ;;  %v178_v6 = vld [vmem:[%s153_s7 + $0xc0] sm:$0xff]  ;;  %v180_v7 = vld [vmem:[%s153_s7 + $0xc8] sm:$0xff] }
  0x1c   : > { %179 = vst [vmem:[%s148_s8 + $0x30] sm:$0xff] %v178_v6  ;;  %181 = vst [vmem:[%s148_s8 + $0x38] sm:$0xff] %v180_v7 }
  0x1d PF: > { %p1566_p7 = scmp.ge.s32.totalorder %s1953_s18, 1  ;;  %p186_p8 = scmp.lt.s32.totalorder %s1953_s18, 9 }
  0x1f   : > { %p187_p9 = pnand %p1566_p7, %p186_p8 }
  0x20   : > { %s193_s9 = sand.u32 (!%p187_p9), 1, %s1929_s12   ;;  %p217_p10 = scmp.lt.s32.totalorder (!%p187_p9), %s1941_s15, 1 }
  0x21   : > { %190 = sbr.rel (%p187_p9) target bundleno = 1009 (0x3f1), region = 51  ;;  %s1567_s10 = sshll.u32 (!%p187_p9), %s193_s9, 6 }
  0x22   : > { %s195_s24 = scalar_lea.vmem (!%p187_p9), [#allocation4], %s1567_s10  ;;  %p1570_p11 = scmp.ne.s32.totalorder (!%p187_p9), %s1937_s14, 0 }
  0x28   : > { %s2208_s15 = smov (!%p217_p10, %s1941_s15), 1  ;;  %225 = sbr.rel (%p1570_p11) target bundleno = 47 (0x2f), region = 59 }
  0x29   : > { %s1579_s11 = sshll.u32 %s2208_s15, 5  ;;  %vm226_vm0 = vcmask (!%p1570_p11), 7168   ;;  %v1955_v8 = vmov (!%p1570_p11), -inf   ;;  %v1956_v9 = vmov (!%p1570_p11), 0.0  }
  0x2a   : > { %s2050_s23 = scalar_lea.vmem %s2190_s3, %s1579_s11  ;;  %227 = vst.msk [vmem:[#allocation2] sm:$0xff] (!%p1570_p11), %vm226_vm0, %v1955_v8  ;;  %228 = vst.msk [vmem:[#allocation2 + $0x8] sm:$0xff] (!%p1570_p11), %vm226_vm0, %v1955_v8 }
  0x2b   : > { %229 = vst.msk [vmem:[#allocation2 + $0x10] sm:$0xff] (!%p1570_p11), %vm226_vm0, %v1955_v8  ;;  %230 = vst.msk [vmem:[#allocation2 + $0x18] sm:$0xff] (!%p1570_p11), %vm226_vm0, %v1955_v8 }
  0x2c   : > { %231 = vst.msk [vmem:[#allocation3] sm:$0xff] (!%p1570_p11), %vm226_vm0, %v1956_v9  ;;  %232 = vst.msk [vmem:[#allocation3 + $0x8] sm:$0xff] (!%p1570_p11), %vm226_vm0, %v1956_v9 }
  0x2d   : > { %233 = vst.msk [vmem:[#allocation3 + $0x10] sm:$0xff] (!%p1570_p11), %vm226_vm0, %v1956_v9  ;;  %234 = vst.msk [vmem:[#allocation3 + $0x18] sm:$0xff] (!%p1570_p11), %vm226_vm0, %v1956_v9 }
  0x2f PF: > { %v243_v10 = vlaneseq  ;;  %s1571_s12 = sshll.u32 %s1937_s14, 8  ;;  %v239_v11 = vld [vmem:[%s195_s24 + $0x20] sm:$0xff]  ;;  %v240_v15 = vld [vmem:[%s195_s24 + $0x28] sm:$0xff]  ;;  %v241_v16 = vld [vmem:[%s195_s24 + $0x30] sm:$0xff]  ;;  %vm279_vm3 = vcmask 7168   ;;  %p1572_p12 = scmp.ne.s32.totalorder %s1937_s14, 3 }
  0x30   : > { %s247_s15 = ssub.s32 1024, %s1571_s12  ;;  %v235_v14 = vld [vmem:[%s195_s24] sm:$0xff]  ;;  %v237_v17 = vld [vmem:[%s195_s24 + $0x10] sm:$0xff]  ;;  %v236_v20 = vld [vmem:[%s195_s24 + $0x8] sm:$0xff]  ;;  %s1958_s26 = smov (!%p1572_p12), 1   ;;  %vm1959_vm4 = vmmov (!%p1572_p12), 0  }
  0x31   : > { %v244_v12 = vand.u32 127, %v243_v10  ;;  %v248_v13 = vstv %s247_s15  ;;  %v242_v21 = vld [vmem:[%s195_s24 + $0x38] sm:$0xff]  ;;  %v251_v49 = vld [vmem:[#allocation2] sm:$0xff]  ;;  %v252_v55 = vld [vmem:[#allocation2 + $0x8] sm:$0xff]  ;;  %vm357_vm5 = vcmask (!%p1572_p12), 261120   ;;  %vm847_vm6 = vcmask (!%p1572_p12), 64512  }
  0x32   : > { %v238_v22 = vld [vmem:[%s195_s24 + $0x18] sm:$0xff]  ;;  %v253_v48 = vld [vmem:[#allocation2 + $0x10] sm:$0xff]  ;;  %s1961_s9 = smov (!%p1572_p12), 127  }
  0x33   : > { %v245_v18 = vadd.s32 128, %v244_v12  ;;  %vm2054_vm1 = vcmp.lt.s32.totalorder %v244_v12, %v248_v13  ;;  %v254_v54 = vld [vmem:[#allocation2 + $0x18] sm:$0xff]  ;;  %v285_v60 = vld [vmem:[#allocation3 + $0x8] sm:$0xff]  ;;  %v284_v61 = vld [vmem:[#allocation3] sm:$0xff] }
  0x34   : > { %v259_v23 = vsel %vm2054_vm1, %v239_v11, -inf  ;;  %v255_v24 = vsel %vm2054_vm1, %v235_v14, -inf  ;;  %v261_v26 = vsel %vm2054_vm1, %v241_v16, -inf  ;;  %v257_v27 = vsel %vm2054_vm1, %v237_v17, -inf  ;;  %v287_v2 = vld [vmem:[#allocation3 + $0x18] sm:$0xff]  ;;  %v286_v3 = vld [vmem:[#allocation3 + $0x10] sm:$0xff] }
  0x35   : > { %vm2062_vm2 = vcmp.lt.s32.totalorder %v245_v18, %v248_v13  ;;  %v290_v36 = vsel %vm2054_vm1, %v237_v17, 0.0  ;;  %v288_v38 = vsel %vm2054_vm1, %v235_v14, 0.0  ;;  %v294_v42 = vsel %vm2054_vm1, %v241_v16, 0.0  ;;  %v352_v18 = vld [vmem:[%s2188_s1] sm:$0xff] (!%p1572_p12) }
  0x36   : > { %v260_v28 = vsel %vm2062_vm2, %v240_v15, -inf  ;;  %v256_v29 = vsel %vm2062_vm2, %v236_v20, -inf  ;;  %v262_v30 = vsel %vm2062_vm2, %v242_v21, -inf  ;;  %v258_v31 = vsel %vm2062_vm2, %v238_v22, -inf }
  0x37   : > { %v269_v32 = vmax.f32 %v259_v23, %v260_v28  ;;  %v263_v33 = vmax.f32 %v255_v24, %v256_v29  ;;  %v272_v34 = vmax.f32 %v261_v26, %v262_v30  ;;  %v266_v35 = vmax.f32 %v257_v27, %v258_v31 }
  0x38   : > { %v291_v37 = vsel %vm2062_vm2, %v238_v22, 0.0  ;;  %v289_v39 = vsel %vm2062_vm2, %v236_v20, 0.0  ;;  %v295_v43 = vsel %vm2062_vm2, %v242_v21, 0.0  ;;  %v292_v44 = vsel %vm2054_vm1, %v239_v11, 0.0 }
  0x39   : > { %270 = vmax.xlane.f32.xlu1 %v269_v32  ;;  %264 = vmax.xlane.f32.xlu0 %v263_v33  ;;  %v299_v40 = vadd.f32 %v291_v37, %v290_v36  ;;  %v296_v41 = vadd.f32 %v289_v39, %v288_v38  ;;  %v293_v45 = vsel %vm2062_vm2, %v240_v15, 0.0  ;;  %v305_v46 = vadd.f32 %v295_v43, %v294_v42 }
  0x3a   : > { %v302_v47 = vadd.f32 %v293_v45, %v292_v44  ;;  %v1957_v14 = vmov (!%p1572_p12), 0.0|0.0   ;;  %v1960_v17 = vmov (!%p1572_p12), 0.0   ;;  %v359_v19 = vsel (!%p1572_p12), %vm357_vm5, %v352_v18, 0 }
  0x3b   : > { %1754 = vmatprep.subr.bf16.mxu0 (!%p1572_p12), %v1957_v14  ;;  %1648 = vmatprep.mubr.msk.f32.mxu0 (!%p1572_p12), %vm1959_vm4, %v1960_v17  ;;  %v2109_v22 = vand.u32 (!%p1572_p12), 4294901760, %v359_v19 }
  0x3d   : > { %273 = vmax.xlane.f32.xlu1 %v272_v34  ;;  %267 = vmax.xlane.f32.xlu0 %v266_v35  ;;  %v431_v30 = vsub.f32 (!%p1572_p12), %v359_v19, %v2109_v22 }
  0x3f   : > { %v432_v39 = vand.u32 (!%p1572_p12), 4294901760, %v431_v30 }
  0x41   : > { %300 = vadd.xlane.f32.xlu1 %v299_v40  ;;  %297 = vadd.xlane.f32.xlu0 %v296_v41 }
  0x45   : > { %306 = vadd.xlane.f32.xlu1 %v305_v46  ;;  %303 = vadd.xlane.f32.xlu0 %v302_v47  ;;  %v433_v46 = vsub.f32 (!%p1572_p12), %v431_v30, %v432_v39 }
  0xc6   : > { %v271_v50 = vpop.xlane.xlu1 %270  ;;  %v265_v51 = vpop.xlane.xlu0 %264 }
  0xc7   : > { %v277_v52 = vmax.f32 %v253_v48, %v271_v50  ;;  %v275_v53 = vmax.f32 %v251_v49, %v265_v51 }
  0xc9   : > { %282 = vst.msk [vmem:[#allocation2 + $0x10] sm:$0xff] %vm279_vm3, %v277_v52  ;;  %280 = vst.msk [vmem:[#allocation2] sm:$0xff] %vm279_vm3, %v275_v53  ;;  %v434_v53 = vand.u32 (!%p1572_p12), 4294901760, %v433_v46 }
  0xca   : > { %v274_v56 = vpop.xlane.xlu1 %273  ;;  %v268_v57 = vpop.xlane.xlu0 %267 }
  0xcb   : > { %v278_v58 = vmax.f32 %v254_v54, %v274_v56  ;;  %v276_v59 = vmax.f32 %v252_v55, %v268_v57 }
  0xcd   : > { %283 = vst.msk [vmem:[#allocation2 + $0x18] sm:$0xff] %vm279_vm3, %v278_v58  ;;  %281 = vst.msk [vmem:[#allocation2 + $0x8] sm:$0xff] %vm279_vm3, %v276_v59 }
  0xce   : > { %v301_v62 = vpop.xlane.xlu1 %300  ;;  %v298_v63 = vpop.xlane.xlu0 %297 }
  0xcf   : > { %v309_v0 = vadd.f32 %v301_v62, %v285_v60  ;;  %v308_v1 = vadd.f32 %v298_v63, %v284_v61  ;;  %319 = sbr.rel (%p1572_p12) target bundleno = 1009 (0x3f1), region = 63 }
  0xd0   : > { %v322_v20 = vld [vmem:[#allocation2 + $0x10] sm:$0xff] (!%p1572_p12)  ;;  %v320_v21 = vld [vmem:[#allocation2] sm:$0xff] (!%p1572_p12) }
  0xd1   : > { %313 = vst.msk [vmem:[#allocation3 + $0x8] sm:$0xff] %vm279_vm3, %v309_v0  ;;  %312 = vst.msk [vmem:[#allocation3] sm:$0xff] %vm279_vm3, %v308_v1  ;;  %v353_v1 = vld [vmem:[%s2189_s2] sm:$0xff] (!%p1572_p12) }
  0xd2   : > { %v307_v4 = vpop.xlane.xlu1 %306  ;;  %v304_v5 = vpop.xlane.xlu0 %303 }
  0xd3   : > { %v311_v6 = vadd.f32 %v307_v4, %v287_v2  ;;  %v310_v7 = vadd.f32 %v304_v5, %v286_v3  ;;  %v849_v2 = vsel (!%p1572_p12), %vm847_vm6, %v353_v1, 0 }
  0xd4   : > { %v323_v28 = vld [vmem:[#allocation2 + $0x18] sm:$0xff] (!%p1572_p12)  ;;  %v321_v29 = vld [vmem:[#allocation2 + $0x8] sm:$0xff] (!%p1572_p12)  ;;  %v2143_v3 = vand.u32 (!%p1572_p12), 4294901760, %v849_v2 }
  0xd5   : > { %315 = vst.msk [vmem:[#allocation3 + $0x18] sm:$0xff] %vm279_vm3, %v311_v6  ;;  %314 = vst.msk [vmem:[#allocation3 + $0x10] sm:$0xff] %vm279_vm3, %v310_v7 }
  0xd6   : > { %v927_v4 = vsub.f32 %v849_v2, %v2143_v3 }
  0xd8   : > { %v324_v9 = vld [vmem:[#allocation3] sm:$0xff]  ;;  %v325_v13 = vld [vmem:[#allocation3 + $0x8] sm:$0xff]  ;;  %v928_v5 = vand.u32 4294901760, %v927_v4 }
  0xd9   : > { %v328_v12 = vmul.f32 0.0009765625, %v324_v9  ;;  %v329_v16 = vmul.f32 0.0009765625, %v325_v13  ;;  %v355_v9 = vld [vmem:[%s2189_s2 + $0x10] sm:$0xff] }
  0xda   : > { %v929_v6 = vsub.f32 %v927_v4, %v928_v5 }
  0xdb   : > { %336 = vrot.lane.b32.xlu0 %v328_v12, %s1958_s26  ;;  %v356_v12 = vld [vmem:[%s2189_s2 + $0x18] sm:$0xff] }
  0xdc   : > { %v326_v8 = vld [vmem:[#allocation3 + $0x10] sm:$0xff]  ;;  %v327_v10 = vld [vmem:[#allocation3 + $0x18] sm:$0xff]  ;;  %v930_v7 = vand.u32 4294901760, %v929_v6 }
  0xdd   : > { %v330_v11 = vmul.f32 0.0009765625, %v326_v8  ;;  %v331_v15 = vmul.f32 0.0009765625, %v327_v10  ;;  %v354_v8 = vld [vmem:[%s2189_s2 + $0x8] sm:$0xff] }
  0xde   : > { %1708 = vmatprep.mubr.f32.mxu1 %v930_v7  ;;  %v852_v10 = vsel %vm847_vm6, %v354_v8, 0 }
  0xdf   : > { %340 = vrot.lane.b32.xlu1 %v330_v11, %s1958_s26  ;;  %338 = vrot.lane.b32.xlu0 %v329_v16, %s1958_s26  ;;  %v855_v11 = vsel %vm847_vm6, %v355_v9, 0  ;;  %v936_v13 = vand.u32 4294901760, %v852_v10 }
  0xe1   : > { %v937_v16 = vsub.f32 %v852_v10, %v936_v13 }
  0xe3   : > { %342 = vrot.lane.b32.xlu1 %v331_v15, %s1958_s26  ;;  %v858_v15 = vsel %vm847_vm6, %v356_v12, 0  ;;  %v938_v19 = vand.u32 4294901760, %v937_v16 }
 0x14d   : > { %v337_v24 = vpop.permute.xlu0 %336 }
 0x14e   : > { %v348_v26 = vsel %vm279_vm3, %v320_v21, %v337_v24 }
 0x14f   : > { %v362_v27 = vand.u32 4294901760, %v348_v26 }
 0x151   : > { %v341_v23 = vpop.permute.xlu1 %340  ;;  %v442_v32 = vsub.f32 %v348_v26, %v362_v27  ;;  %v339_v34 = vpop.permute.xlu0 %338 }
 0x152   : > { %v350_v25 = vsel %vm279_vm3, %v322_v20, %v341_v23  ;;  %v349_v36 = vsel %vm279_vm3, %v321_v29, %v339_v34 }
 0x153   : > { %v368_v31 = vand.u32 4294901760, %v350_v25  ;;  %v365_v38 = vand.u32 4294901760, %v349_v36  ;;  %v443_v41 = vand.u32 4294901760, %v442_v32 }
 0x155   : > { %v343_v33 = vpop.permute.xlu1 %342  ;;  %v456_v40 = vsub.f32 %v350_v25, %v368_v31  ;;  %v1755_v43 = vpack.c.bf16 %v365_v38, %v362_v27  ;;  %v449_v44 = vsub.f32 %v349_v36, %v365_v38  ;;  %v444_v48 = vsub.f32 %v442_v32, %v443_v41 }
 0x156   : > { %v351_v35 = vsel %vm279_vm3, %v323_v28, %v343_v33 }
 0x157   : > { %v371_v37 = vand.u32 4294901760, %v351_v35  ;;  %v457_v47 = vand.u32 4294901760, %v456_v40  ;;  %v450_v49 = vand.u32 4294901760, %v449_v44  ;;  %1756 = vmatpush3.bf16.msra.mxu0 %v1755_v43  ;;  %v445_v55 = vand.u32 4294901760, %v444_v48 }
 0x158   : > { %1757 = vmatprep.subr.bf16.mxu0 %v1957_v14  ;;  %v1767_v61 = vpack.c.bf16 %v449_v44, %v442_v32 }
 0x159   : > { %v463_v42 = vsub.f32 %v351_v35, %v371_v37  ;;  %v1758_v50 = vpack.c.bf16 %v371_v37, %v368_v31  ;;  %v451_v52 = vsub.f32 %v449_v44, %v450_v49  ;;  %v458_v54 = vsub.f32 %v456_v40, %v457_v47 }
 0x15a   : > { %v1779_v63 = vpack.c.bf16 %v450_v49, %v443_v41 }
 0x15b   : > { %v464_v45 = vand.u32 4294901760, %v463_v42  ;;  %v452_v56 = vand.u32 4294901760, %v451_v52  ;;  %1759 = vmatpush3.bf16.msra.mxu0 %v1758_v50  ;;  %v459_v59 = vand.u32 4294901760, %v458_v54  ;;  %v1770_v62 = vpack.c.bf16 %v463_v42, %v456_v40 }
 0x15c   : > { %1760 = vmatprep.subr.bf16.mxu0 %v1957_v14 }
 0x15d   : > { %v465_v51 = vsub.f32 %v463_v42, %v464_v45  ;;  %v1761_v58 = vpack.c.bf16 %v452_v56, %v445_v55  ;;  %v1782_v0 = vpack.c.bf16 %v464_v45, %v457_v47 }
 0x15e   : > { %1649 = vmatmul.mubr.f32.vlgmr.msra.gmra.mrb[0].mxu0 %v434_v53 }
 0x15f   : > { %v466_v57 = vand.u32 4294901760, %v465_v51  ;;  %1762 = vmatpush3.bf16.msra.mxu0 %v1761_v58  ;;  %1659 = vmatprep.mubr.msk.f32.mxu0 %vm1959_vm4, %v1960_v17 }
 0x160   : > { %1763 = vmatprep.subr.bf16.mxu0 %v1957_v14 }
 0x161   : > { %v1764_v60 = vpack.c.bf16 %v466_v57, %v459_v59 }
 0x163   : > { %1765 = vmatpush3.bf16.msra.mxu0 %v1764_v60 }
 0x164   : > { %1766 = vmatprep.subr.bf16.mxu0 %v1957_v14 }
 0x166   : > { %1660 = vmatmul.mubr.f32.vlgmr.msra.gmra.mrb[0].mxu0 %v2109_v22 }
 0x167   : > { %1768 = vmatpush3.bf16.msra.mxu0 %v1767_v61  ;;  %1670 = vmatprep.mubr.msk.f32.mxu0 %vm1959_vm4, %v1960_v17 }
 0x168   : > { %1769 = vmatprep.subr.bf16.mxu0 %v1957_v14 }
 0x16b   : > { %1771 = vmatpush3.bf16.msra.mxu0 %v1770_v62 }
 0x16c   : > { %1772 = vmatprep.subr.bf16.mxu0 %v1957_v14 }
 0x16e   : > { %1671 = vmatmul.mubr.f32.vlgmr.msra.gmra.mrb[0].mxu0 %v431_v30 }
 0x16f   : > { %1774 = vmatpush3.bf16.msra.mxu0 %v1755_v43  ;;  %1681 = vmatprep.mubr.msk.f32.mxu0 %vm1959_vm4, %v1960_v17 }
 0x170   : > { %1775 = vmatprep.subr.bf16.mxu0 %v1957_v14 }
 0x173   : > { %1777 = vmatpush3.bf16.msra.mxu0 %v1758_v50 }
 0x174   : > { %1778 = vmatprep.subr.bf16.mxu0 %v1957_v14 }
 0x176   : > { %1682 = vmatmul.mubr.f32.vlgmr.msra.gmra.mrb[0].mxu0 %v432_v39 }
 0x177   : > { %1780 = vmatpush3.bf16.msra.mxu0 %v1779_v63  ;;  %1692 = vmatprep.mubr.msk.f32.mxu0 %vm1959_vm4, %v1960_v17 }
 0x178   : > { %1781 = vmatprep.subr.bf16.mxu0 %v1957_v14 }
 0x17b   : > { %1783 = vmatpush3.bf16.msra.mxu0 %v1782_v0 }
 0x17c   : > { %1784 = vmatprep.subr.bf16.mxu0 %v1957_v14 }
 0x17e   : > { %1693 = vmatmul.mubr.f32.vlgmr.msra.gmra.mrb[0].mxu0 %v2109_v22 }
 0x17f   : > { %1786 = vmatpush3.bf16.msra.mxu0 %v1755_v43  ;;  %1703 = vmatprep.mubr.msk.f32.mxu0 %vm1959_vm4, %v1960_v17  ;;  %v956_v17 = vand.u32 4294901760, %v858_v15 }
 0x180   : > { %1787 = vmatprep.subr.bf16.mxu0 %v1957_v14  ;;  %v946_v14 = vand.u32 4294901760, %v855_v11 }
 0x181   : > { %v957_v20 = vsub.f32 %v858_v15, %v956_v17 }
 0x182   : > { %v947_v18 = vsub.f32 %v855_v11, %v946_v14 }
 0x183   : > { %1789 = vmatpush3.bf16.msra.mxu0 %v1758_v50  ;;  %v958_v23 = vand.u32 4294901760, %v957_v20 }
 0x184   : > { %v948_v21 = vand.u32 4294901760, %v947_v18 }
 0x185   : > { %v959_v30 = vsub.f32 %v957_v20, %v958_v23 }
 0x186   : > { %1704 = vmatmul.mubr.f32.vlgmr.msra.gmra.mrb[0].mxu0 %v2109_v22  ;;  %v939_v22 = vsub.f32 %v937_v16, %v938_v19  ;;  %v949_v25 = vsub.f32 %v947_v18, %v948_v21 }
 0x187   : > { %v960_v33 = vand.u32 4294901760, %v959_v30 }
 0x188   : > { %v940_v29 = vand.u32 4294901760, %v939_v22  ;;  %v950_v31 = vand.u32 4294901760, %v949_v25 }
 0x259   : > { %v842_v24 = vpop.f32.mrb[0].mxu0 }
 0x25a   : > { %v846_v26 = vmax.f32 %v842_v24, 0.0  ;;  %v1705_v27 = vpop.f32.mrb[1].mxu0 }
 0x25c   : > { %v861_v28 = vand.u32 4294901760, %v846_v26 }
 0x25e   : > { %v968_v32 = vsub.f32 %v846_v26, %v861_v28  ;;  %1706 = vmatprep.subr.mxu1 %v861_v28 }
 0x25f   : > { %1707 = vmatpush3.msra.mxu1 %v861_v28 }
 0x260   : > { %1709 = vmatmul.mubr.f32.vlgmr.msra.gmra.mrb[0].mxu1 %v940_v29  ;;  %v969_v34 = vand.u32 4294901760, %v968_v32 }
 0x261   : > { %1711 = vmatprep.mubr.f32.mxu1 %v950_v31 }
 0x262   : > { %v970_v35 = vsub.f32 %v968_v32, %v969_v34 }
 0x264   : > { %1712 = vmatmul.mubr.f32.gmra.mrb[2].mxu1 %v960_v33  ;;  %v971_v36 = vand.u32 4294901760, %v970_v35 }
 0x265   : > { %1716 = vmatprep.mubr.f32.mxu1 %v2143_v3 }
 0x266   : > { %1714 = vmatprep.subr.mxu1 %v971_v36 }
 0x267   : > { %1715 = vmatpush3.msra.mxu1 %v971_v36 }
 0x268   : > { %1717 = vmatmul.mubr.f32.vlgmr.msra.gmra.mrb[0].mxu1 %v936_v13  ;;  %1722 = vmatprep.subr.mxu1 %v968_v32 }
 0x269   : > { %1723 = vmatpush3.msra.mxu1 %v968_v32  ;;  %1719 = vmatprep.mubr.f32.mxu1 %v946_v14 }
 0x26a   : > { %1730 = vmatprep.subr.mxu1 %v861_v28 }
 0x26c   : > { %1720 = vmatmul.mubr.f32.gmra.mrb[2].mxu1 %v956_v17 }
 0x26d   : > { %1724 = vmatprep.mubr.f32.mxu1 %v927_v4 }
 0x270   : > { %1725 = vmatmul.mubr.f32.vlgmr.msra.gmra.mrb[0].mxu1 %v937_v16 }
 0x271   : > { %1731 = vmatpush3.msra.mxu1 %v861_v28  ;;  %1727 = vmatprep.mubr.f32.mxu1 %v947_v18 }
 0x272   : > { %1738 = vmatprep.subr.mxu1 %v969_v34 }
 0x274   : > { %1728 = vmatmul.mubr.f32.gmra.mrb[2].mxu1 %v957_v20 }
 0x275   : > { %1732 = vmatprep.mubr.f32.mxu1 %v928_v5 }
 0x278   : > { %1733 = vmatmul.mubr.f32.vlgmr.msra.gmra.mrb[0].mxu1 %v938_v19 }
 0x279   : > { %1739 = vmatpush3.msra.mxu1 %v969_v34  ;;  %1735 = vmatprep.mubr.f32.mxu1 %v948_v21 }
 0x27a   : > { %1746 = vmatprep.subr.mxu1 %v861_v28 }
 0x27c   : > { %1736 = vmatmul.mubr.f32.gmra.mrb[2].mxu1 %v958_v23 }
 0x27d   : > { %1740 = vmatprep.mubr.f32.mxu1 %v2143_v3 }
 0x280   : > { %1741 = vmatmul.mubr.f32.vlgmr.msra.gmra.mrb[0].mxu1 %v936_v13 }
 0x281   : > { %1747 = vmatpush3.msra.mxu1 %v861_v28  ;;  %1743 = vmatprep.mubr.f32.mxu1 %v946_v14 }
 0x284   : > { %1744 = vmatmul.mubr.f32.gmra.mrb[2].mxu1 %v956_v17 }
 0x285   : > { %1748 = vmatprep.mubr.f32.mxu1 %v2143_v3 }
 0x288   : > { %1749 = vmatmul.mubr.f32.vlgmr.msra.gmra.mrb[0].mxu1 %v936_v13 }
 0x289   : > { %1751 = vmatprep.mubr.f32.mxu1 %v946_v14 }
 0x28c   : > { %1752 = vmatmul.mubr.f32.gmra.mrb[2].mxu1 %v956_v17 }
 0x35b   : > { %v1750_v37 = vpop.f32.mrb[0].mxu1 }
 0x35c   : > { %1441 = vrot.lane.b32.xlu1 %v1750_v37, %s1961_s9  ;;  %v1413_v38 = vpop.f32.mrb[1].mxu1 }
 0x35d   : > { %1439 = vrot.lane.b32.xlu0 %v1413_v38, %s1961_s9 }
 0x35f   : > { %v1753_v39 = vpop.f32.mrb[2].mxu1 }
 0x360   : > { %1445 = vrot.lane.b32.xlu1 %v1753_v39, %s1961_s9  ;;  %v1425_v40 = vpop.f32.mrb[3].mxu1 }
 0x361   : > { %1443 = vrot.lane.b32.xlu0 %v1425_v40, %s1961_s9 }
 0x3ce   : > { %v1442_v41 = vpop.permute.xlu1 %1441 }
 0x3cf   : > { %v1452_v42 = vadd.f32 %v1750_v37, %v1442_v41  ;;  %v1440_v43 = vpop.permute.xlu0 %1439 }
 0x3d0   : > { %v1451_v44 = vadd.f32 %v1440_v43, %v1413_v38 }
 0x3d1   : > { %v1574_v45 = vmul.f32 -1.442695, %v1452_v42 }
 0x3d2   : > { %v1573_v46 = vmul.f32 -1.442695, %v1451_v44  ;;  %v1446_v47 = vpop.permute.xlu1 %1445 }
 0x3d3   : > { %1883 = vpow2.f32 %v1574_v45  ;;  %v1454_v48 = vadd.f32 %v1753_v39, %v1446_v47  ;;  %v1444_v49 = vpop.permute.xlu0 %1443 }
 0x3d4   : > { %1885 = vpow2.f32 %v1573_v46  ;;  %v1453_v50 = vadd.f32 %v1444_v49, %v1425_v40 }
 0x3d5   : > { %v1576_v51 = vmul.f32 -1.442695, %v1454_v48 }
 0x3d6   : > { %v1575_v52 = vmul.f32 -1.442695, %v1453_v50 }
 0x3d7   : > { %1887 = vpow2.f32 %v1576_v51 }
 0x3d8   : > { %1889 = vpow2.f32 %v1575_v52 }
 0x3dd   : > { %v1884_v53 = vpop.eup %1883 }
 0x3de   : > { %v1886_v54 = vpop.eup %1885  ;;  %v1468_v55 = vadd.f32 1.0, %v1884_v53 }
 0x3df   : > { %v1467_v56 = vadd.f32 1.0, %v1886_v54 }
 0x3e0   : > { %1891 = vrcp.f32 %v1468_v55 }
 0x3e1   : > { %v1888_v57 = vpop.eup %1887  ;;  %1893 = vrcp.f32 %v1467_v56 }
 0x3e2   : > { %v1890_v58 = vpop.eup %1889  ;;  %v1470_v59 = vadd.f32 1.0, %v1888_v57 }
 0x3e3   : > { %v1469_v60 = vadd.f32 1.0, %v1890_v58 }
 0x3e4   : > { %1895 = vrcp.f32 %v1470_v59 }
 0x3e5   : > { %1897 = vrcp.f32 %v1469_v60 }
 0x3ea   : > { %v1892_v61 = vpop.eup %1891 }
 0x3eb   : > { %v1894_v62 = vpop.eup %1893  ;;  %1480 = vst.msk [vmem:[%s2050_s23 + $0x8] sm:$0xff] %vm279_vm3, %v1892_v61 }
 0x3ec   : > { %1479 = vst.msk [vmem:[%s2050_s23] sm:$0xff] %vm279_vm3, %v1894_v62 }
 0x3ee   : > { %v1896_v63 = vpop.eup %1895 }
 0x3ef   : > { %v1898_v0 = vpop.eup %1897  ;;  %1482 = vst.msk [vmem:[%s2050_s23 + $0x18] sm:$0xff] %vm279_vm3, %v1896_v63 }
 0x3f0   : > { %1481 = vst.msk [vmem:[%s2050_s23 + $0x10] sm:$0xff] %vm279_vm3, %v1898_v0 }
 0x3f1 PF: > { %s13_s18 = sadd.s32 1, %s1953_s18   ;;  %s2195_s12 = smov %s1933_s13 }
 0x3f2   : > { %p10_p13 = scmp.ge.s32.totalorder %s13_s18, 10   ;;  %s2196_s13 = smov %s2033_s25 }
 0x3f3   : > { %s2197_s14 = smov %s1945_s16  ;;  %s2198_s15 = smov %s1949_s17 }
 0x3f4   : > { %s2199_s16 = smov %s2202_s19  ;;  %s2200_s17 = smov %s2206_s20 }
 0x3f5   :  { %12 = sbr.rel (!%p10_p13) target bundleno = 4 (0x4), region = 98 }

// kernel: cbam_block2_forward.7
= control target key start
LH: loop header
LB: loop body
LE: loop exit
PB: predicated region body
PF: predicated region fallthrough
CT: control target
= control target key end

     0   :  { %s1391_s18 = smov 0   ;;  %s1393_s19 = smov 0   ;;  %s1608_s0 = inlined_call_operand.vmem [shape: f32[2,32,1024], index: 0, kind: input, shape index: {}]   ;;  %s1609_s1 = inlined_call_operand.vmem [shape: f32[2,32,1], index: 1, kind: input, shape index: {}]   ;;  %s1610_s2 = inlined_call_operand.vmem [shape: f32[2,1,1024], index: 2, kind: input, shape index: {}]   ;;  %s1611_s3 = inlined_call_operand.vmem [shape: f32[16,32], index: 3, kind: input, shape index: {}]   ;;  %s1612_s4 = inlined_call_operand.vmem [shape: f32[16,1], index: 4, kind: input, shape index: {}]   ;;  %s1613_s5 = inlined_call_operand.vmem [shape: f32[2,16,1024], index: 5, kind: output, shape index: {}]  }
   0x1   :  { %s1395_s20 = smov 0   ;;  %s1397_s21 = smov 0  }
   0x2   :  { %s1399_s22 = smov 0   ;;  %s1401_s23 = smov 0  }
   0x3   :  { %s1403_s24 = smov 0  }
   0x4 LB: > { %s24_s25 = sadd.s32 1, %s1349_s22  ;;  %s27_s26 = sadd.s32 1, %s1353_s23  ;;  %s1357_s24 = sphi %s1403_s24, %s15_s24   ;;  %s1353_s23 = sphi %s1401_s23, %s1620_s23   ;;  %s1349_s22 = sphi %s1399_s22, %s1619_s22   ;;  %s1345_s21 = sphi %s1397_s21, %s1618_s21   ;;  %s1341_s20 = sphi %s1395_s20, %s1617_s20   ;;  %s1337_s19 = sphi %s1393_s19, %s1616_s19   ;;  %s1333_s18 = sphi %s1391_s18, %s1615_s18  }
   0x5   : > { %p25_p0 = scmp.ge.s32.totalorder %s24_s25, 4  ;;  %s1149_s27 = sadd.s32 4294967295, %s1357_s24  }
   0x6   : > { %p43_p1 = scmp.ne.s32.totalorder %s1337_s19, %s1333_s18  ;;  %p44_p2 = scmp.eq.s32.totalorder %s1357_s24, 0 }
   0x7   : > { %s1622_s25 = smov (%p25_p0, %s24_s25), 0  ;;  %s1624_s26 = smov (!%p25_p0, %s27_s26), %s1353_s23 }
   0x8   : > { %p29_p3 = scmp.ge.s32.totalorder %s1624_s26, 2  ;;  %p171_p4 = scmp.eq.s32.totalorder %s1149_s27, 7 }
   0x9   : > { %s32_s28 = ssub.s32 %s1349_s22, %s1622_s25  ;;  %p45_p5 = por %p44_p2, %p43_p1 }
   0xa   : > { %s1626_s26 = smov (%p29_p3, %s1624_s26), 0  ;;  %p1439_p6 = por %p171_p4, %p43_p1 }
   0xb   : > { %s31_s30 = ssub.s32 %s1353_s23, %s1626_s26  ;;  %s36_s7 = sadd.s32 1, %s1337_s19 }
   0xc   : > { %s33_s6 = sor.u32 %s32_s28, %s31_s30  ;;  %p1152_p8 = scmp.ge.s32.totalorder %s1357_s24, 8 }
   0xd   : > { %p34_p7 = scmp.eq.s32.totalorder %s33_s6, 0 }
   0xe   : > { %199 = sbr.rel (%p1152_p8) target bundleno = 32 (0x20), region = 24 }
   0xf   : > { %s1447_s8 = scalar_select %p34_p7, %s1337_s19, %s36_s7  }
  0x15   : > { %202 = sbr.rel (!%p45_p5) target bundleno = 32 (0x20), region = 28  ;;  %s204_s9 = sand.u32 (%p45_p5), 1, %s1337_s19  }
  0x16   : > { %s1154_s10 = sshll.u32 (%p45_p5), %s1349_s22, 1  ;;  %s1153_s11 = sshll.u32 (%p45_p5), %s204_s9, 6 }
  0x17   : > { %s1155_s12 = sshll.u32 (%p45_p5), %s1353_s23, 5  ;;  %s206_s27 = scalar_lea.vmem (%p45_p5), [#allocation2], %s1153_s11 }
  0x18   : > { %s209_s13 = sadd.s32 (%p45_p5), %s1155_s12, %s1154_s10 }
  0x19   : > { %s1156_s14 = sshll.u32 (%p45_p5), %s209_s13, 3 }
  0x1a   : > { %s211_s17 = scalar_lea.vmem (%p45_p5), %s1608_s0, %s1156_s14 }
  0x1b   : > { %v224_v0 = vld [vmem:[%s211_s17] sm:$0xff] (%p45_p5)  ;;  %v226_v1 = vld [vmem:[%s211_s17 + $0x8] sm:$0xff] (%p45_p5) }
  0x1c   : > { %v228_v2 = vld [vmem:[%s211_s17 + $0x40] sm:$0xff]  ;;  %225 = vst [vmem:[%s206_s27] sm:$0xff] %v224_v0  ;;  %227 = vst [vmem:[%s206_s27 + $0x8] sm:$0xff] %v226_v1  ;;  %v230_v3 = vld [vmem:[%s211_s17 + $0x48] sm:$0xff] }
  0x1d   : > { %229 = vst [vmem:[%s206_s27 + $0x10] sm:$0xff] %v228_v2  ;;  %v232_v4 = vld [vmem:[%s211_s17 + $0x80] sm:$0xff]  ;;  %v234_v5 = vld [vmem:[%s211_s17 + $0x88] sm:$0xff]  ;;  %231 = vst [vmem:[%s206_s27 + $0x18] sm:$0xff] %v230_v3 }
  0x1e   : > { %233 = vst [vmem:[%s206_s27 + $0x20] sm:$0xff] %v232_v4  ;;  %235 = vst [vmem:[%s206_s27 + $0x28] sm:$0xff] %v234_v5  ;;  %v236_v6 = vld [vmem:[%s211_s17 + $0xc0] sm:$0xff]  ;;  %v238_v7 = vld [vmem:[%s211_s17 + $0xc8] sm:$0xff] }
  0x1f   : > { %237 = vst [vmem:[%s206_s27 + $0x30] sm:$0xff] %v236_v6  ;;  %239 = vst [vmem:[%s206_s27 + $0x38] sm:$0xff] %v238_v7 }
  0x20 PF: > { %p1157_p9 = scmp.ge.s32.totalorder %s1357_s24, 1  ;;  %p264_p10 = scmp.lt.s32.totalorder %s1357_s24, 9 }
  0x22   : > { %p265_p11 = pnand %p1157_p9, %p264_p10 }
  0x23   : > { %p311_p12 = scmp.lt.s32.totalorder (!%p265_p11), %s1345_s21, 1  ;;  %v1359_v8 = vmov (!%p265_p11), 0   ;;  %v397_v11 = vld [vmem:[%s1612_s4 + $0x8] sm:$0xff] (!%p265_p11)  ;;  %v396_v14 = vld [vmem:[%s1612_s4] sm:$0xff] (!%p265_p11)  ;;  %v1360_v17 = vmov (!%p265_p11), 0.0   ;;  %s1472_s14 = sshll.u32 (!%p265_p11), %s1341_s20, 1  ;;  %v360_v18 = vlaneseq (!%p265_p11) }
  0x24   : > { %268 = sbr.rel (%p265_p11) target bundleno = 445 (0x1bd), region = 59  ;;  %1302 = vset.pattern.permute.xlu1 (!%p265_p11), %v1359_v8  ;;  %1301 = vset.pattern.permute.xlu0 (!%p265_p11), %v1359_v8  ;;  %v399_v15 = vmul.f32 (!%p265_p11), 2.0, %v397_v11  ;;  %v398_v16 = vmul.f32 (!%p265_p11), 2.0, %v396_v14  ;;  %p319_p13 = scmp.lt.s32.totalorder (!%p265_p11), %s1472_s14, 7  ;;  %v394_v20 = vld [vmem:[%s1611_s3] sm:$0xff] (!%p265_p11)  ;;  %vm410_vm0 = vcmask (!%p265_p11), 261120  }
  0x25   : > { %489 = vmatprep.mubr.f32.mxu1 (!%p265_p11), %v1360_v17  ;;  %800 = vmatprep.mubr.f32.mxu0 (!%p265_p11), %v1360_v17  ;;  %v361_v19 = vshrl.u32 (!%p265_p11), %v360_v18, 7  ;;  %s271_s10 = sand.u32 (!%p265_p11), 1, %s1333_s18   ;;  %v412_v23 = vsel (!%p265_p11), %vm410_vm0, %v394_v20, 0  ;;  %v395_v26 = vld [vmem:[%s1611_s3 + $0x8] sm:$0xff] (!%p265_p11) }
  0x26   : > { %s1158_s20 = sshll.u32 (!%p265_p11), %s271_s10, 6  ;;  %v1485_v25 = vand.u32 (!%p265_p11), 4294901760, %v412_v23  ;;  %v415_v29 = vsel (!%p265_p11), %vm410_vm0, %v395_v26, 0  ;;  %s1159_s13 = sshll.u32 (!%p265_p11), %s271_s10, 5 }
  0x27   : > { %v362_v21 = vsub.s32 (!%p265_p11), 0, %v361_v19  ;;  %v366_v22 = vsub.s32 (!%p265_p11), 1, %v361_v19  ;;  %s273_s12 = scalar_lea.vmem (!%p265_p11), [#allocation2], %s1158_s20  ;;  %v1493_v41 = vand.u32 (!%p265_p11), 4294901760, %v415_v29 }
  0x28   : > { %v1491_v32 = vsub.f32 (!%p265_p11), %v412_v23, %v1485_v25  ;;  %v330_v33 = vld [vmem:[%s273_s12 + $0x20] sm:$0xff] (!%p265_p11)  ;;  %v331_v38 = vld [vmem:[%s273_s12 + $0x28] sm:$0xff] (!%p265_p11)  ;;  %v332_v53 = vld [vmem:[%s273_s12 + $0x30] sm:$0xff] (!%p265_p11) }
  0x29   : > { %v326_v39 = vld [vmem:[%s273_s12] sm:$0xff] (!%p265_p11)  ;;  %v327_v40 = vld [vmem:[%s273_s12 + $0x8] sm:$0xff] (!%p265_p11)  ;;  %v333_v58 = vld [vmem:[%s273_s12 + $0x38] sm:$0xff] (!%p265_p11)  ;;  %v1499_v0 = vsub.f32 (!%p265_p11), %v415_v29, %v1493_v41 }
  0x2a   : > { %v492_v48 = vand.u32 (!%p265_p11), 4294901760, %v1491_v32  ;;  %v328_v59 = vld [vmem:[%s273_s12 + $0x10] sm:$0xff] (!%p265_p11)  ;;  %v329_v60 = vld [vmem:[%s273_s12 + $0x18] sm:$0xff] (!%p265_p11) }
  0x2b   : > { %s312_s28 = scalar_select %p311_p12, %s1345_s21, 1  ;;  %v503_v23 = vand.u32 4294901760, %v1499_v0 }
  0x2c   : > { %s320_s15 = scalar_select %p319_p13, %s1472_s14, 7 }
  0x2d   : > { %s1170_s30 = sshll.u32 %s312_s28, 5  ;;  %s1163_s16 = sshll.u32 %s312_s28, 3 }
  0x2e   : > { %s315_s9 = scalar_lea.vmem %s1609_s1, %s1170_s30  ;;  %s322_s17 = sadd.s32 %s1163_s16, %s320_s15 }
  0x2f   : > { %v336_v9 = vld [vmem:[%s315_s9 + $0x10] sm:$0xff]  ;;  %v334_v10 = vld [vmem:[%s315_s9] sm:$0xff]  ;;  %v337_v12 = vld [vmem:[%s315_s9 + $0x18] sm:$0xff]  ;;  %s309_s15 = scalar_lea.vmem [#allocation3], %s1159_s13  ;;  %s1166_s18 = sshll.u32 (%p1439_p6), %s1345_s21, 4 }
  0x30   : > { %351 = vperm.xlu1 %1302, %v336_v9   ;;  %341 = vperm.xlu0 %1301, %v334_v10   ;;  %v335_v13 = vld [vmem:[%s315_s9 + $0x8] sm:$0xff]  ;;  %s323_s9 = scalar_lea.vmem %s1610_s2, %s322_s17  ;;  %s1022_s16 = sadd.s32 (%p1439_p6), %s1166_s18, %s1472_s14 }
  0x31   : > { %v338_v24 = vld [vmem:[%s323_s9] sm:$0x3]  ;;  %s1167_s17 = sshll.u32 (%p1439_p6), %s1022_s16, 3 }
  0x32   : > { %v363_v27 = vrot.slane %v338_v24, %v362_v21  ;;  %v367_v28 = vrot.slane %v338_v24, %v366_v22  ;;  %v493_v21 = vsub.f32 %v1491_v32, %v492_v48  ;;  %s1024_s6 = scalar_lea.vmem (%p1439_p6), %s1613_s5, %s1167_s17 }
  0x34   : > { %356 = vperm.xlu1 %1302, %v337_v12   ;;  %346 = vperm.xlu0 %1301, %v335_v13  }
  0x38   : > { %407 = vperm.xlu1 %1302, %v399_v15   ;;  %402 = vperm.xlu0 %1301, %v398_v16  }
  0xaf   : > { %v352_v30 = vpop.permute.xlu1 %351  ;;  %v342_v31 = vpop.permute.xlu0 %341 }
  0xb0   : > { %v374_v34 = vmul.f32 %v363_v27, %v352_v30  ;;  %v375_v35 = vmul.f32 %v367_v28, %v352_v30  ;;  %v370_v36 = vmul.f32 %v363_v27, %v342_v31  ;;  %v371_v37 = vmul.f32 %v367_v28, %v342_v31 }
  0xb2   : > { %v382_v42 = vadd.f32 1.0, %v374_v34  ;;  %v383_v43 = vadd.f32 1.0, %v375_v35  ;;  %v378_v44 = vadd.f32 1.0, %v370_v36  ;;  %v379_v45 = vadd.f32 1.0, %v371_v37 }
  0xb3   : > { %v357_v46 = vpop.permute.xlu1 %356  ;;  %v347_v47 = vpop.permute.xlu0 %346 }
  0xb4   : > { %v1496_v49 = vmul.f32 %v382_v42, %v330_v33  ;;  %v391_v50 = vmul.f32 %v383_v43, %v331_v38  ;;  %v386_v51 = vmul.f32 %v378_v44, %v326_v39  ;;  %v387_v52 = vmul.f32 %v379_v45, %v327_v40 }
  0xb5   : > { %v376_v54 = vmul.f32 %v363_v27, %v357_v46  ;;  %v377_v55 = vmul.f32 %v367_v28, %v357_v46  ;;  %v372_v56 = vmul.f32 %v363_v27, %v347_v47  ;;  %v373_v57 = vmul.f32 %v367_v28, %v347_v47 }
  0xb6   : > { %v417_v61 = vand.u32 4294901760, %v387_v52  ;;  %v419_v62 = vand.u32 4294901760, %v386_v51  ;;  %v425_v63 = vand.u32 4294901760, %v391_v50  ;;  %v427_v8 = vand.u32 4294901760, %v1496_v49 }
  0xb7   : > { %v384_v1 = vadd.f32 1.0, %v376_v54  ;;  %v385_v2 = vadd.f32 1.0, %v377_v55  ;;  %v380_v3 = vadd.f32 1.0, %v372_v56  ;;  %v381_v4 = vadd.f32 1.0, %v373_v57 }
  0xb8   : > { %v1501_v5 = vsub.f32 %v387_v52, %v417_v61  ;;  %v1503_v6 = vsub.f32 %v386_v51, %v419_v62  ;;  %v1505_v7 = vsub.f32 %v391_v50, %v425_v63  ;;  %v1511_v20 = vsub.f32 %v1496_v49, %v427_v8 }
  0xb9   : > { %v392_v9 = vmul.f32 %v384_v1, %v332_v53  ;;  %v393_v10 = vmul.f32 %v385_v2, %v333_v58  ;;  %v388_v11 = vmul.f32 %v380_v3, %v328_v59  ;;  %v389_v12 = vmul.f32 %v381_v4, %v329_v60 }
  0xba   : > { %v514_v13 = vand.u32 4294901760, %v1501_v5  ;;  %v520_v14 = vand.u32 4294901760, %v1503_v6  ;;  %v538_v22 = vand.u32 4294901760, %v1505_v7  ;;  %v504_v38 = vsub.f32 %v1499_v0, %v503_v23 }
  0xbb   : > { %v421_v15 = vand.u32 4294901760, %v389_v12  ;;  %v423_v16 = vand.u32 4294901760, %v388_v11  ;;  %v429_v18 = vand.u32 4294901760, %v393_v10  ;;  %v431_v19 = vand.u32 4294901760, %v392_v9 }
  0xbc   : > { %v515_v31 = vsub.f32 %v1501_v5, %v514_v13  ;;  %v521_v35 = vsub.f32 %v1503_v6, %v520_v14  ;;  %v544_v39 = vand.u32 4294901760, %v1511_v20  ;;  %v494_v42 = vand.u32 4294901760, %v493_v21 }
  0xbd   : > { %v1518_v24 = vpack.c.bf16 %v421_v15, %v417_v61  ;;  %v525_v26 = vsub.f32 %v389_v12, %v421_v15  ;;  %v1520_v27 = vpack.c.bf16 %v423_v16, %v419_v62  ;;  %v1522_v28 = vsub.f32 %v388_v11, %v423_v16  ;;  %v408_v15 = vpop.permute.xlu1 %407 }
  0xbe   : > { %v1524_v29 = vsub.f32 %v393_v10, %v429_v18  ;;  %v1526_v30 = vsub.f32 %v392_v9, %v431_v19  ;;  %v1531_v33 = vpack.c.bf16 %v429_v18, %v425_v63  ;;  %v539_v45 = vsub.f32 %v1505_v7, %v538_v22 }
  0xbf   : > { %1172 = vmatprep.subr.bf16.mxu1 %v1518_v24  ;;  %1196 = vmatprep.subr.bf16.mxu0 %v1518_v24  ;;  %v526_v34 = vand.u32 4294901760, %v525_v26  ;;  %v532_v36 = vand.u32 4294901760, %v1522_v28  ;;  %v1177_v46 = vpack.c.bf16 %v431_v19, %v427_v8  ;;  %v516_v47 = vand.u32 4294901760, %v515_v31 }
  0xc0   : > { %1174 = vmatpush1.bf16.msra.mxu1 %v1520_v27  ;;  %1198 = vmatpush1.bf16.msra.mxu0 %v1520_v27  ;;  %v550_v37 = vand.u32 4294901760, %v1524_v29  ;;  %v556_v40 = vand.u32 4294901760, %v1526_v30  ;;  %v522_v53 = vand.u32 4294901760, %v521_v35  ;;  %v545_v56 = vsub.f32 %v1511_v20, %v544_v39 }
  0xc1   : > { %1176 = vmatprep.subr.bf16.mxu1 %v1531_v33  ;;  %1200 = vmatprep.subr.bf16.mxu0 %v1531_v33  ;;  %v527_v43 = vsub.f32 %v525_v26, %v526_v34  ;;  %v533_v44 = vsub.f32 %v1522_v28, %v532_v36  ;;  %v1203_v51 = vpack.c.bf16 %v526_v34, %v514_v13  ;;  %v540_v59 = vand.u32 4294901760, %v539_v45 }
  0xc2   : > { %v551_v49 = vsub.f32 %v1524_v29, %v550_v37  ;;  %v557_v50 = vsub.f32 %v1526_v30, %v556_v40  ;;  %v1205_v61 = vpack.c.bf16 %v532_v36, %v520_v14  ;;  %v505_v63 = vand.u32 4294901760, %v504_v38 }
  0xc3   : > { %v528_v52 = vand.u32 4294901760, %v527_v43  ;;  %v534_v54 = vand.u32 4294901760, %v533_v44  ;;  %v1207_v1 = vpack.c.bf16 %v550_v37, %v538_v22  ;;  %v546_v2 = vand.u32 4294901760, %v545_v56 }
  0xc4   : > { %1178 = vmatpush1.bf16.msra.mxu1 %v1177_v46  ;;  %1202 = vmatpush1.bf16.msra.mxu0 %v1177_v46  ;;  %v552_v55 = vand.u32 4294901760, %v551_v49  ;;  %v558_v60 = vand.u32 4294901760, %v557_v50  ;;  %v1209_v4 = vpack.c.bf16 %v556_v40, %v544_v39  ;;  %v1187_v8 = vpack.c.bf16 %v525_v26, %v1501_v5 }
  0xc5   : > { %1204 = vmatprep.subr.bf16.mxu0 %v1203_v51  ;;  %v1179_v57 = vpack.c.bf16 %v528_v52, %v516_v47  ;;  %v1181_v58 = vpack.c.bf16 %v534_v54, %v522_v53  ;;  %v1191_v9 = vpack.c.bf16 %v1524_v29, %v1505_v7  ;;  %v1193_v5 = vpack.c.bf16 %v1526_v30, %v1511_v20 }
  0xc6   : > { %v1183_v62 = vpack.c.bf16 %v552_v55, %v540_v59  ;;  %v1185_v3 = vpack.c.bf16 %v558_v60, %v546_v2 }
  0xc7   : > { %495 = vmatmul.mubr.f32.vlgmr.msra.gmra.mrb[0].mxu1 %v494_v42  ;;  %1180 = vmatprep.subr.bf16.mxu1 %v1179_v57 }
  0xc8   : > { %804 = vmatmul.mubr.f32.vlgmr.msra.gmra.mrb[0].mxu0 %v492_v48  ;;  %1182 = vmatpush1.bf16.msra.mxu1 %v1181_v58  ;;  %v1189_v48 = vpack.c.bf16 %v1522_v28, %v1503_v6  ;;  %v403_v6 = vpop.permute.xlu0 %402 }
  0xc9   : > { %1206 = vmatpush1.bf16.msra.mxu0 %v1205_v61  ;;  %1184 = vmatprep.subr.bf16.mxu1 %v1183_v62 }
  0xca   : > { %1208 = vmatprep.subr.bf16.mxu0 %v1207_v1  ;;  %500 = vmatprep.mubr.f32.mxu1 %v1360_v17 }
  0xcb   : > { %809 = vmatprep.mubr.f32.mxu0 %v1360_v17  ;;  %506 = vmatmul.mubr.f32.gmra.mrb[2].mxu1 %v505_v63 }
  0xcc   : > { %813 = vmatmul.mubr.f32.gmra.mrb[2].mxu0 %v503_v23  ;;  %1186 = vmatpush1.bf16.msra.mxu1 %v1185_v3 }
  0xcd   : > { %1210 = vmatpush1.bf16.msra.mxu0 %v1209_v4  ;;  %1188 = vmatprep.subr.bf16.mxu1 %v1187_v8 }
  0xce   : > { %1212 = vmatprep.subr.bf16.mxu0 %v1518_v24  ;;  %616 = vmatprep.mubr.f32.mxu1 %v1360_v17 }
  0xcf   : > { %907 = vmatprep.mubr.f32.mxu0 %v1360_v17  ;;  %618 = vmatmul.mubr.f32.vlgmr.msra.gmra.mrb[0].mxu1 %v1485_v25 }
  0xd0   : > { %909 = vmatmul.mubr.f32.vlgmr.msra.gmra.mrb[0].mxu0 %v1485_v25  ;;  %1190 = vmatpush1.bf16.msra.mxu1 %v1189_v48 }
  0xd1   : > { %1214 = vmatpush1.bf16.msra.mxu0 %v1520_v27  ;;  %1192 = vmatprep.subr.bf16.mxu1 %v1191_v9 }
  0xd2   : > { %1216 = vmatprep.subr.bf16.mxu0 %v1531_v33  ;;  %623 = vmatprep.mubr.f32.mxu1 %v1360_v17 }
  0xd3   : > { %914 = vmatprep.mubr.f32.mxu0 %v1360_v17  ;;  %625 = vmatmul.mubr.f32.gmra.mrb[2].mxu1 %v1493_v41 }
  0xd4   : > { %916 = vmatmul.mubr.f32.gmra.mrb[2].mxu0 %v1493_v41  ;;  %1194 = vmatpush1.bf16.msra.mxu1 %v1193_v5 }
  0xd5   : > { %1218 = vmatpush1.bf16.msra.mxu0 %v1177_v46  ;;  %711 = vmatprep.mubr.f32.mxu1 %v1360_v17 }
  0xd6   : > { %994 = vmatprep.mubr.f32.mxu0 %v1360_v17 }
  0xd7   : > { %714 = vmatmul.mubr.f32.vlgmr.msra.gmra.mrb[0].mxu1 %v1491_v32 }
  0xd8   : > { %996 = vmatmul.mubr.f32.vlgmr.msra.gmra.mrb[0].mxu0 %v1485_v25  ;;  %719 = vmatprep.mubr.f32.mxu1 %v1360_v17 }
  0xd9   : > { %1001 = vmatprep.mubr.f32.mxu0 %v1360_v17 }
  0xdb   : > { %722 = vmatmul.mubr.f32.gmra.mrb[2].mxu1 %v1499_v0 }
  0xdc   : > { %1003 = vmatmul.mubr.f32.gmra.mrb[2].mxu0 %v1493_v41 }
 0x1aa   : > { %v715_v7 = vpop.f32.mrb[0].mxu1 }
 0x1ab   : > { %v1219_v10 = vadd.f32 %v715_v7, %v403_v6  ;;  %v997_v11 = vpop.f32.mrb[0].mxu0  ;;  %v717_v12 = vpop.f32.mrb[1].mxu1 }
 0x1ac   : > { %v1221_v13 = vadd.f32 %v717_v12, %v403_v6  ;;  %v999_v14 = vpop.f32.mrb[1].mxu0 }
 0x1ad   : > { %v1220_v32 = vadd.f32 %v1219_v10, %v997_v11 }
 0x1ae   : > { %v1222_v25 = vadd.f32 %v1221_v13, %v999_v14  ;;  %v723_v16 = vpop.f32.mrb[2].mxu1  ;;  %1019 = sbr.rel (!%p1439_p6) target bundleno = 445 (0x1bd), region = 67 }
 0x1af   : > { %1009 = vst [vmem:[%s309_s15] sm:$0xff] %v1220_v32  ;;  %v1223_v17 = vadd.f32 %v723_v16, %v408_v15  ;;  %v1004_v18 = vpop.f32.mrb[2].mxu0  ;;  %v725_v0 = vpop.f32.mrb[3].mxu1 }
 0x1b0   : > { %1010 = vst [vmem:[%s309_s15 + $0x8] sm:$0xff] %v1222_v25  ;;  %v1225_v41 = vadd.f32 %v725_v0, %v408_v15  ;;  %v1006_v19 = vpop.f32.mrb[3].mxu0 }
 0x1b1   : > { %v1224_v20 = vadd.f32 %v1223_v17, %v1004_v18 }
 0x1b2   : > { %v1226_v21 = vadd.f32 %v1225_v41, %v1006_v19 }
 0x1b3   : > { %1011 = vst [vmem:[%s309_s15 + $0x10] sm:$0xff] %v1224_v20 }
 0x1b4   : > { %1012 = vst [vmem:[%s309_s15 + $0x18] sm:$0xff] %v1226_v21 }
 0x1b6   : > { %v1037_v22 = vld [vmem:[%s309_s15] sm:$0xff] }
 0x1b7   : > { %v1039_v23 = vld [vmem:[%s309_s15 + $0x8] sm:$0xff]  ;;  %1038 = vst [vmem:[%s1024_s6] sm:$0xff] %v1037_v22 }
 0x1b8   : > { %1040 = vst [vmem:[%s1024_s6 + $0x8] sm:$0xff] %v1039_v23 }
 0x1ba   : > { %v1041_v24 = vld [vmem:[%s309_s15 + $0x10] sm:$0xff] }
 0x1bb   : > { %v1043_v26 = vld [vmem:[%s309_s15 + $0x18] sm:$0xff]  ;;  %1042 = vst [vmem:[%s1024_s6 + $0x40] sm:$0xff] %v1041_v24 }
 0x1bc   : > { %1044 = vst [vmem:[%s1024_s6 + $0x48] sm:$0xff] %v1043_v26 }
 0x1bd PF: > { %s15_s24 = sadd.s32 1, %s1357_s24   ;;  %s1615_s18 = smov %s1337_s19 }
 0x1be   : > { %p12_p0 = scmp.ge.s32.totalorder %s15_s24, 10   ;;  %s1616_s19 = smov %s1447_s8 }
 0x1bf   : > { %s1617_s20 = smov %s1349_s22  ;;  %s1618_s21 = smov %s1353_s23 }
 0x1c0   : > { %s1619_s22 = smov %s1622_s25  ;;  %s1620_s23 = smov %s1626_s26 }
 0x1c1   :  { %14 = sbr.rel (!%p12_p0) target bundleno = 4 (0x4), region = 127 }

// kernel: cbam_block2_forward.6
= control target key start
LH: loop header
LB: loop body
LE: loop exit
PB: predicated region body
PF: predicated region fallthrough
CT: control target
= control target key end

     0   :  { %s4497_s0 = inlined_call_operand.vmem [shape: f32[2,2,38,38], index: 0, kind: input, shape index: {}]   ;;  %s4498_s1 = inlined_call_operand.vmem [shape: f32[98], index: 1, kind: input, shape index: {}]   ;;  %s4499_s2 = inlined_call_operand.<no memory space> [shape: f32[1], index: 2, kind: input, shape index: {}]   ;;  %s4500_s3 = inlined_call_operand.vmem [shape: f32[2,1,32,32], index: 3, kind: output, shape index: {}]  }
   0x1   :  { %8 = sst [smem:[#allocation2]] %s4499_s2 }
   0x2   :  { %9 = vsyncpa [#allocation4], 0  ;;  %s2931_s14 = smov 0  }
   0x3 LB: > { %s2666_s15 = sadd.s32 4294967295, %s2899_s14   ;;  %p2668_p0 = scmp.ge.s32.totalorder %s2899_s14, 1  ;;  %s2899_s14 = sphi %s2931_s14, %s15_s14  }
   0x4   : > { %p114_p1 = scmp.lt.s32.totalorder %s2899_s14, 3  ;;  %s127_s18 = sshll.u32 %s4498_s1, 4  ;;  %s128_s18 = int_to_ptr.vmem [resolvable:$true] %s127_s18 }
   0x5   : > { %p2817_p3 = scmp.eq.s32.totalorder %s2666_s15, 0  ;;  %s2874_s19 = scalar_lea.vmem %s128_s18, 16 }
   0x6   : > { %p2942_p2 = pnand %p2668_p0, %p114_p1  ;;  %p2875_p6 = scmp.ne.s32.totalorder %s128_s18, %s2874_s19 }
   0x7   : > { %p2882_p10 = scmp.lt.s32.totalorder %s128_s18, %s128_s18  ;;  %p2883_p11 = scmp.lt.s32.totalorder %s2874_s19, %s2874_s19 }
   0x8   : > { %p2813_p4 = pneg %p2942_p2 }
   0x9   : > { %p2884_p12 = por %p2883_p11, %p2882_p10 }
   0xa   : > { %p2814_p5 = pnand %p2817_p3, %p2813_p4 }
   0xc   : > { %p2876_p7 = pneg %p2814_p5 }
   0xe   : > { %p2877_p8 = pnand %p2876_p7, %p2875_p6 }
  0x10   : > { %p2878_p9 = pneg %p2877_p8 }
  0x12   : > { %p2885_p13 = pnand %p2884_p12, %p2878_p9 }
  0x14   : > { %2888 = shalt.err (!%p2885_p13)
}
  0x15   : > { %s2901_s20 = smov [#allocation3]   ;;  %151 = sbr.rel (%p2942_p2) target bundleno = 853 (0x355), region = 32 }
  0x16   : > { %2816 = dma.vmem_to_smem (!%p2814_p5), %s128_s18, 16, %s2901_s20, [#allocation4]  }
  0x1c   : > { %2894 = dma.done.wait (%p2817_p3), [#allocation4], 16  }
  0x1d   : > { %2896 = vsyncadd (%p2817_p3), [#allocation4], 4294967280 }
  0x1e   : > { %157 = sfence }
  0x1f   : > { %p176_p0 = scmp.lt.s32.totalorder %s2666_s15, 1  ;;  %s2676_s21 = sld [smem:[#allocation3 + $0x1]]  ;;  %vm2594_vm0 = vcmask 261120  }
  0x20   : > { %s2677_s22 = sld [smem:[#allocation3 + $0x2]]  ;;  %s2902_s27 = smov 127  }
  0x21   : > { %s4703_s15 = smov (!%p176_p0, %s2666_s15), 1  ;;  %s2678_s28 = sld [smem:[#allocation3 + $0x3]] }
  0x22   : > { %s2808_s23 = smul.u32 80, %s4703_s15  ;;  %s2903_s29 = smov 126  }
  0x23   : > { %s2679_s30 = sld [smem:[#allocation3 + $0x4]]  ;;  %s2904_s4 = smov 125  }
  0x24   : > { %s2959_s26 = scalar_lea.vmem %s4497_s0, %s2808_s23  ;;  %s2680_s5 = sld [smem:[#allocation3 + $0x5]] }
  0x25   : > { %v204_v0 = vstv %s2676_s21  ;;  %v2962_v1 = vld [vmem:[%s2959_s26 + $0x10] sm:$0xff]  ;;  %v2965_v2 = vld [vmem:[%s2959_s26] sm:$0xff]  ;;  %v2968_v3 = vld [vmem:[%s2959_s26 + $0x18] sm:$0xff]  ;;  %s2905_s6 = smov 124   ;;  %s2681_s7 = sld [smem:[#allocation3 + $0x6]] }
  0x26   : > { %v207_v4 = vmul.f32 %v204_v0, %v2962_v1  ;;  %v205_v5 = vmul.f32 %v204_v0, %v2965_v2  ;;  %v2973_v6 = vld [vmem:[%s2959_s26 + $0x8] sm:$0xff]  ;;  %v208_v7 = vmul.f32 %v204_v0, %v2968_v3  ;;  %v230_v9 = vstv %s2677_s22  ;;  %s2906_s8 = smov 123   ;;  %s2683_s9 = sld [smem:[#allocation3 + $0x8]]  ;;  %v3030_v39 = vld [vmem:[%s2959_s26 + $0x19] sm:$0xff]  ;;  %v3033_v40 = vld [vmem:[%s2959_s26 + $0x11] sm:$0xff] }
  0x27   : > { %v206_v8 = vmul.f32 %v204_v0, %v2973_v6  ;;  %v232_v10 = vmul.f32 %v230_v9, %v2973_v6  ;;  %v231_v11 = vmul.f32 %v230_v9, %v2965_v2  ;;  %v234_v12 = vmul.f32 %v230_v9, %v2968_v3  ;;  %s2907_s10 = smov 122   ;;  %v3020_v34 = vld [vmem:[%s2959_s26 + $0x9] sm:$0xff]  ;;  %v3023_v36 = vld [vmem:[%s2959_s26 + $0x1] sm:$0xff]  ;;  %s2684_s11 = sld [smem:[#allocation3 + $0x9]] }
  0x28   : > { %217 = vrot.lane.b32.xlu1 %v207_v4, %s2902_s27  ;;  %213 = vrot.lane.b32.xlu0 %v205_v5, %s2902_s27  ;;  %v233_v13 = vmul.f32 %v230_v9, %v2962_v1  ;;  %v256_v14 = vstv %s2678_s28  ;;  %s2685_s12 = sld [smem:[#allocation3 + $0xa]]  ;;  %s2686_s13 = sld [smem:[#allocation3 + $0xb]] }
  0x29   : > { %v258_v15 = vmul.f32 %v256_v14, %v2973_v6  ;;  %v257_v16 = vmul.f32 %v256_v14, %v2965_v2  ;;  %v260_v17 = vmul.f32 %v256_v14, %v2968_v3  ;;  %v259_v18 = vmul.f32 %v256_v14, %v2962_v1  ;;  %s2687_s16 = sld [smem:[#allocation3 + $0xc]]  ;;  %s2688_s17 = sld [smem:[#allocation3 + $0xd]]  ;;  %v3093_v14 = vld [vmem:[%s2959_s26 + $0x12] sm:$0xff] }
  0x2a   : > { %v282_v19 = vstv %s2679_s30  ;;  %v308_v24 = vstv %s2680_s5  ;;  %s2690_s18 = sld [smem:[#allocation3 + $0xf]]  ;;  %s2691_s2 = sld [smem:[#allocation3 + $0x10]] }
  0x2b   : > { %v284_v20 = vmul.f32 %v282_v19, %v2973_v6  ;;  %v283_v21 = vmul.f32 %v282_v19, %v2965_v2  ;;  %v286_v22 = vmul.f32 %v282_v19, %v2968_v3  ;;  %v285_v23 = vmul.f32 %v282_v19, %v2962_v1  ;;  %s2692_s19 = sld [smem:[#allocation3 + $0x11]]  ;;  %s2693_s20 = sld [smem:[#allocation3 + $0x12]] }
  0x2c   : > { %219 = vrot.lane.b32.xlu1 %v208_v7, %s2902_s27  ;;  %215 = vrot.lane.b32.xlu0 %v206_v8, %s2902_s27  ;;  %v310_v25 = vmul.f32 %v308_v24, %v2973_v6  ;;  %v309_v26 = vmul.f32 %v308_v24, %v2965_v2  ;;  %v312_v27 = vmul.f32 %v308_v24, %v2968_v3  ;;  %v334_v29 = vstv %s2681_s7  ;;  %v3080_v8 = vld [vmem:[%s2959_s26 + $0xa] sm:$0xff]  ;;  %s2694_s21 = sld [smem:[#allocation3 + $0x13]]  ;;  %s2695_s22 = sld [smem:[#allocation3 + $0x14]] }
  0x2d   : > { %v311_v28 = vmul.f32 %v308_v24, %v2962_v1  ;;  %v336_v30 = vmul.f32 %v334_v29, %v2973_v6  ;;  %v335_v31 = vmul.f32 %v334_v29, %v2965_v2  ;;  %v338_v32 = vmul.f32 %v334_v29, %v2968_v3  ;;  %s189_s23 = sld [smem:[#allocation3]]  ;;  %s2697_s24 = sld [smem:[#allocation3 + $0x16]] }
  0x2e   : > { %v337_v33 = vmul.f32 %v334_v29, %v2962_v1  ;;  %v374_v35 = vstv %s2683_s9  ;;  %v400_v43 = vstv %s2684_s11  ;;  %v426_v48 = vstv %s2685_s12  ;;  %s186_s25 = sld [smem:[#allocation2]]  ;;  %s2698_s28 = sld [smem:[#allocation3 + $0x17]] }
  0x2f   : > { %v376_v37 = vmul.f32 %v374_v35, %v3020_v34  ;;  %v375_v38 = vmul.f32 %v374_v35, %v3023_v36  ;;  %v378_v41 = vmul.f32 %v374_v35, %v3030_v39  ;;  %v377_v42 = vmul.f32 %v374_v35, %v3033_v40  ;;  %s2682_s30 = sld [smem:[#allocation3 + $0x7]]  ;;  %s2699_s5 = sld [smem:[#allocation3 + $0x18]] }
  0x30   : > { %241 = vrot.lane.b32.xlu1 %v232_v10, %s2903_s29  ;;  %239 = vrot.lane.b32.xlu0 %v231_v11, %s2903_s29  ;;  %v402_v44 = vmul.f32 %v400_v43, %v3020_v34  ;;  %v401_v45 = vmul.f32 %v400_v43, %v3023_v36  ;;  %v404_v46 = vmul.f32 %v400_v43, %v3030_v39  ;;  %v452_v53 = vstv %s2686_s13  ;;  %v3083_v10 = vld [vmem:[%s2959_s26 + $0x2] sm:$0xff]  ;;  %s2700_s7 = sld [smem:[#allocation3 + $0x19]]  ;;  %s2701_s9 = sld [smem:[#allocation3 + $0x1a]] }
  0x31   : > { %v403_v47 = vmul.f32 %v400_v43, %v3033_v40  ;;  %v428_v49 = vmul.f32 %v426_v48, %v3020_v34  ;;  %v427_v50 = vmul.f32 %v426_v48, %v3023_v36  ;;  %v430_v51 = vmul.f32 %v426_v48, %v3030_v39  ;;  %s2702_s11 = sld [smem:[#allocation3 + $0x1b]]  ;;  %s2704_s12 = sld [smem:[#allocation3 + $0x1d]] }
  0x32   : > { %v429_v52 = vmul.f32 %v426_v48, %v3033_v40  ;;  %v454_v54 = vmul.f32 %v452_v53, %v3020_v34  ;;  %v453_v55 = vmul.f32 %v452_v53, %v3023_v36  ;;  %v456_v56 = vmul.f32 %v452_v53, %v3030_v39  ;;  %s2705_s13 = sld [smem:[#allocation3 + $0x1e]] }
  0x33   : > { %v455_v57 = vmul.f32 %v452_v53, %v3033_v40  ;;  %v478_v58 = vstv %s2687_s16  ;;  %v504_v63 = vstv %s2688_s17  ;;  %v544_v9 = vstv %s2690_s18  ;;  %s2689_s16 = sld [smem:[#allocation3 + $0xe]]  ;;  %s2706_s17 = sld [smem:[#allocation3 + $0x1f]] }
  0x34   : > { %245 = vrot.lane.b32.xlu1 %v234_v12, %s2903_s29  ;;  %243 = vrot.lane.b32.xlu0 %v233_v13, %s2903_s29  ;;  %v480_v59 = vmul.f32 %v478_v58, %v3020_v34  ;;  %v479_v60 = vmul.f32 %v478_v58, %v3023_v36  ;;  %v482_v61 = vmul.f32 %v478_v58, %v3030_v39  ;;  %v3090_v13 = vld [vmem:[%s2959_s26 + $0x1a] sm:$0xff]  ;;  %s2707_s18 = sld [smem:[#allocation3 + $0x20]] }
  0x35   : > { %v481_v62 = vmul.f32 %v478_v58, %v3033_v40  ;;  %v506_v0 = vmul.f32 %v504_v63, %v3020_v34  ;;  %v505_v4 = vmul.f32 %v504_v63, %v3023_v36  ;;  %v508_v5 = vmul.f32 %v504_v63, %v3030_v39 }
  0x36   : > { %v507_v7 = vmul.f32 %v504_v63, %v3033_v40  ;;  %v546_v11 = vmul.f32 %v544_v9, %v3080_v8  ;;  %v545_v12 = vmul.f32 %v544_v9, %v3083_v10  ;;  %v3165_v63 = vld [vmem:[%s2959_s26 + $0x3] sm:$0xff] }
  0x38   : > { %267 = vrot.lane.b32.xlu1 %v258_v15, %s2904_s4  ;;  %265 = vrot.lane.b32.xlu0 %v257_v16, %s2904_s4  ;;  %v548_v15 = vmul.f32 %v544_v9, %v3090_v13  ;;  %v547_v16 = vmul.f32 %v544_v9, %v3093_v14 }
  0x3c   : > { %271 = vrot.lane.b32.xlu1 %v260_v17, %s2904_s4  ;;  %269 = vrot.lane.b32.xlu0 %v259_v18, %s2904_s4  ;;  %v570_v17 = vstv %s2691_s2  ;;  %s2708_s2 = sld [smem:[#allocation3 + $0x21]] }
  0x3d   : > { %v572_v18 = vmul.f32 %v570_v17, %v3080_v8  ;;  %v571_v19 = vmul.f32 %v570_v17, %v3083_v10 }
  0x40   : > { %293 = vrot.lane.b32.xlu1 %v284_v20, %s2905_s6  ;;  %291 = vrot.lane.b32.xlu0 %v283_v21, %s2905_s6  ;;  %v574_v20 = vmul.f32 %v570_v17, %v3090_v13  ;;  %v573_v21 = vmul.f32 %v570_v17, %v3093_v14 }
  0x44   : > { %297 = vrot.lane.b32.xlu1 %v286_v22, %s2905_s6  ;;  %295 = vrot.lane.b32.xlu0 %v285_v23, %s2905_s6  ;;  %v596_v22 = vstv %s2692_s19  ;;  %s2709_s19 = sld [smem:[#allocation3 + $0x22]] }
  0x45   : > { %v598_v23 = vmul.f32 %v596_v22, %v3080_v8  ;;  %v597_v24 = vmul.f32 %v596_v22, %v3083_v10 }
  0x48   : > { %319 = vrot.lane.b32.xlu1 %v310_v25, %s2906_s8  ;;  %317 = vrot.lane.b32.xlu0 %v309_v26, %s2906_s8  ;;  %v600_v25 = vmul.f32 %v596_v22, %v3090_v13  ;;  %v599_v26 = vmul.f32 %v596_v22, %v3093_v14 }
  0x4c   : > { %323 = vrot.lane.b32.xlu1 %v312_v27, %s2906_s8  ;;  %321 = vrot.lane.b32.xlu0 %v311_v28, %s2906_s8  ;;  %v622_v27 = vstv %s2693_s20  ;;  %s2711_s20 = sld [smem:[#allocation3 + $0x24]] }
  0x4d   : > { %v626_v35 = vmul.f32 %v622_v27, %v3090_v13 }
  0x50   : > { %345 = vrot.lane.b32.xlu1 %v336_v30, %s2907_s10  ;;  %343 = vrot.lane.b32.xlu0 %v335_v31, %s2907_s10  ;;  %v624_v30 = vmul.f32 %v622_v27, %v3080_v8  ;;  %v623_v31 = vmul.f32 %v622_v27, %v3083_v10 }
  0x54   : > { %349 = vrot.lane.b32.xlu1 %v338_v32, %s2907_s10  ;;  %347 = vrot.lane.b32.xlu0 %v337_v33, %s2907_s10 }
  0x58   : > { %385 = vrot.lane.b32.xlu1 %v376_v37, %s2902_s27  ;;  %383 = vrot.lane.b32.xlu0 %v375_v38, %s2902_s27  ;;  %v625_v37 = vmul.f32 %v622_v27, %v3093_v14  ;;  %v648_v38 = vstv %s2694_s21  ;;  %s2712_s21 = sld [smem:[#allocation3 + $0x25]] }
  0x59   : > { %v650_v43 = vmul.f32 %v648_v38, %v3080_v8  ;;  %v651_v48 = vmul.f32 %v648_v38, %v3093_v14 }
  0x5c   : > { %389 = vrot.lane.b32.xlu1 %v378_v41, %s2902_s27  ;;  %387 = vrot.lane.b32.xlu0 %v377_v42, %s2902_s27 }
  0x60   : > { %411 = vrot.lane.b32.xlu1 %v402_v44, %s2903_s29  ;;  %409 = vrot.lane.b32.xlu0 %v401_v45, %s2903_s29  ;;  %v649_v44 = vmul.f32 %v648_v38, %v3083_v10 }
  0x64   : > { %415 = vrot.lane.b32.xlu1 %v404_v46, %s2903_s29  ;;  %413 = vrot.lane.b32.xlu0 %v403_v47, %s2903_s29  ;;  %v652_v47 = vmul.f32 %v648_v38, %v3090_v13 }
  0x68   : > { %437 = vrot.lane.b32.xlu1 %v428_v49, %s2904_s4  ;;  %435 = vrot.lane.b32.xlu0 %v427_v50, %s2904_s4  ;;  %v674_v49 = vstv %s2695_s22  ;;  %s2713_s22 = sld [smem:[#allocation3 + $0x26]] }
  0x69   : > { %v675_v53 = vmul.f32 %v674_v49, %v3083_v10  ;;  %v677_v58 = vmul.f32 %v674_v49, %v3093_v14 }
  0x6c   : > { %441 = vrot.lane.b32.xlu1 %v430_v51, %s2904_s4  ;;  %439 = vrot.lane.b32.xlu0 %v429_v52, %s2904_s4  ;;  %v676_v52 = vmul.f32 %v674_v49, %v3080_v8 }
  0x70   : > { %463 = vrot.lane.b32.xlu1 %v454_v54, %s2905_s6  ;;  %461 = vrot.lane.b32.xlu0 %v453_v55, %s2905_s6  ;;  %v194_v54 = vstv %s189_s23  ;;  %s2714_s23 = sld [smem:[#allocation3 + $0x27]] }
  0x74   : > { %467 = vrot.lane.b32.xlu1 %v456_v56, %s2905_s6  ;;  %465 = vrot.lane.b32.xlu0 %v455_v57, %s2905_s6  ;;  %v678_v57 = vmul.f32 %v674_v49, %v3090_v13 }
  0x78   : > { %489 = vrot.lane.b32.xlu1 %v480_v59, %s2906_s8  ;;  %487 = vrot.lane.b32.xlu0 %v479_v60, %s2906_s8  ;;  %v195_v59 = vmul.f32 %v194_v54, %v2965_v2  ;;  %v196_v60 = vmul.f32 %v194_v54, %v2973_v6 }
  0x7c   : > { %493 = vrot.lane.b32.xlu1 %v482_v61, %s2906_s8  ;;  %491 = vrot.lane.b32.xlu0 %v481_v62, %s2906_s8  ;;  %v3162_v61 = vld [vmem:[%s2959_s26 + $0xb] sm:$0xff]  ;;  %v714_v62 = vstv %s2697_s24  ;;  %s2715_s24 = sld [smem:[#allocation3 + $0x28]] }
  0x7d   : > { %v716_v2 = vmul.f32 %v714_v62, %v3162_v61  ;;  %v715_v6 = vmul.f32 %v714_v62, %v3165_v63 }
  0x80   : > { %515 = vrot.lane.b32.xlu1 %v506_v0, %s2907_s10  ;;  %513 = vrot.lane.b32.xlu0 %v505_v4, %s2907_s10  ;;  %v187_v0 = vstv %s186_s25  ;;  %s2716_s25 = sld [smem:[#allocation3 + $0x29]] }
  0x81   : > { %v199_v9 = vadd.f32 %v195_v59, %v187_v0 }
  0x84   : > { %519 = vrot.lane.b32.xlu1 %v508_v5, %s2907_s10  ;;  %517 = vrot.lane.b32.xlu0 %v507_v7, %s2907_s10  ;;  %v197_v7 = vmul.f32 %v194_v54, %v2962_v1 }
  0x86   : > { %v201_v1 = vadd.f32 %v197_v7, %v187_v0 }
  0x88   : > { %555 = vrot.lane.b32.xlu1 %v546_v11, %s2902_s27  ;;  %553 = vrot.lane.b32.xlu0 %v545_v12, %s2902_s27  ;;  %v198_v11 = vmul.f32 %v194_v54, %v2968_v3  ;;  %v200_v12 = vadd.f32 %v196_v60, %v187_v0 }
  0x8a   : > { %v202_v3 = vadd.f32 %v198_v11, %v187_v0 }
  0x8c   : > { %559 = vrot.lane.b32.xlu1 %v548_v15, %s2902_s27  ;;  %557 = vrot.lane.b32.xlu0 %v547_v16, %s2902_s27  ;;  %v3174_v15 = vld [vmem:[%s2959_s26 + $0x1b] sm:$0xff]  ;;  %v3177_v16 = vld [vmem:[%s2959_s26 + $0x13] sm:$0xff] }
  0x90   : > { %581 = vrot.lane.b32.xlu1 %v572_v18, %s2903_s29  ;;  %579 = vrot.lane.b32.xlu0 %v571_v19, %s2903_s29  ;;  %v718_v19 = vmul.f32 %v714_v62, %v3174_v15 }
  0x94   : > { %585 = vrot.lane.b32.xlu1 %v574_v20, %s2903_s29  ;;  %583 = vrot.lane.b32.xlu0 %v573_v21, %s2903_s29  ;;  %v717_v20 = vmul.f32 %v714_v62, %v3177_v16 }
  0x98   : > { %607 = vrot.lane.b32.xlu1 %v598_v23, %s2904_s4  ;;  %605 = vrot.lane.b32.xlu0 %v597_v24, %s2904_s4  ;;  %v740_v23 = vstv %s2698_s28  ;;  %s2718_s28 = sld [smem:[#allocation3 + $0x2b]] }
  0x9a   : > { %v3115_v28 = vpop.permute.xlu1 %217  ;;  %v3117_v29 = vpop.permute.xlu0 %213 }
  0x9b   : > { %v225_v21 = vadd.f32 %v3117_v29, %v199_v9  ;;  %v227_v29 = vadd.f32 %v3115_v28, %v201_v1 }
  0x9c   : > { %611 = vrot.lane.b32.xlu1 %v600_v25, %s2904_s4  ;;  %609 = vrot.lane.b32.xlu0 %v599_v26, %s2904_s4 }
  0x9e   : > { %v3123_v32 = vpop.permute.xlu1 %219  ;;  %v3125_v33 = vpop.permute.xlu0 %215 }
  0x9f   : > { %v226_v22 = vadd.f32 %v3125_v33, %v200_v12  ;;  %v228_v33 = vadd.f32 %v3123_v32, %v202_v3 }
  0xa0   : > { %633 = vrot.lane.b32.xlu1 %v624_v30, %s2905_s6  ;;  %631 = vrot.lane.b32.xlu0 %v623_v31, %s2905_s6  ;;  %v742_v30 = vmul.f32 %v740_v23, %v3162_v61  ;;  %v741_v31 = vmul.f32 %v740_v23, %v3165_v63 }
  0xa2   : > { %v3131_v41 = vpop.permute.xlu1 %241  ;;  %v3133_v42 = vpop.permute.xlu0 %239 }
  0xa3   : > { %v252_v26 = vadd.f32 %v3131_v41, %v226_v22  ;;  %v251_v27 = vadd.f32 %v3133_v42, %v225_v21  ;;  %v744_v41 = vmul.f32 %v740_v23, %v3174_v15 }
  0xa4   : > { %637 = vrot.lane.b32.xlu1 %v626_v35, %s2905_s6  ;;  %635 = vrot.lane.b32.xlu0 %v625_v37, %s2905_s6  ;;  %v364_v35 = vstv %s2682_s30  ;;  %s2719_s30 = sld [smem:[#allocation3 + $0x2c]] }
  0xa5   : > { %v366_v28 = vmul.f32 %v364_v35, %v3020_v34  ;;  %v365_v32 = vmul.f32 %v364_v35, %v3023_v36  ;;  %v367_v36 = vmul.f32 %v364_v35, %v3033_v40 }
  0xa6   : > { %v3139_v45 = vpop.permute.xlu1 %245  ;;  %v3141_v46 = vpop.permute.xlu0 %243 }
  0xa7   : > { %v254_v42 = vadd.f32 %v3139_v45, %v228_v33 }
  0xa8   : > { %659 = vrot.lane.b32.xlu1 %v650_v43, %s2906_s8  ;;  %657 = vrot.lane.b32.xlu0 %v649_v44, %s2906_s8 }
  0xaa   : > { %v268_v50 = vpop.permute.xlu1 %267  ;;  %v266_v51 = vpop.permute.xlu0 %265 }
  0xab   : > { %v278_v37 = vadd.f32 %v268_v50, %v252_v26  ;;  %v277_v38 = vadd.f32 %v266_v51, %v251_v27  ;;  %v743_v50 = vmul.f32 %v740_v23, %v3177_v16  ;;  %v766_v51 = vstv %s2699_s5  ;;  %s2720_s5 = sld [smem:[#allocation3 + $0x2d]] }
  0xac   : > { %663 = vrot.lane.b32.xlu1 %v652_v47, %s2906_s8  ;;  %661 = vrot.lane.b32.xlu0 %v651_v48, %s2906_s8  ;;  %v253_v47 = vadd.f32 %v3141_v46, %v227_v29  ;;  %v770_v40 = vmul.f32 %v766_v51, %v3174_v15  ;;  %v769_v11 = vmul.f32 %v766_v51, %v3177_v16 }
  0xae   : > { %v3151_v55 = vpop.permute.xlu1 %271  ;;  %v3153_v56 = vpop.permute.xlu0 %269 }
  0xb0   : > { %685 = vrot.lane.b32.xlu1 %v676_v52, %s2907_s10  ;;  %683 = vrot.lane.b32.xlu0 %v675_v53, %s2907_s10  ;;  %v280_v52 = vadd.f32 %v3151_v55, %v254_v42  ;;  %v279_v53 = vadd.f32 %v3153_v56, %v253_v47  ;;  %v768_v55 = vmul.f32 %v766_v51, %v3162_v61 }
  0xb1   : > { %v767_v56 = vmul.f32 %v766_v51, %v3165_v63  ;;  %v3253_v51 = vld [vmem:[%s2959_s26 + $0x4] sm:$0xff] }
  0xb2   : > { %v294_v4 = vpop.permute.xlu1 %293  ;;  %v292_v5 = vpop.permute.xlu0 %291 }
  0xb3   : > { %v304_v48 = vadd.f32 %v294_v4, %v278_v37  ;;  %v303_v49 = vadd.f32 %v292_v5, %v277_v38  ;;  %v844_v38 = vstv %s2702_s11  ;;  %s2723_s11 = sld [smem:[#allocation3 + $0x30]] }
  0xb4   : > { %689 = vrot.lane.b32.xlu1 %v678_v57, %s2907_s10  ;;  %687 = vrot.lane.b32.xlu0 %v677_v58, %s2907_s10  ;;  %v368_v58 = vmul.f32 %v364_v35, %v3030_v39  ;;  %v845_v42 = vmul.f32 %v844_v38, %v3165_v63 }
  0xb6   : > { %v298_v17 = vpop.permute.xlu1 %297  ;;  %v296_v18 = vpop.permute.xlu0 %295 }
  0xb7   : > { %v306_v59 = vadd.f32 %v298_v17, %v280_v52  ;;  %v305_v60 = vadd.f32 %v296_v18, %v279_v53  ;;  %v792_v18 = vstv %s2700_s7  ;;  %s2721_s7 = sld [smem:[#allocation3 + $0x2e]] }
  0xb8   : > { %725 = vrot.lane.b32.xlu1 %v716_v2, %s2902_s27  ;;  %723 = vrot.lane.b32.xlu0 %v715_v6, %s2902_s27  ;;  %v793_v21 = vmul.f32 %v792_v18, %v3165_v63  ;;  %v796_v23 = vmul.f32 %v792_v18, %v3174_v15 }
  0xba   : > { %v320_v24 = vpop.permute.xlu1 %319  ;;  %v318_v25 = vpop.permute.xlu0 %317 }
  0xbb   : > { %v330_v45 = vadd.f32 %v320_v24, %v304_v48  ;;  %v329_v54 = vadd.f32 %v318_v25, %v303_v49  ;;  %v795_v24 = vmul.f32 %v792_v18, %v3177_v16  ;;  %v818_v25 = vstv %s2701_s9  ;;  %s2722_s9 = sld [smem:[#allocation3 + $0x2f]] }
  0xbc   : > { %729 = vrot.lane.b32.xlu1 %v718_v19, %s2902_s27  ;;  %727 = vrot.lane.b32.xlu0 %v717_v20, %s2902_s27  ;;  %v794_v20 = vmul.f32 %v792_v18, %v3162_v61  ;;  %v822_v33 = vmul.f32 %v818_v25, %v3174_v15  ;;  %v821_v37 = vmul.f32 %v818_v25, %v3177_v16 }
  0xbd   : > { %v848_v49 = vmul.f32 %v844_v38, %v3174_v15  ;;  %v3260_v15 = vld [vmem:[%s2959_s26 + $0x1c] sm:$0xff] }
  0xbe   : > { %v324_v43 = vpop.permute.xlu1 %323  ;;  %v322_v44 = vpop.permute.xlu0 %321 }
  0xbf   : > { %v332_v0 = vadd.f32 %v324_v43, %v306_v59  ;;  %v331_v4 = vadd.f32 %v322_v44, %v305_v60  ;;  %v910_v60 = vstv %s2705_s13  ;;  %s2730_s13 = sld [smem:[#allocation3 + $0x33]] }
  0xc0   : > { %751 = vrot.lane.b32.xlu1 %v742_v30, %s2903_s29  ;;  %749 = vrot.lane.b32.xlu0 %v741_v31, %s2903_s29  ;;  %v820_v30 = vmul.f32 %v818_v25, %v3162_v61  ;;  %v819_v31 = vmul.f32 %v818_v25, %v3165_v63 }
  0xc2   : > { %v346_v46 = vpop.permute.xlu1 %345  ;;  %v344_v57 = vpop.permute.xlu0 %343 }
  0xc3   : > { %v356_v62 = vadd.f32 %v346_v46, %v330_v45  ;;  %v355_v34 = vadd.f32 %v344_v57, %v329_v54 }
  0xc4   : > { %755 = vrot.lane.b32.xlu1 %v744_v41, %s2903_s29  ;;  %753 = vrot.lane.b32.xlu0 %v743_v50, %s2903_s29  ;;  %v846_v41 = vmul.f32 %v844_v38, %v3162_v61  ;;  %v884_v50 = vstv %s2704_s12  ;;  %s2729_s12 = sld [smem:[#allocation3 + $0x32]] }
  0xc5   : > { %v3209_v5 = vadd.f32 %v366_v28, %v356_v62  ;;  %v3211_v7 = vadd.f32 %v365_v32, %v355_v34  ;;  %v847_v28 = vmul.f32 %v844_v38, %v3177_v16  ;;  %v3250_v32 = vld [vmem:[%s2959_s26 + $0xc] sm:$0xff]  ;;  %v885_v53 = vmul.f32 %v884_v50, %v3253_v51  ;;  %v3263_v16 = vld [vmem:[%s2959_s26 + $0x14] sm:$0xff] }
  0xc6   : > { %v350_v39 = vpop.permute.xlu1 %349  ;;  %v348_v2 = vpop.permute.xlu0 %347  ;;  %v886_v52 = vmul.f32 %v884_v50, %v3250_v32  ;;  %v888_v46 = vmul.f32 %v884_v50, %v3260_v15  ;;  %v887_v57 = vmul.f32 %v884_v50, %v3263_v16  ;;  %v962_v50 = vstv %s2707_s18  ;;  %s2733_s18 = sld [smem:[#allocation3 + $0x36]] }
  0xc7   : > { %v358_v6 = vadd.f32 %v350_v39, %v332_v0  ;;  %v357_v9 = vadd.f32 %v348_v2, %v331_v4  ;;  %v911_v0 = vmul.f32 %v910_v60, %v3253_v51  ;;  %v534_v4 = vstv %s2689_s16  ;;  %s2731_s16 = sld [smem:[#allocation3 + $0x34]] }
  0xc8   : > { %777 = vrot.lane.b32.xlu1 %v768_v55, %s2904_s4  ;;  %775 = vrot.lane.b32.xlu0 %v767_v56, %s2904_s4  ;;  %v912_v56 = vmul.f32 %v910_v60, %v3250_v32 }
  0xc9   : > { %v3217_v12 = vadd.f32 %v368_v58, %v358_v6  ;;  %v3219_v17 = vadd.f32 %v367_v36, %v357_v9 }
  0xca   : > { %v386_v1 = vpop.permute.xlu1 %385  ;;  %v384_v19 = vpop.permute.xlu0 %383 }
  0xcb   : > { %v396_v58 = vadd.f32 %v386_v1, %v3209_v5  ;;  %v395_v59 = vadd.f32 %v384_v19, %v3211_v7 }
  0xcc   : > { %781 = vrot.lane.b32.xlu1 %v770_v40, %s2904_s4  ;;  %779 = vrot.lane.b32.xlu0 %v769_v11, %s2904_s4  ;;  %v914_v40 = vmul.f32 %v910_v60, %v3260_v15 }
  0xce   : > { %v3225_v3 = vpop.permute.xlu1 %389  ;;  %v3227_v22 = vpop.permute.xlu0 %387 }
  0xcf   : > { %v398_v39 = vadd.f32 %v3225_v3, %v3217_v12  ;;  %v397_v5 = vadd.f32 %v3227_v22, %v3219_v17  ;;  %v535_v12 = vmul.f32 %v534_v4, %v3083_v10  ;;  %v913_v17 = vmul.f32 %v910_v60, %v3263_v16 }
  0xd0   : > { %803 = vrot.lane.b32.xlu1 %v794_v20, %s2905_s6  ;;  %801 = vrot.lane.b32.xlu0 %v793_v21, %s2905_s6  ;;  %v536_v20 = vmul.f32 %v534_v4, %v3080_v8  ;;  %v936_v21 = vstv %s2706_s17  ;;  %v537_v8 = vmul.f32 %v534_v4, %v3093_v14  ;;  %s2732_s17 = sld [smem:[#allocation3 + $0x35]] }
  0xd1   : > { %v938_v10 = vmul.f32 %v936_v21, %v3250_v32  ;;  %v940_v14 = vmul.f32 %v936_v21, %v3260_v15 }
  0xd2   : > { %v412_v26 = vpop.permute.xlu1 %411  ;;  %v410_v27 = vpop.permute.xlu0 %409 }
  0xd3   : > { %v422_v36 = vadd.f32 %v412_v26, %v396_v58  ;;  %v421_v55 = vadd.f32 %v410_v27, %v395_v59  ;;  %v538_v27 = vmul.f32 %v534_v4, %v3090_v13  ;;  %v988_v58 = vstv %s2708_s2  ;;  %s2734_s2 = sld [smem:[#allocation3 + $0x37]] }
  0xd4   : > { %807 = vrot.lane.b32.xlu1 %v796_v23, %s2905_s6  ;;  %805 = vrot.lane.b32.xlu0 %v795_v24, %s2905_s6  ;;  %v1014_v4 = vstv %s2709_s19  ;;  %s2740_s19 = sld [smem:[#allocation3 + $0x39]] }
  0xd6   : > { %v416_v35 = vpop.permute.xlu1 %415  ;;  %v414_v29 = vpop.permute.xlu0 %413 }
  0xd7   : > { %v424_v11 = vadd.f32 %v416_v35, %v398_v39  ;;  %v423_v18 = vadd.f32 %v414_v29, %v397_v5 }
  0xd8   : > { %829 = vrot.lane.b32.xlu1 %v820_v30, %s2906_s8  ;;  %827 = vrot.lane.b32.xlu0 %v819_v31, %s2906_s8 }
  0xda   : > { %v438_v43 = vpop.permute.xlu1 %437  ;;  %v436_v44 = vpop.permute.xlu0 %435 }
  0xdb   : > { %v448_v7 = vadd.f32 %v438_v43, %v422_v36  ;;  %v447_v2 = vadd.f32 %v436_v44, %v421_v55 }
  0xdc   : > { %833 = vrot.lane.b32.xlu1 %v822_v33, %s2906_s8  ;;  %831 = vrot.lane.b32.xlu0 %v821_v37, %s2906_s8  ;;  %v937_v33 = vmul.f32 %v936_v21, %v3253_v51 }
  0xde   : > { %v442_v47 = vpop.permute.xlu1 %441  ;;  %v440_v48 = vpop.permute.xlu0 %439 }
  0xdf   : > { %v450_v3 = vadd.f32 %v442_v47, %v424_v11  ;;  %v449_v22 = vadd.f32 %v440_v48, %v423_v18  ;;  %v939_v48 = vmul.f32 %v936_v21, %v3263_v16  ;;  %v1017_v11 = vmul.f32 %v1014_v4, %v3263_v16  ;;  %v3352_v18 = vld [vmem:[%s2959_s26 + $0xd] sm:$0xff] }
  0xe0   : > { %855 = vrot.lane.b32.xlu1 %v846_v41, %s2907_s10  ;;  %853 = vrot.lane.b32.xlu0 %v845_v42, %s2907_s10 }
  0xe2   : > { %v464_v61 = vpop.permute.xlu1 %463  ;;  %v462_v63 = vpop.permute.xlu0 %461 }
  0xe3   : > { %v474_v1 = vadd.f32 %v464_v61, %v448_v7  ;;  %v473_v19 = vadd.f32 %v462_v63, %v447_v2  ;;  %v1016_v7 = vmul.f32 %v1014_v4, %v3250_v32  ;;  %v1015_v2 = vmul.f32 %v1014_v4, %v3253_v51 }
  0xe4   : > { %859 = vrot.lane.b32.xlu1 %v848_v49, %s2907_s10  ;;  %857 = vrot.lane.b32.xlu0 %v847_v28, %s2907_s10 }
  0xe6   : > { %v468_v45 = vpop.permute.xlu1 %467  ;;  %v466_v54 = vpop.permute.xlu0 %465 }
  0xe7   : > { %v476_v30 = vadd.f32 %v468_v45, %v450_v3  ;;  %v475_v31 = vadd.f32 %v466_v54, %v449_v22 }
  0xe8   : > { %895 = vrot.lane.b32.xlu1 %v886_v52, %s2902_s27  ;;  %893 = vrot.lane.b32.xlu0 %v885_v53, %s2902_s27  ;;  %v964_v52 = vmul.f32 %v962_v50, %v3250_v32  ;;  %v963_v53 = vmul.f32 %v962_v50, %v3253_v51 }
  0xea   : > { %v490_v62 = vpop.permute.xlu1 %489  ;;  %v488_v34 = vpop.permute.xlu0 %487 }
  0xeb   : > { %v500_v23 = vadd.f32 %v490_v62, %v474_v1  ;;  %v499_v24 = vadd.f32 %v488_v34, %v473_v19  ;;  %v990_v62 = vmul.f32 %v988_v58, %v3250_v32  ;;  %v989_v34 = vmul.f32 %v988_v58, %v3253_v51  ;;  %v3355_v32 = vld [vmem:[%s2959_s26 + $0x5] sm:$0xff] }
  0xec   : > { %899 = vrot.lane.b32.xlu1 %v888_v46, %s2902_s27  ;;  %897 = vrot.lane.b32.xlu0 %v887_v57, %s2902_s27  ;;  %v966_v46 = vmul.f32 %v962_v50, %v3260_v15  ;;  %v965_v57 = vmul.f32 %v962_v50, %v3263_v16  ;;  %v1054_v1 = vstv %s2711_s20  ;;  %s2741_s20 = sld [smem:[#allocation3 + $0x3a]] }
  0xee   : > { %v494_v6 = vpop.permute.xlu1 %493  ;;  %v492_v9 = vpop.permute.xlu0 %491 }
  0xef   : > { %v502_v37 = vadd.f32 %v494_v6, %v476_v30  ;;  %v501_v38 = vadd.f32 %v492_v9, %v475_v31 }
  0xf0   : > { %921 = vrot.lane.b32.xlu1 %v912_v56, %s2903_s29  ;;  %919 = vrot.lane.b32.xlu0 %v911_v0, %s2903_s29  ;;  %v992_v56 = vmul.f32 %v988_v58, %v3260_v15  ;;  %v991_v0 = vmul.f32 %v988_v58, %v3263_v16  ;;  %v3369_v16 = vld [vmem:[%s2959_s26 + $0x15] sm:$0xff] }
  0xf1   : > { %v1057_v22 = vmul.f32 %v1054_v1, %v3369_v16 }
  0xf2   : > { %v516_v25 = vpop.permute.xlu1 %515  ;;  %v514_v26 = vpop.permute.xlu0 %513 }
  0xf3   : > { %v526_v35 = vadd.f32 %v516_v25, %v500_v23  ;;  %v525_v29 = vadd.f32 %v514_v26, %v499_v24  ;;  %v1080_v23 = vstv %s2712_s21  ;;  %s2742_s21 = sld [smem:[#allocation3 + $0x3b]] }
  0xf4   : > { %925 = vrot.lane.b32.xlu1 %v914_v40, %s2903_s29  ;;  %923 = vrot.lane.b32.xlu0 %v913_v17, %s2903_s29  ;;  %v1018_v40 = vmul.f32 %v1014_v4, %v3260_v15  ;;  %v1055_v15 = vmul.f32 %v1054_v1, %v3355_v32  ;;  %v1082_v26 = vmul.f32 %v1080_v23, %v3352_v18 }
  0xf5   : > { %v3291_v43 = vadd.f32 %v536_v20, %v526_v35  ;;  %v3293_v44 = vadd.f32 %v535_v12, %v525_v29  ;;  %v1056_v20 = vmul.f32 %v1054_v1, %v3352_v18  ;;  %v3366_v12 = vld [vmem:[%s2959_s26 + $0x1d] sm:$0xff]  ;;  %v1083_v29 = vmul.f32 %v1080_v23, %v3369_v16 }
  0xf6   : > { %v520_v13 = vpop.permute.xlu1 %519  ;;  %v518_v41 = vpop.permute.xlu0 %517  ;;  %v1058_v3 = vmul.f32 %v1054_v1, %v3366_v12  ;;  %v1084_v35 = vmul.f32 %v1080_v23, %v3366_v12 }
  0xf7   : > { %v528_v42 = vadd.f32 %v520_v13, %v502_v37  ;;  %v527_v47 = vadd.f32 %v518_v41, %v501_v38 }
  0xf8   : > { %947 = vrot.lane.b32.xlu1 %v938_v10, %s2904_s4  ;;  %945 = vrot.lane.b32.xlu0 %v937_v33, %s2904_s4 }
  0xf9   : > { %v3299_v49 = vadd.f32 %v538_v27, %v528_v42  ;;  %v3301_v28 = vadd.f32 %v537_v8, %v527_v47  ;;  %v1081_v27 = vmul.f32 %v1080_v23, %v3355_v32  ;;  %v1106_v8 = vstv %s2713_s22  ;;  %s2743_s22 = sld [smem:[#allocation3 + $0x3c]] }
  0xfa   : > { %v3303_v61 = vpop.permute.xlu1 %555  ;;  %v3305_v63 = vpop.permute.xlu0 %553  ;;  %v1108_v37 = vmul.f32 %v1106_v8, %v3352_v18  ;;  %v1107_v38 = vmul.f32 %v1106_v8, %v3355_v32  ;;  %v1110_v42 = vmul.f32 %v1106_v8, %v3366_v12  ;;  %v1109_v47 = vmul.f32 %v1106_v8, %v3369_v16  ;;  %v3460_v8 = vld [vmem:[%s2959_s26 + $0xe] sm:$0xff] }
  0xfc   : > { %951 = vrot.lane.b32.xlu1 %v940_v14, %s2904_s4  ;;  %949 = vrot.lane.b32.xlu0 %v939_v48, %s2904_s4  ;;  %v1132_v14 = vstv %s2714_s23  ;;  %s2744_s23 = sld [smem:[#allocation3 + $0x3d]] }
  0xfd   : > { %v1136_v58 = vmul.f32 %v1132_v14, %v3366_v12 }
  0xfe   : > { %v3311_v45 = vpop.permute.xlu1 %559  ;;  %v3313_v54 = vpop.permute.xlu0 %557 }
 0x100   : > { %973 = vrot.lane.b32.xlu1 %v964_v52, %s2905_s6  ;;  %971 = vrot.lane.b32.xlu0 %v963_v53, %s2905_s6  ;;  %v1134_v52 = vmul.f32 %v1132_v14, %v3352_v18  ;;  %v1133_v53 = vmul.f32 %v1132_v14, %v3355_v32 }
 0x102   : > { %v3319_v59 = vpop.permute.xlu1 %581  ;;  %v3321_v60 = vpop.permute.xlu0 %579 }
 0x104   : > { %977 = vrot.lane.b32.xlu1 %v966_v46, %s2905_s6  ;;  %975 = vrot.lane.b32.xlu0 %v965_v57, %s2905_s6 }
 0x106   : > { %v3327_v36 = vpop.permute.xlu1 %585  ;;  %v3329_v55 = vpop.permute.xlu0 %583 }
 0x108   : > { %999 = vrot.lane.b32.xlu1 %v990_v62, %s2906_s8  ;;  %997 = vrot.lane.b32.xlu0 %v989_v34, %s2906_s8  ;;  %v1135_v62 = vmul.f32 %v1132_v14, %v3369_v16  ;;  %v1158_v34 = vstv %s2715_s24  ;;  %s2745_s24 = sld [smem:[#allocation3 + $0x3e]] }
 0x109   : > { %v1160_v4 = vmul.f32 %v1158_v34, %v3352_v18  ;;  %v1161_v1 = vmul.f32 %v1158_v34, %v3369_v16 }
 0x10a   : > { %v3335_v39 = vpop.permute.xlu1 %607  ;;  %v3337_v5 = vpop.permute.xlu0 %605 }
 0x10c   : > { %1003 = vrot.lane.b32.xlu1 %v992_v56, %s2906_s8  ;;  %1001 = vrot.lane.b32.xlu0 %v991_v0, %s2906_s8 }
 0x10e   : > { %v3343_v6 = vpop.permute.xlu1 %611  ;;  %v3345_v9 = vpop.permute.xlu0 %609 }
 0x110   : > { %1025 = vrot.lane.b32.xlu1 %v1016_v7, %s2907_s10  ;;  %1023 = vrot.lane.b32.xlu0 %v1015_v2, %s2907_s10  ;;  %v1159_v7 = vmul.f32 %v1158_v34, %v3355_v32 }
 0x112   : > { %v3357_v51 = vpop.permute.xlu1 %633  ;;  %v3359_v19 = vpop.permute.xlu0 %631 }
 0x114   : > { %1029 = vrot.lane.b32.xlu1 %v1018_v40, %s2907_s10  ;;  %1027 = vrot.lane.b32.xlu0 %v1017_v11, %s2907_s10  ;;  %v1162_v11 = vmul.f32 %v1158_v34, %v3366_v12 }
 0x116   : > { %v3371_v17 = vpop.permute.xlu1 %637  ;;  %v3373_v21 = vpop.permute.xlu0 %635 }
 0x118   : > { %1065 = vrot.lane.b32.xlu1 %v1056_v20, %s2902_s27  ;;  %1063 = vrot.lane.b32.xlu0 %v1055_v15, %s2902_s27  ;;  %v1184_v20 = vstv %s2716_s25  ;;  %s2751_s25 = sld [smem:[#allocation3 + $0x40]] }
 0x119   : > { %v1185_v23 = vmul.f32 %v1184_v20, %v3355_v32 }
 0x11a   : > { %v3379_v24 = vpop.permute.xlu1 %659  ;;  %v3381_v25 = vpop.permute.xlu0 %657 }
 0x11c   : > { %1069 = vrot.lane.b32.xlu1 %v1058_v3, %s2902_s27  ;;  %1067 = vrot.lane.b32.xlu0 %v1057_v22, %s2902_s27  ;;  %v1186_v22 = vmul.f32 %v1184_v20, %v3352_v18  ;;  %v3463_v18 = vld [vmem:[%s2959_s26 + $0x6] sm:$0xff] }
 0x11e   : > { %v3387_v30 = vpop.permute.xlu1 %663  ;;  %v3389_v31 = vpop.permute.xlu0 %661 }
 0x120   : > { %1091 = vrot.lane.b32.xlu1 %v1082_v26, %s2903_s29  ;;  %1089 = vrot.lane.b32.xlu0 %v1081_v27, %s2903_s29 }
 0x122   : > { %v3395_v10 = vpop.permute.xlu1 %685  ;;  %v3397_v33 = vpop.permute.xlu0 %683 }
 0x124   : > { %1095 = vrot.lane.b32.xlu1 %v1084_v35, %s2903_s29  ;;  %1093 = vrot.lane.b32.xlu0 %v1083_v29, %s2903_s29  ;;  %v1188_v35 = vmul.f32 %v1184_v20, %v3366_v12  ;;  %v1187_v29 = vmul.f32 %v1184_v20, %v3369_v16  ;;  %v3477_v16 = vld [vmem:[%s2959_s26 + $0x16] sm:$0xff] }
 0x126   : > { %v3403_v13 = vpop.permute.xlu1 %689  ;;  %v3405_v41 = vpop.permute.xlu0 %687 }
 0x128   : > { %1117 = vrot.lane.b32.xlu1 %v1108_v37, %s2904_s4  ;;  %1115 = vrot.lane.b32.xlu0 %v1107_v38, %s2904_s4  ;;  %v1224_v37 = vstv %s2718_s28  ;;  %s2752_s28 = sld [smem:[#allocation3 + $0x41]] }
 0x129   : > { %v1225_v12 = vmul.f32 %v1224_v37, %v3463_v18 }
 0x12a   : > { %v3411_v48 = vpop.permute.xlu1 %725  ;;  %v3413_v50 = vpop.permute.xlu0 %723 }
 0x12c   : > { %1121 = vrot.lane.b32.xlu1 %v1110_v42, %s2904_s4  ;;  %1119 = vrot.lane.b32.xlu0 %v1109_v47, %s2904_s4  ;;  %v1226_v42 = vmul.f32 %v1224_v37, %v3460_v8  ;;  %v3474_v47 = vld [vmem:[%s2959_s26 + $0x1e] sm:$0xff] }
 0x12e   : > { %v3419_v46 = vpop.permute.xlu1 %729  ;;  %v3421_v57 = vpop.permute.xlu0 %727 }
 0x130   : > { %1143 = vrot.lane.b32.xlu1 %v1134_v52, %s2905_s6  ;;  %1141 = vrot.lane.b32.xlu0 %v1133_v53, %s2905_s6  ;;  %v1228_v53 = vmul.f32 %v1224_v37, %v3474_v47 }
 0x132   : > { %v3427_v56 = vpop.permute.xlu1 %751  ;;  %v3429_v0 = vpop.permute.xlu0 %749 }
 0x134   : > { %1147 = vrot.lane.b32.xlu1 %v1136_v58, %s2905_s6  ;;  %1145 = vrot.lane.b32.xlu0 %v1135_v62, %s2905_s6  ;;  %v1227_v58 = vmul.f32 %v1224_v37, %v3477_v16  ;;  %v1250_v62 = vstv %s2719_s30  ;;  %s2753_s30 = sld [smem:[#allocation3 + $0x42]] }
 0x136   : > { %v3435_v2 = vpop.permute.xlu1 %755  ;;  %v3437_v40 = vpop.permute.xlu0 %753 }
 0x138   : > { %1169 = vrot.lane.b32.xlu1 %v1160_v4, %s2906_s8  ;;  %1167 = vrot.lane.b32.xlu0 %v1159_v7, %s2906_s8  ;;  %v1252_v7 = vmul.f32 %v1250_v62, %v3460_v8 }
 0x13a   : > { %v3443_v15 = vpop.permute.xlu1 %777  ;;  %v3445_v3 = vpop.permute.xlu0 %775 }
 0x13c   : > { %1173 = vrot.lane.b32.xlu1 %v1162_v11, %s2906_s8  ;;  %1171 = vrot.lane.b32.xlu0 %v1161_v1, %s2906_s8  ;;  %v1251_v11 = vmul.f32 %v1250_v62, %v3463_v18 }
 0x13e   : > { %v3451_v26 = vpop.permute.xlu1 %781  ;;  %v3453_v27 = vpop.permute.xlu0 %779 }
 0x140   : > { %1195 = vrot.lane.b32.xlu1 %v1186_v22, %s2907_s10  ;;  %1193 = vrot.lane.b32.xlu0 %v1185_v23, %s2907_s10  ;;  %v1254_v22 = vmul.f32 %v1250_v62, %v3474_v47  ;;  %v1253_v23 = vmul.f32 %v1250_v62, %v3477_v16 }
 0x142   : > { %v3465_v32 = vpop.permute.xlu1 %803  ;;  %v3467_v38 = vpop.permute.xlu0 %801 }
 0x144   : > { %1199 = vrot.lane.b32.xlu1 %v1188_v35, %s2907_s10  ;;  %1197 = vrot.lane.b32.xlu0 %v1187_v29, %s2907_s10  ;;  %v1276_v35 = vstv %s2720_s5  ;;  %s2754_s5 = sld [smem:[#allocation3 + $0x43]] }
 0x145   : > { %v1280_v62 = vmul.f32 %v1276_v35, %v3474_v47 }
 0x146   : > { %v3479_v14 = vpop.permute.xlu1 %807  ;;  %v3481_v52 = vpop.permute.xlu0 %805 }
 0x148   : > { %1235 = vrot.lane.b32.xlu1 %v1226_v42, %s2902_s27  ;;  %1233 = vrot.lane.b32.xlu0 %v1225_v12, %s2902_s27  ;;  %v1278_v42 = vmul.f32 %v1276_v35, %v3460_v8  ;;  %v1277_v12 = vmul.f32 %v1276_v35, %v3463_v18 }
 0x14a   : > { %v3487_v34 = vpop.permute.xlu1 %829  ;;  %v3489_v4 = vpop.permute.xlu0 %827 }
 0x14c   : > { %1239 = vrot.lane.b32.xlu1 %v1228_v53, %s2902_s27  ;;  %1237 = vrot.lane.b32.xlu0 %v1227_v58, %s2902_s27 }
 0x14e   : > { %v3495_v1 = vpop.permute.xlu1 %833  ;;  %v3497_v20 = vpop.permute.xlu0 %831 }
 0x150   : > { %1261 = vrot.lane.b32.xlu1 %v1252_v7, %s2903_s29  ;;  %1259 = vrot.lane.b32.xlu0 %v1251_v11, %s2903_s29  ;;  %v1279_v7 = vmul.f32 %v1276_v35, %v3477_v16  ;;  %v1302_v11 = vstv %s2721_s7  ;;  %s2755_s7 = sld [smem:[#allocation3 + $0x44]] }
 0x151   : > { %v1306_v35 = vmul.f32 %v1302_v11, %v3474_v47 }
 0x152   : > { %v3503_v29 = vpop.permute.xlu1 %855  ;;  %v3505_v37 = vpop.permute.xlu0 %853 }
 0x154   : > { %1265 = vrot.lane.b32.xlu1 %v1254_v22, %s2903_s29  ;;  %1263 = vrot.lane.b32.xlu0 %v1253_v23, %s2903_s29 }
 0x156   : > { %v3511_v53 = vpop.permute.xlu1 %859  ;;  %v3513_v58 = vpop.permute.xlu0 %857 }
 0x157   : > { %4508 = vst [vmem:[#allocation6_spill] sm:$0xff] %v3511_v53  ;;  %4509 = vst [vmem:[#allocation7_spill] sm:$0xff] %v3513_v58  ;;  %v1304_v58 = vmul.f32 %v1302_v11, %v3460_v8 }
 0x158   : > { %1287 = vrot.lane.b32.xlu1 %v1278_v42, %s2904_s4  ;;  %1285 = vrot.lane.b32.xlu0 %v1277_v12, %s2904_s4  ;;  %v1303_v42 = vmul.f32 %v1302_v11, %v3463_v18 }
 0x15a   : > { %v3519_v22 = vpop.permute.xlu1 %895  ;;  %v3521_v23 = vpop.permute.xlu0 %893 }
 0x15b   : > { %4510 = vst [vmem:[#allocation8_spill] sm:$0xff] %v3519_v22  ;;  %4511 = vst [vmem:[#allocation9_spill] sm:$0xff] %v3521_v23  ;;  %v1305_v23 = vmul.f32 %v1302_v11, %v3477_v16  ;;  %v1328_v22 = vstv %s2722_s9  ;;  %s2756_s9 = sld [smem:[#allocation3 + $0x45]] }
 0x15c   : > { %1291 = vrot.lane.b32.xlu1 %v1280_v62, %s2904_s4  ;;  %1289 = vrot.lane.b32.xlu0 %v1279_v7, %s2904_s4  ;;  %v1332_v11 = vmul.f32 %v1328_v22, %v3474_v47 }
 0x15e   : > { %v3527_v53 = vpop.permute.xlu1 %899  ;;  %v3529_v12 = vpop.permute.xlu0 %897 }
 0x15f   : > { %4512 = vst [vmem:[#allocation10_spill] sm:$0xff] %v3527_v53  ;;  %4513 = vst [vmem:[#allocation11_spill] sm:$0xff] %v3529_v12  ;;  %v1330_v12 = vmul.f32 %v1328_v22, %v3460_v8 }
 0x160   : > { %1313 = vrot.lane.b32.xlu1 %v1304_v58, %s2905_s6  ;;  %1311 = vrot.lane.b32.xlu0 %v1303_v42, %s2905_s6  ;;  %v1329_v58 = vmul.f32 %v1328_v22, %v3463_v18 }
 0x162   : > { %v3535_v62 = vpop.permute.xlu1 %921  ;;  %v3537_v7 = vpop.permute.xlu0 %919 }
 0x163   : > { %4514 = vst [vmem:[#allocation12_spill] sm:$0xff] %v3535_v62  ;;  %4515 = vst [vmem:[#allocation13_spill] sm:$0xff] %v3537_v7  ;;  %v1331_v7 = vmul.f32 %v1328_v22, %v3477_v16 }
 0x164   : > { %1317 = vrot.lane.b32.xlu1 %v1306_v35, %s2905_s6  ;;  %1315 = vrot.lane.b32.xlu0 %v1305_v23, %s2905_s6  ;;  %v1354_v35 = vstv %s2723_s11  ;;  %s2696_s11 = sld [smem:[#allocation3 + $0x15]] }
 0x165   : > { %v1358_v22 = vmul.f32 %v1354_v35, %v3474_v47 }
 0x166   : > { %v3543_v53 = vpop.permute.xlu1 %925  ;;  %v3545_v42 = vpop.permute.xlu0 %923 }
 0x167   : > { %4516 = vst [vmem:[#allocation14_spill] sm:$0xff] %v3543_v53  ;;  %4517 = vst [vmem:[#allocation15_spill] sm:$0xff] %v3545_v42 }
 0x168   : > { %1339 = vrot.lane.b32.xlu1 %v1330_v12, %s2906_s8  ;;  %1337 = vrot.lane.b32.xlu0 %v1329_v58, %s2906_s8  ;;  %v1356_v12 = vmul.f32 %v1354_v35, %v3460_v8  ;;  %v1355_v58 = vmul.f32 %v1354_v35, %v3463_v18  ;;  %v3571_v8 = vld [vmem:[%s2959_s26 + $0x28] sm:$0xff] }
 0x16a   : > { %v3551_v23 = vpop.permute.xlu1 %947  ;;  %v3553_v62 = vpop.permute.xlu0 %945 }
 0x16b   : > { %4518 = vst [vmem:[#allocation16_spill] sm:$0xff] %v3551_v23  ;;  %4519 = vst [vmem:[#allocation17_spill] sm:$0xff] %v3553_v62  ;;  %v3568_v62 = vld [vmem:[%s2959_s26 + $0x30] sm:$0xff] }
 0x16c   : > { %1343 = vrot.lane.b32.xlu1 %v1332_v11, %s2906_s8  ;;  %1341 = vrot.lane.b32.xlu0 %v1331_v7, %s2906_s8  ;;  %v1357_v11 = vmul.f32 %v1354_v35, %v3477_v16  ;;  %v1395_v7 = vstv %s2729_s12  ;;  %v3585_v16 = vld [vmem:[%s2959_s26 + $0x38] sm:$0xff]  ;;  %s2762_s12 = sld [smem:[#allocation3 + $0x47]] }
 0x16d   : > { %v1396_v47 = vmul.f32 %v3571_v8, %v1395_v7 }
 0x16e   : > { %v3559_v42 = vpop.permute.xlu1 %951  ;;  %v3561_v53 = vpop.permute.xlu0 %949 }
 0x16f   : > { %4520 = vst [vmem:[#allocation18_spill] sm:$0xff] %v3559_v42  ;;  %4521 = vst [vmem:[#allocation19_spill] sm:$0xff] %v3561_v53 }
 0x170   : > { %1365 = vrot.lane.b32.xlu1 %v1356_v12, %s2907_s10  ;;  %1363 = vrot.lane.b32.xlu0 %v1355_v58, %s2907_s10  ;;  %v1397_v12 = vmul.f32 %v3568_v62, %v1395_v7  ;;  %v3582_v58 = vld [vmem:[%s2959_s26 + $0x40] sm:$0xff] }
 0x172   : > { %v3573_v18 = vpop.permute.xlu1 %973  ;;  %v3575_v42 = vpop.permute.xlu0 %971 }
 0x173   : > { %4522 = vst [vmem:[#allocation20_spill] sm:$0xff] %v3573_v18  ;;  %4523 = vst [vmem:[#allocation21_spill] sm:$0xff] %v3575_v42  ;;  %v1421_v42 = vstv %s2730_s13  ;;  %s3915_s13 = sld [smem:[#allocation3 + $0x48]] }
 0x174   : > { %1369 = vrot.lane.b32.xlu1 %v1358_v22, %s2907_s10  ;;  %1367 = vrot.lane.b32.xlu0 %v1357_v11, %s2907_s10  ;;  %v1399_v22 = vmul.f32 %v3582_v58, %v1395_v7  ;;  %v1398_v11 = vmul.f32 %v3585_v16, %v1395_v7  ;;  %v1425_v7 = vmul.f32 %v3582_v58, %v1421_v42 }
 0x176   : > { %v3587_v35 = vpop.permute.xlu1 %977  ;;  %v3589_v53 = vpop.permute.xlu0 %975 }
 0x177   : > { %4524 = vst [vmem:[#allocation22_spill] sm:$0xff] %v3587_v35  ;;  %4525 = vst [vmem:[#allocation23_spill] sm:$0xff] %v3589_v53  ;;  %v1423_v53 = vmul.f32 %v3568_v62, %v1421_v42 }
 0x178   : > { %1406 = vrot.lane.b32.xlu1 %v1397_v12, %s2902_s27  ;;  %1404 = vrot.lane.b32.xlu0 %v1396_v47, %s2902_s27  ;;  %v1422_v12 = vmul.f32 %v3571_v8, %v1421_v42 }
 0x17a   : > { %v3595_v18 = vpop.permute.xlu1 %999  ;;  %v3597_v23 = vpop.permute.xlu0 %997 }
 0x17b   : > { %4526 = vst [vmem:[#allocation24_spill] sm:$0xff] %v3595_v18  ;;  %4527 = vst [vmem:[#allocation25_spill] sm:$0xff] %v3597_v23  ;;  %v1424_v23 = vmul.f32 %v3585_v16, %v1421_v42  ;;  %v1447_v18 = vstv %s2731_s16  ;;  %s2703_s16 = sld [smem:[#allocation3 + $0x1c]] }
 0x17c   : > { %1410 = vrot.lane.b32.xlu1 %v1399_v22, %s2902_s27  ;;  %1408 = vrot.lane.b32.xlu0 %v1398_v11, %s2902_s27  ;;  %v1451_v42 = vmul.f32 %v3582_v58, %v1447_v18 }
 0x17e   : > { %v3603_v35 = vpop.permute.xlu1 %1003  ;;  %v3605_v47 = vpop.permute.xlu0 %1001 }
 0x17f   : > { %4528 = vst [vmem:[#allocation26_spill] sm:$0xff] %v3603_v35  ;;  %4529 = vst [vmem:[#allocation27_spill] sm:$0xff] %v3605_v47  ;;  %v1449_v47 = vmul.f32 %v3568_v62, %v1447_v18 }
 0x180   : > { %1432 = vrot.lane.b32.xlu1 %v1423_v53, %s2903_s29  ;;  %1430 = vrot.lane.b32.xlu0 %v1422_v12, %s2903_s29  ;;  %v1448_v53 = vmul.f32 %v3571_v8, %v1447_v18 }
 0x182   : > { %v3611_v22 = vpop.permute.xlu1 %1025  ;;  %v3613_v11 = vpop.permute.xlu0 %1023 }
 0x183   : > { %4530 = vst [vmem:[#allocation28_spill] sm:$0xff] %v3611_v22  ;;  %4531 = vst [vmem:[#allocation29_spill] sm:$0xff] %v3613_v11  ;;  %v1450_v11 = vmul.f32 %v3585_v16, %v1447_v18  ;;  %v1473_v22 = vstv %s2732_s17  ;;  %s2764_s17 = sld [smem:[#allocation3 + $0x49]] }
 0x184   : > { %1436 = vrot.lane.b32.xlu1 %v1425_v7, %s2903_s29  ;;  %1434 = vrot.lane.b32.xlu0 %v1424_v23, %s2903_s29  ;;  %v1477_v18 = vmul.f32 %v3582_v58, %v1473_v22 }
 0x186   : > { %v3619_v35 = vpop.permute.xlu1 %1029  ;;  %v3621_v12 = vpop.permute.xlu0 %1027 }
 0x187   : > { %4532 = vst [vmem:[#allocation30_spill] sm:$0xff] %v3619_v35  ;;  %4533 = vst [vmem:[#allocation31_spill] sm:$0xff] %v3621_v12  ;;  %v1475_v12 = vmul.f32 %v3568_v62, %v1473_v22 }
 0x188   : > { %1458 = vrot.lane.b32.xlu1 %v1449_v47, %s2904_s4  ;;  %1456 = vrot.lane.b32.xlu0 %v1448_v53, %s2904_s4  ;;  %v1474_v47 = vmul.f32 %v3571_v8, %v1473_v22 }
 0x18a   : > { %v3627_v7 = vpop.permute.xlu1 %1065  ;;  %v3629_v23 = vpop.permute.xlu0 %1063 }
 0x18b   : > { %4534 = vst [vmem:[#allocation32_spill] sm:$0xff] %v3627_v7  ;;  %4535 = vst [vmem:[#allocation33_spill] sm:$0xff] %v3629_v23  ;;  %v1476_v23 = vmul.f32 %v3585_v16, %v1473_v22  ;;  %v1499_v7 = vstv %s2733_s18  ;;  %s3984_s18 = sld [smem:[#allocation3 + $0x4a]] }
 0x18c   : > { %1462 = vrot.lane.b32.xlu1 %v1451_v42, %s2904_s4  ;;  %1460 = vrot.lane.b32.xlu0 %v1450_v11, %s2904_s4  ;;  %v1503_v22 = vmul.f32 %v3582_v58, %v1499_v7 }
 0x18e   : > { %v3635_v35 = vpop.permute.xlu1 %1069  ;;  %v3637_v53 = vpop.permute.xlu0 %1067 }
 0x18f   : > { %4536 = vst [vmem:[#allocation34_spill] sm:$0xff] %v3635_v35  ;;  %4537 = vst [vmem:[#allocation35_spill] sm:$0xff] %v3637_v53  ;;  %v1501_v53 = vmul.f32 %v3568_v62, %v1499_v7 }
 0x190   : > { %1484 = vrot.lane.b32.xlu1 %v1475_v12, %s2905_s6  ;;  %1482 = vrot.lane.b32.xlu0 %v1474_v47, %s2905_s6  ;;  %v1500_v12 = vmul.f32 %v3571_v8, %v1499_v7 }
 0x192   : > { %v3643_v42 = vpop.permute.xlu1 %1091  ;;  %v3645_v11 = vpop.permute.xlu0 %1089 }
 0x193   : > { %4538 = vst [vmem:[#allocation36_spill] sm:$0xff] %v3643_v42  ;;  %4539 = vst [vmem:[#allocation37_spill] sm:$0xff] %v3645_v11  ;;  %v1502_v11 = vmul.f32 %v3585_v16, %v1499_v7 }
 0x194   : > { %1488 = vrot.lane.b32.xlu1 %v1477_v18, %s2905_s6  ;;  %1486 = vrot.lane.b32.xlu0 %v1476_v23, %s2905_s6  ;;  %v1525_v18 = vstv %s2734_s2  ;;  %s2710_s2 = sld [smem:[#allocation3 + $0x23]] }
 0x195   : > { %v1529_v7 = vmul.f32 %v3582_v58, %v1525_v18 }
 0x196   : > { %v3651_v35 = vpop.permute.xlu1 %1095  ;;  %v3653_v47 = vpop.permute.xlu0 %1093 }
 0x197   : > { %4540 = vst [vmem:[#allocation38_spill] sm:$0xff] %v3651_v35  ;;  %4541 = vst [vmem:[#allocation39_spill] sm:$0xff] %v3653_v47 }
 0x198   : > { %1510 = vrot.lane.b32.xlu1 %v1501_v53, %s2906_s8  ;;  %1508 = vrot.lane.b32.xlu0 %v1500_v12, %s2906_s8  ;;  %v1527_v53 = vmul.f32 %v3568_v62, %v1525_v18  ;;  %v1526_v12 = vmul.f32 %v3571_v8, %v1525_v18  ;;  %v3679_v62 = vld [vmem:[%s2959_s26 + $0x29] sm:$0xff] }
 0x19a   : > { %v3659_v23 = vpop.permute.xlu1 %1117  ;;  %v3661_v42 = vpop.permute.xlu0 %1115 }
 0x19b   : > { %4542 = vst [vmem:[#allocation40_spill] sm:$0xff] %v3659_v23  ;;  %4543 = vst [vmem:[#allocation41_spill] sm:$0xff] %v3661_v42  ;;  %v3676_v42 = vld [vmem:[%s2959_s26 + $0x31] sm:$0xff] }
 0x19c   : > { %1514 = vrot.lane.b32.xlu1 %v1503_v22, %s2906_s8  ;;  %1512 = vrot.lane.b32.xlu0 %v1502_v11, %s2906_s8  ;;  %v1528_v22 = vmul.f32 %v3585_v16, %v1525_v18  ;;  %v1565_v11 = vstv %s2740_s19  ;;  %v3693_v16 = vld [vmem:[%s2959_s26 + $0x39] sm:$0xff]  ;;  %s2766_s19 = sld [smem:[#allocation3 + $0x4b]] }
 0x19d   : > { %v1566_v58 = vmul.f32 %v3679_v62, %v1565_v11 }
 0x19e   : > { %v3667_v47 = vpop.permute.xlu1 %1121  ;;  %v3669_v35 = vpop.permute.xlu0 %1119 }
 0x19f   : > { %4544 = vst [vmem:[#allocation42_spill] sm:$0xff] %v3667_v47  ;;  %4545 = vst [vmem:[#allocation43_spill] sm:$0xff] %v3669_v35 }
 0x1a0   : > { %1536 = vrot.lane.b32.xlu1 %v1527_v53, %s2907_s10  ;;  %1534 = vrot.lane.b32.xlu0 %v1526_v12, %s2907_s10  ;;  %v1567_v53 = vmul.f32 %v3676_v42, %v1565_v11  ;;  %v3690_v12 = vld [vmem:[%s2959_s26 + $0x41] sm:$0xff] }
 0x1a2   : > { %v3681_v8 = vpop.permute.xlu1 %1143  ;;  %v3683_v47 = vpop.permute.xlu0 %1141 }
 0x1a3   : > { %4546 = vst [vmem:[#allocation44_spill] sm:$0xff] %v3681_v8  ;;  %4547 = vst [vmem:[#allocation45_spill] sm:$0xff] %v3683_v47  ;;  %v1591_v47 = vstv %s2741_s20  ;;  %s4047_s20 = sld [smem:[#allocation3 + $0x4c]] }
 0x1a4   : > { %1540 = vrot.lane.b32.xlu1 %v1529_v7, %s2907_s10  ;;  %1538 = vrot.lane.b32.xlu0 %v1528_v22, %s2907_s10  ;;  %v1569_v7 = vmul.f32 %v3690_v12, %v1565_v11  ;;  %v1568_v22 = vmul.f32 %v3693_v16, %v1565_v11  ;;  %v1595_v11 = vmul.f32 %v3690_v12, %v1591_v47 }
 0x1a6   : > { %v3695_v18 = vpop.permute.xlu1 %1147  ;;  %v3697_v35 = vpop.permute.xlu0 %1145 }
 0x1a7   : > { %4548 = vst [vmem:[#allocation46_spill] sm:$0xff] %v3695_v18  ;;  %4549 = vst [vmem:[#allocation47_spill] sm:$0xff] %v3697_v35  ;;  %v1593_v35 = vmul.f32 %v3676_v42, %v1591_v47 }
 0x1a8   : > { %1576 = vrot.lane.b32.xlu1 %v1567_v53, %s2902_s27  ;;  %1574 = vrot.lane.b32.xlu0 %v1566_v58, %s2902_s27  ;;  %v1592_v53 = vmul.f32 %v3679_v62, %v1591_v47 }
 0x1aa   : > { %v3703_v8 = vpop.permute.xlu1 %1169  ;;  %v3705_v23 = vpop.permute.xlu0 %1167 }
 0x1ab   : > { %4550 = vst [vmem:[#allocation48_spill] sm:$0xff] %v3703_v8  ;;  %4551 = vst [vmem:[#allocation49_spill] sm:$0xff] %v3705_v23  ;;  %v1594_v23 = vmul.f32 %v3693_v16, %v1591_v47  ;;  %v1617_v8 = vstv %s2742_s21  ;;  %s2717_s21 = sld [smem:[#allocation3 + $0x2a]] }
 0x1ac   : > { %1580 = vrot.lane.b32.xlu1 %v1569_v7, %s2902_s27  ;;  %1578 = vrot.lane.b32.xlu0 %v1568_v22, %s2902_s27  ;;  %v1621_v47 = vmul.f32 %v3690_v12, %v1617_v8 }
 0x1ae   : > { %v3711_v18 = vpop.permute.xlu1 %1173  ;;  %v3713_v58 = vpop.permute.xlu0 %1171 }
 0x1af   : > { %4552 = vst [vmem:[#allocation50_spill] sm:$0xff] %v3711_v18  ;;  %4553 = vst [vmem:[#allocation51_spill] sm:$0xff] %v3713_v58  ;;  %v1619_v58 = vmul.f32 %v3676_v42, %v1617_v8 }
 0x1b0   : > { %1602 = vrot.lane.b32.xlu1 %v1593_v35, %s2903_s29  ;;  %1600 = vrot.lane.b32.xlu0 %v1592_v53, %s2903_s29  ;;  %v1618_v35 = vmul.f32 %v3679_v62, %v1617_v8 }
 0x1b2   : > { %v3719_v7 = vpop.permute.xlu1 %1195  ;;  %v3721_v22 = vpop.permute.xlu0 %1193 }
 0x1b3   : > { %4554 = vst [vmem:[#allocation52_spill] sm:$0xff] %v3719_v7  ;;  %4555 = vst [vmem:[#allocation53_spill] sm:$0xff] %v3721_v22  ;;  %v1620_v22 = vmul.f32 %v3693_v16, %v1617_v8  ;;  %v1643_v7 = vstv %s2743_s22  ;;  %s4080_s22 = sld [smem:[#allocation3 + $0x4e]] }
 0x1b4   : > { %1606 = vrot.lane.b32.xlu1 %v1595_v11, %s2903_s29  ;;  %1604 = vrot.lane.b32.xlu0 %v1594_v23, %s2903_s29  ;;  %v1647_v8 = vmul.f32 %v3690_v12, %v1643_v7 }
 0x1b6   : > { %v3727_v18 = vpop.permute.xlu1 %1199  ;;  %v3729_v53 = vpop.permute.xlu0 %1197 }
 0x1b7   : > { %4556 = vst [vmem:[#allocation54_spill] sm:$0xff] %v3727_v18  ;;  %4557 = vst [vmem:[#allocation55_spill] sm:$0xff] %v3729_v53  ;;  %v1645_v53 = vmul.f32 %v3676_v42, %v1643_v7 }
 0x1b8   : > { %1628 = vrot.lane.b32.xlu1 %v1619_v58, %s2904_s4  ;;  %1626 = vrot.lane.b32.xlu0 %v1618_v35, %s2904_s4  ;;  %v1644_v58 = vmul.f32 %v3679_v62, %v1643_v7 }
 0x1ba   : > { %v3735_v11 = vpop.permute.xlu1 %1235  ;;  %v3737_v23 = vpop.permute.xlu0 %1233 }
 0x1bb   : > { %4558 = vst [vmem:[#allocation56_spill] sm:$0xff] %v3735_v11  ;;  %4559 = vst [vmem:[#allocation57_spill] sm:$0xff] %v3737_v23  ;;  %v1646_v23 = vmul.f32 %v3693_v16, %v1643_v7  ;;  %v1669_v11 = vstv %s2744_s23  ;;  %s4119_s23 = sld [smem:[#allocation3 + $0x4f]] }
 0x1bc   : > { %1632 = vrot.lane.b32.xlu1 %v1621_v47, %s2904_s4  ;;  %1630 = vrot.lane.b32.xlu0 %v1620_v22, %s2904_s4  ;;  %v1673_v7 = vmul.f32 %v3690_v12, %v1669_v11 }
 0x1be   : > { %v3743_v18 = vpop.permute.xlu1 %1239  ;;  %v3745_v35 = vpop.permute.xlu0 %1237 }
 0x1bf   : > { %4560 = vst [vmem:[#allocation58_spill] sm:$0xff] %v3743_v18  ;;  %4561 = vst [vmem:[#allocation59_spill] sm:$0xff] %v3745_v35  ;;  %v1671_v35 = vmul.f32 %v3676_v42, %v1669_v11 }
 0x1c0   : > { %1654 = vrot.lane.b32.xlu1 %v1645_v53, %s2905_s6  ;;  %1652 = vrot.lane.b32.xlu0 %v1644_v58, %s2905_s6  ;;  %v1670_v53 = vmul.f32 %v3679_v62, %v1669_v11 }
 0x1c2   : > { %v3751_v47 = vpop.permute.xlu1 %1261  ;;  %v3753_v22 = vpop.permute.xlu0 %1259 }
 0x1c3   : > { %4562 = vst [vmem:[#allocation60_spill] sm:$0xff] %v3751_v47  ;;  %4563 = vst [vmem:[#allocation61_spill] sm:$0xff] %v3753_v22  ;;  %v1672_v22 = vmul.f32 %v3693_v16, %v1669_v11 }
 0x1c4   : > { %1658 = vrot.lane.b32.xlu1 %v1647_v8, %s2905_s6  ;;  %1656 = vrot.lane.b32.xlu0 %v1646_v23, %s2905_s6  ;;  %v1695_v8 = vstv %s2745_s24  ;;  %s4145_s24 = sld [smem:[#allocation3 + $0x31]] }
 0x1c5   : > { %v1699_v11 = vmul.f32 %v3690_v12, %v1695_v8 }
 0x1c6   : > { %v3759_v18 = vpop.permute.xlu1 %1265  ;;  %v3761_v58 = vpop.permute.xlu0 %1263 }
 0x1c7   : > { %4564 = vst [vmem:[#allocation62_spill] sm:$0xff] %v3759_v18  ;;  %4565 = vst [vmem:[#allocation63_spill] sm:$0xff] %v3761_v58 }
 0x1c8   : > { %1680 = vrot.lane.b32.xlu1 %v1671_v35, %s2906_s8  ;;  %1678 = vrot.lane.b32.xlu0 %v1670_v53, %s2906_s8  ;;  %v1697_v35 = vmul.f32 %v3676_v42, %v1695_v8  ;;  %v1696_v53 = vmul.f32 %v3679_v62, %v1695_v8  ;;  %v3787_v42 = vld [vmem:[%s2959_s26 + $0x2a] sm:$0xff] }
 0x1ca   : > { %v3767_v23 = vpop.permute.xlu1 %1287  ;;  %v3769_v47 = vpop.permute.xlu0 %1285 }
 0x1cb   : > { %4566 = vst [vmem:[#allocation64_spill] sm:$0xff] %v3767_v23  ;;  %4567 = vst [vmem:[#allocation65_spill] sm:$0xff] %v3769_v47  ;;  %v3784_v47 = vld [vmem:[%s2959_s26 + $0x32] sm:$0xff] }
 0x1cc   : > { %1684 = vrot.lane.b32.xlu1 %v1673_v7, %s2906_s8  ;;  %1682 = vrot.lane.b32.xlu0 %v1672_v22, %s2906_s8  ;;  %v1698_v7 = vmul.f32 %v3693_v16, %v1695_v8  ;;  %v1735_v22 = vstv %s2751_s25  ;;  %v3801_v16 = vld [vmem:[%s2959_s26 + $0x3a] sm:$0xff]  ;;  %s2775_s25 = sld [smem:[#allocation3 + $0x50]] }
 0x1cd   : > { %v1736_v12 = vmul.f32 %v3787_v42, %v1735_v22  ;;  %4573 = vst [vmem:[#allocation71_spill] sm:$0xff] %v3801_v16 }
 0x1ce   : > { %v3775_v58 = vpop.permute.xlu1 %1291  ;;  %v3777_v18 = vpop.permute.xlu0 %1289 }
 0x1cf   : > { %4568 = vst [vmem:[#allocation66_spill] sm:$0xff] %v3775_v58  ;;  %4569 = vst [vmem:[#allocation67_spill] sm:$0xff] %v3777_v18 }
 0x1d0   : > { %1706 = vrot.lane.b32.xlu1 %v1697_v35, %s2907_s10  ;;  %1704 = vrot.lane.b32.xlu0 %v1696_v53, %s2907_s10  ;;  %v1737_v35 = vmul.f32 %v3784_v47, %v1735_v22  ;;  %v3798_v53 = vld [vmem:[%s2959_s26 + $0x42] sm:$0xff] }
 0x1d1   : > { %4572 = vst [vmem:[#allocation70_spill] sm:$0xff] %v3798_v53 }
 0x1d2   : > { %v3789_v62 = vpop.permute.xlu1 %1313  ;;  %v3791_v58 = vpop.permute.xlu0 %1311 }
 0x1d3   : > { %4570 = vst [vmem:[#allocation68_spill] sm:$0xff] %v3789_v62  ;;  %4571 = vst [vmem:[#allocation69_spill] sm:$0xff] %v3791_v58  ;;  %v1761_v58 = vstv %s2752_s28  ;;  %s4191_s28 = sld [smem:[#allocation3 + $0x51]] }
 0x1d4   : > { %1710 = vrot.lane.b32.xlu1 %v1699_v11, %s2907_s10  ;;  %1708 = vrot.lane.b32.xlu0 %v1698_v7, %s2907_s10  ;;  %v1739_v11 = vmul.f32 %v3798_v53, %v1735_v22  ;;  %v1738_v7 = vmul.f32 %v3801_v16, %v1735_v22  ;;  %v1765_v22 = vmul.f32 %v3798_v53, %v1761_v58 }
 0x1d6   : > { %v3803_v8 = vpop.permute.xlu1 %1317  ;;  %v3805_v18 = vpop.permute.xlu0 %1315 }
 0x1d7   : > { %4574 = vst [vmem:[#allocation72_spill] sm:$0xff] %v3803_v8  ;;  %4575 = vst [vmem:[#allocation73_spill] sm:$0xff] %v3805_v18  ;;  %v1763_v18 = vmul.f32 %v3784_v47, %v1761_v58 }
 0x1d8   : > { %1746 = vrot.lane.b32.xlu1 %v1737_v35, %s2902_s27  ;;  %1744 = vrot.lane.b32.xlu0 %v1736_v12, %s2902_s27  ;;  %v1762_v35 = vmul.f32 %v3787_v42, %v1761_v58 }
 0x1da   : > { %v3811_v62 = vpop.permute.xlu1 %1339  ;;  %v3813_v23 = vpop.permute.xlu0 %1337 }
 0x1db   : > { %4576 = vst [vmem:[#allocation74_spill] sm:$0xff] %v3811_v62  ;;  %4577 = vst [vmem:[#allocation75_spill] sm:$0xff] %v3813_v23  ;;  %v1764_v23 = vmul.f32 %v3801_v16, %v1761_v58  ;;  %v1787_v62 = vstv %s2753_s30  ;;  %s4211_s30 = sld [smem:[#allocation3 + $0x38]] }
 0x1dc   : > { %1750 = vrot.lane.b32.xlu1 %v1739_v11, %s2902_s27  ;;  %1748 = vrot.lane.b32.xlu0 %v1738_v7, %s2902_s27  ;;  %v1791_v58 = vmul.f32 %v3798_v53, %v1787_v62 }
 0x1de   : > { %v3819_v8 = vpop.permute.xlu1 %1343  ;;  %v3821_v12 = vpop.permute.xlu0 %1341 }
 0x1df   : > { %4578 = vst [vmem:[#allocation76_spill] sm:$0xff] %v3819_v8  ;;  %4579 = vst [vmem:[#allocation77_spill] sm:$0xff] %v3821_v12  ;;  %v1789_v12 = vmul.f32 %v3784_v47, %v1787_v62 }
 0x1e0   : > { %1772 = vrot.lane.b32.xlu1 %v1763_v18, %s2903_s29  ;;  %1770 = vrot.lane.b32.xlu0 %v1762_v35, %s2903_s29  ;;  %v1788_v18 = vmul.f32 %v3787_v42, %v1787_v62 }
 0x1e2   : > { %v3827_v11 = vpop.permute.xlu1 %1365  ;;  %v3829_v7 = vpop.permute.xlu0 %1363 }
 0x1e3   : > { %4580 = vst [vmem:[#allocation78_spill] sm:$0xff] %v3827_v11  ;;  %4581 = vst [vmem:[#allocation79_spill] sm:$0xff] %v3829_v7  ;;  %v1790_v7 = vmul.f32 %v3801_v16, %v1787_v62  ;;  %v1813_v11 = vstv %s2754_s5  ;;  %s2777_s5 = sld [smem:[#allocation3 + $0x52]] }
 0x1e4   : > { %1776 = vrot.lane.b32.xlu1 %v1765_v22, %s2903_s29  ;;  %1774 = vrot.lane.b32.xlu0 %v1764_v23, %s2903_s29  ;;  %v1817_v62 = vmul.f32 %v3798_v53, %v1813_v11 }
 0x1e6   : > { %v3835_v8 = vpop.permute.xlu1 %1369  ;;  %v3837_v35 = vpop.permute.xlu0 %1367 }
 0x1e7   : > { %4582 = vst [vmem:[#allocation80_spill] sm:$0xff] %v3835_v8  ;;  %4583 = vst [vmem:[#allocation81_spill] sm:$0xff] %v3837_v35  ;;  %v1815_v35 = vmul.f32 %v3784_v47, %v1813_v11 }
 0x1e8   : > { %1798 = vrot.lane.b32.xlu1 %v1789_v12, %s2904_s4  ;;  %1796 = vrot.lane.b32.xlu0 %v1788_v18, %s2904_s4  ;;  %v1814_v12 = vmul.f32 %v3787_v42, %v1813_v11 }
 0x1ea   : > { %v3843_v22 = vpop.permute.xlu1 %1406  ;;  %v3845_v23 = vpop.permute.xlu0 %1404 }
 0x1eb   : > { %4584 = vst [vmem:[#allocation82_spill] sm:$0xff] %v3843_v22  ;;  %4585 = vst [vmem:[#allocation83_spill] sm:$0xff] %v3845_v23  ;;  %v1816_v23 = vmul.f32 %v3801_v16, %v1813_v11  ;;  %v1839_v22 = vstv %s2755_s7  ;;  %s4257_s7 = sld [smem:[#allocation3 + $0x53]] }
 0x1ec   : > { %1802 = vrot.lane.b32.xlu1 %v1791_v58, %s2904_s4  ;;  %1800 = vrot.lane.b32.xlu0 %v1790_v7, %s2904_s4  ;;  %v1843_v11 = vmul.f32 %v3798_v53, %v1839_v22 }
 0x1ee   : > { %v3851_v8 = vpop.permute.xlu1 %1410  ;;  %v3853_v18 = vpop.permute.xlu0 %1408 }
 0x1ef   : > { %4586 = vst [vmem:[#allocation84_spill] sm:$0xff] %v3851_v8  ;;  %4587 = vst [vmem:[#allocation85_spill] sm:$0xff] %v3853_v18  ;;  %v1841_v18 = vmul.f32 %v3784_v47, %v1839_v22 }
 0x1f0   : > { %1824 = vrot.lane.b32.xlu1 %v1815_v35, %s2905_s6  ;;  %1822 = vrot.lane.b32.xlu0 %v1814_v12, %s2905_s6  ;;  %v1840_v35 = vmul.f32 %v3787_v42, %v1839_v22 }
 0x1f2   : > { %v3859_v58 = vpop.permute.xlu1 %1432  ;;  %v3861_v7 = vpop.permute.xlu0 %1430 }
 0x1f3   : > { %4588 = vst [vmem:[#allocation86_spill] sm:$0xff] %v3859_v58  ;;  %4589 = vst [vmem:[#allocation87_spill] sm:$0xff] %v3861_v7  ;;  %v1842_v7 = vmul.f32 %v3801_v16, %v1839_v22 }
 0x1f4   : > { %1828 = vrot.lane.b32.xlu1 %v1817_v62, %s2905_s6  ;;  %1826 = vrot.lane.b32.xlu0 %v1816_v23, %s2905_s6  ;;  %v1865_v62 = vstv %s2756_s9  ;;  %s4277_s9 = sld [smem:[#allocation3 + $0x3f]] }
 0x1f5   : > { %v1867_v22 = vmul.f32 %v3784_v47, %v1865_v62 }
 0x1f6   : > { %v3867_v8 = vpop.permute.xlu1 %1436  ;;  %v3869_v12 = vpop.permute.xlu0 %1434 }
 0x1f7   : > { %4590 = vst [vmem:[#allocation88_spill] sm:$0xff] %v3867_v8  ;;  %4591 = vst [vmem:[#allocation89_spill] sm:$0xff] %v3869_v12  ;;  %v566_v8 = vadd.f32 %v3303_v61, %v3291_v43  ;;  %v565_v12 = vadd.f32 %v3305_v63, %v3293_v44 }
 0x1f8   : > { %1850 = vrot.lane.b32.xlu1 %v1841_v18, %s2906_s8  ;;  %1848 = vrot.lane.b32.xlu0 %v1840_v35, %s2906_s8  ;;  %v568_v18 = vadd.f32 %v3311_v45, %v3299_v49  ;;  %v1866_v35 = vmul.f32 %v3787_v42, %v1865_v62 }
 0x1f9   : > { %v591_v43 = vadd.f32 %v3321_v60, %v565_v12  ;;  %v1868_v60 = vmul.f32 %v3801_v16, %v1865_v62  ;;  %v4659_v16 = vld [vmem:[#allocation65_spill] sm:$0xff] }
 0x1fa   : > { %v3875_v23 = vpop.permute.xlu1 %1458  ;;  %v3877_v58 = vpop.permute.xlu0 %1456  ;;  %v594_v44 = vadd.f32 %v3327_v36, %v568_v18 }
 0x1fb   : > { %4592 = vst [vmem:[#allocation90_spill] sm:$0xff] %v3875_v23  ;;  %4593 = vst [vmem:[#allocation91_spill] sm:$0xff] %v3877_v58  ;;  %v567_v58 = vadd.f32 %v3313_v54, %v3301_v28  ;;  %v592_v23 = vadd.f32 %v3319_v59, %v566_v8  ;;  %v704_v54 = vstv %s2696_s11  ;;  %v1869_v59 = vmul.f32 %v3798_v53, %v1865_v62  ;;  %v3910_v8 = vld [vmem:[%s2959_s26 + $0x33] sm:$0xff]  ;;  %v2850_v62 = vld [vmem:[%s2959_s26 + $0xb] sm:$0xff]  ;;  %s2784_s11 = sld [smem:[#allocation3 + $0x55]] }
 0x1fc   : > { %1854 = vrot.lane.b32.xlu1 %v1843_v11, %s2906_s8  ;;  %1852 = vrot.lane.b32.xlu0 %v1842_v7, %s2906_s8  ;;  %v617_v7 = vadd.f32 %v3337_v5, %v591_v43  ;;  %v620_v28 = vadd.f32 %v3343_v6, %v594_v44  ;;  %4594 = vst [vmem:[#allocation92_spill] sm:$0xff] %v3910_v8  ;;  %v1905_v5 = vstv %s2762_s12  ;;  %v3913_v6 = vld [vmem:[%s2959_s26 + $0x2b] sm:$0xff]  ;;  %s4329_s12 = sld [smem:[#allocation3 + $0x56]] }
 0x1fd   : > { %v593_v63 = vadd.f32 %v3329_v55, %v567_v58  ;;  %v618_v45 = vadd.f32 %v3335_v39, %v592_v23  ;;  %4595 = vst [vmem:[#allocation93_spill] sm:$0xff] %v3913_v6  ;;  %v706_v23 = vmul.f32 %v2850_v62, %v704_v54  ;;  %v3936_v44 = vld [vmem:[%s2959_s26 + $0x43] sm:$0xff] }
 0x1fe   : > { %v3894_v61 = vpop.permute.xlu1 %1462  ;;  %v3896_v49 = vpop.permute.xlu0 %1460  ;;  %v643_v39 = vadd.f32 %v3359_v19, %v617_v7  ;;  %v646_v58 = vadd.f32 %v3371_v17, %v620_v28  ;;  %v1907_v17 = vmul.f32 %v3910_v8, %v1905_v5  ;;  %4596 = vst [vmem:[#allocation94_spill] sm:$0xff] %v3936_v44 }
 0x1ff   : > { %v619_v36 = vadd.f32 %v3345_v9, %v593_v63  ;;  %v644_v55 = vadd.f32 %v3357_v51, %v618_v45  ;;  %v2852_v63 = vld [vmem:[%s2959_s26 + $0x1b] sm:$0xff] }
 0x200   : > { %1876 = vrot.lane.b32.xlu1 %v1867_v22, %s2907_s10  ;;  %1874 = vrot.lane.b32.xlu0 %v1866_v35, %s2907_s10  ;;  %v669_v19 = vadd.f32 %v3381_v25, %v643_v39  ;;  %v672_v18 = vadd.f32 %v3387_v30, %v646_v58  ;;  %v1906_v22 = vmul.f32 %v3913_v6, %v1905_v5  ;;  %v2851_v35 = vld [vmem:[%s2959_s26 + $0x3] sm:$0xff]  ;;  %v3939_v30 = vld [vmem:[%s2959_s26 + $0x3b] sm:$0xff] }
 0x201   : > { %v645_v9 = vadd.f32 %v3373_v21, %v619_v36  ;;  %v670_v51 = vadd.f32 %v3379_v24, %v644_v55  ;;  %v705_v43 = vmul.f32 %v2851_v35, %v704_v54  ;;  %4597 = vst [vmem:[#allocation95_spill] sm:$0xff] %v3939_v30  ;;  %v708_v45 = vmul.f32 %v2852_v63, %v704_v54 }
 0x202   : > { %v3918_v12 = vpop.permute.xlu1 %1484  ;;  %v3920_v11 = vpop.permute.xlu0 %1482  ;;  %v695_v25 = vadd.f32 %v3397_v33, %v669_v19  ;;  %v698_v7 = vadd.f32 %v3403_v13, %v672_v18  ;;  %v1909_v33 = vmul.f32 %v3936_v44, %v1905_v5  ;;  %v1908_v36 = vmul.f32 %v3939_v30, %v1905_v5 }
 0x203   : > { %v671_v21 = vadd.f32 %v3389_v31, %v645_v9  ;;  %v696_v24 = vadd.f32 %v3395_v10, %v670_v51  ;;  %v2853_v31 = vld [vmem:[%s2959_s26 + $0x13] sm:$0xff]  ;;  %v1931_v13 = vstv %s3915_s13  ;;  %s2757_s13 = sld [smem:[#allocation3 + $0x46]] }
 0x204   : > { %1880 = vrot.lane.b32.xlu1 %v1869_v59, %s2907_s10  ;;  %1878 = vrot.lane.b32.xlu0 %v1868_v60, %s2907_s10  ;;  %v707_v60 = vmul.f32 %v2853_v31, %v704_v54  ;;  %v709_v39 = vadd.f32 %v705_v43, %v695_v25  ;;  %v712_v58 = vadd.f32 %v708_v45, %v698_v7  ;;  %v874_v25 = vstv %s2703_s16  ;;  %s2786_s16 = sld [smem:[#allocation3 + $0x57]] }
 0x205   : > { %v697_v10 = vadd.f32 %v3405_v41, %v671_v21  ;;  %v710_v55 = vadd.f32 %v706_v23, %v696_v24  ;;  %v1933_v5 = vmul.f32 %v3910_v8, %v1931_v13  ;;  %v1932_v23 = vmul.f32 %v3913_v6, %v1931_v13 }
 0x206   : > { %v3943_v28 = vpop.permute.xlu1 %1488  ;;  %v3945_v59 = vpop.permute.xlu0 %1486  ;;  %v735_v19 = vadd.f32 %v3413_v50, %v709_v39  ;;  %v738_v62 = vadd.f32 %v3419_v46, %v712_v58 }
 0x207   : > { %v711_v54 = vadd.f32 %v707_v60, %v697_v10  ;;  %v736_v41 = vadd.f32 %v3411_v48, %v710_v55 }
 0x208   : > { %1916 = vrot.lane.b32.xlu1 %v1907_v17, %s2902_s27  ;;  %1914 = vrot.lane.b32.xlu0 %v1906_v22, %s2902_s27  ;;  %v761_v22 = vadd.f32 %v3429_v0, %v735_v19  ;;  %v764_v48 = vadd.f32 %v3435_v2, %v738_v62  ;;  %v4599_v19 = vld [vmem:[#allocation7_spill] sm:$0xff] }
 0x209   : > { %v737_v18 = vadd.f32 %v3421_v57, %v711_v54  ;;  %v762_v17 = vadd.f32 %v3427_v56, %v736_v41  ;;  %v1935_v57 = vmul.f32 %v3936_v44, %v1931_v13  ;;  %v1934_v56 = vmul.f32 %v3939_v30, %v1931_v13  ;;  %v2857_v54 = vld [vmem:[%s2959_s26 + $0x14] sm:$0xff] }
 0x20a   : > { %v3954_v9 = vpop.permute.xlu1 %1510  ;;  %v3956_v51 = vpop.permute.xlu0 %1508  ;;  %v787_v35 = vadd.f32 %v3445_v3, %v761_v22  ;;  %v790_v43 = vadd.f32 %v3451_v26, %v764_v48  ;;  %v877_v41 = vmul.f32 %v2857_v54, %v874_v25  ;;  %v4611_v54 = vld [vmem:[#allocation19_spill] sm:$0xff] }
 0x20b   : > { %v763_v46 = vadd.f32 %v3437_v40, %v737_v18  ;;  %v788_v24 = vadd.f32 %v3443_v15, %v762_v17  ;;  %v1957_v15 = vstv %s2764_s17  ;;  %s2787_s17 = sld [smem:[#allocation3 + $0x58]] }
 0x20c   : > { %1920 = vrot.lane.b32.xlu1 %v1909_v33, %s2902_s27  ;;  %1918 = vrot.lane.b32.xlu0 %v1908_v36, %s2902_s27  ;;  %v813_v40 = vadd.f32 %v3467_v38, %v787_v35  ;;  %v816_v3 = vadd.f32 %v3479_v14, %v790_v43  ;;  %v1959_v14 = vmul.f32 %v3910_v8, %v1957_v15  ;;  %v2856_v36 = vld [vmem:[%s2959_s26 + $0x1c] sm:$0xff] }
 0x20d   : > { %v789_v0 = vadd.f32 %v3453_v27, %v763_v46  ;;  %v814_v2 = vadd.f32 %v3465_v32, %v788_v24  ;;  %v2854_v32 = vld [vmem:[%s2959_s26 + $0xc] sm:$0xff]  ;;  %v1958_v60 = vmul.f32 %v3913_v6, %v1957_v15  ;;  %v878_v55 = vmul.f32 %v2856_v36, %v874_v25  ;;  %v4601_v35 = vld [vmem:[#allocation9_spill] sm:$0xff] }
 0x20e   : > { %v3969_v21 = vpop.permute.xlu1 %1514  ;;  %v3971_v50 = vpop.permute.xlu0 %1512  ;;  %v839_v27 = vadd.f32 %v3489_v4, %v813_v40  ;;  %v876_v31 = vmul.f32 %v2854_v32, %v874_v25  ;;  %v842_v38 = vadd.f32 %v3495_v1, %v816_v3  ;;  %v4598_v1 = vld [vmem:[#allocation6_spill] sm:$0xff]  ;;  %v4600_v46 = vld [vmem:[#allocation8_spill] sm:$0xff] }
 0x20f   : > { %v815_v45 = vadd.f32 %v3481_v52, %v789_v0  ;;  %v840_v7 = vadd.f32 %v3487_v34, %v814_v2  ;;  %v2855_v34 = vld [vmem:[%s2959_s26 + $0x4] sm:$0xff] }
 0x210   : > { %1942 = vrot.lane.b32.xlu1 %v1933_v5, %s2903_s29  ;;  %1940 = vrot.lane.b32.xlu0 %v1932_v23, %s2903_s29  ;;  %v875_v33 = vmul.f32 %v2855_v34, %v874_v25  ;;  %v865_v4 = vadd.f32 %v3505_v37, %v839_v27  ;;  %v868_v39 = vadd.f32 %v4598_v1, %v842_v38  ;;  %v1983_v23 = vstv %s3984_s18  ;;  %v4602_v25 = vld [vmem:[#allocation10_spill] sm:$0xff]  ;;  %v4603_v2 = vld [vmem:[#allocation11_spill] sm:$0xff]  ;;  %v4609_v34 = vld [vmem:[#allocation17_spill] sm:$0xff]  ;;  %s2788_s18 = sld [smem:[#allocation3 + $0x59]] }
 0x211   : > { %v841_v10 = vadd.f32 %v3497_v20, %v815_v45  ;;  %v866_v52 = vadd.f32 %v3503_v29, %v840_v7  ;;  %v1961_v20 = vmul.f32 %v3936_v44, %v1957_v15  ;;  %v1960_v29 = vmul.f32 %v3939_v30, %v1957_v15  ;;  %v4604_v15 = vld [vmem:[#allocation12_spill] sm:$0xff]  ;;  %v4605_v45 = vld [vmem:[#allocation13_spill] sm:$0xff]  ;;  %v4606_v27 = vld [vmem:[#allocation14_spill] sm:$0xff] }
 0x212   : > { %v3987_v26 = vpop.permute.xlu1 %1536  ;;  %v3989_v63 = vpop.permute.xlu0 %1534  ;;  %v879_v5 = vadd.f32 %v875_v33, %v865_v4  ;;  %v882_v18 = vadd.f32 %v878_v55, %v868_v39  ;;  %v1984_v0 = vmul.f32 %v3913_v6, %v1983_v23  ;;  %v4610_v4 = vld [vmem:[#allocation18_spill] sm:$0xff]  ;;  %v1044_v55 = vstv %s2710_s2  ;;  %s2789_s2 = sld [smem:[#allocation3 + $0x5a]] }
 0x213   : > { %v867_v62 = vadd.f32 %v4599_v19, %v841_v10  ;;  %v880_v37 = vadd.f32 %v876_v31, %v866_v52  ;;  %v4608_v10 = vld [vmem:[#allocation16_spill] sm:$0xff]  ;;  %v1987_v1 = vmul.f32 %v3936_v44, %v1983_v23  ;;  %v1986_v39 = vmul.f32 %v3939_v30, %v1983_v23 }
 0x214   : > { %1946 = vrot.lane.b32.xlu1 %v1935_v57, %s2903_s29  ;;  %1944 = vrot.lane.b32.xlu0 %v1934_v56, %s2903_s29  ;;  %v905_v43 = vadd.f32 %v4601_v35, %v879_v5  ;;  %v908_v57 = vadd.f32 %v4602_v25, %v882_v18  ;;  %v1985_v56 = vmul.f32 %v3910_v8, %v1983_v23  ;;  %v4612_v19 = vld [vmem:[#allocation20_spill] sm:$0xff]  ;;  %v4614_v5 = vld [vmem:[#allocation22_spill] sm:$0xff]  ;;  %v4617_v25 = vld [vmem:[#allocation25_spill] sm:$0xff] }
 0x215   : > { %v881_v48 = vadd.f32 %v877_v41, %v867_v62  ;;  %v906_v24 = vadd.f32 %v4600_v46, %v880_v37  ;;  %v2009_v37 = vstv %s2766_s19  ;;  %v4616_v23 = vld [vmem:[#allocation24_spill] sm:$0xff]  ;;  %s2795_s19 = sld [smem:[#allocation3 + $0x5c]] }
 0x216   : > { %v4006_v13 = vpop.permute.xlu1 %1540  ;;  %v4008_v58 = vpop.permute.xlu0 %1538  ;;  %v931_v7 = vadd.f32 %v4605_v45, %v905_v43  ;;  %v934_v32 = vadd.f32 %v4606_v27, %v908_v57  ;;  %v4619_v45 = vld [vmem:[#allocation27_spill] sm:$0xff]  ;;  %v4620_v27 = vld [vmem:[#allocation28_spill] sm:$0xff] }
 0x217   : > { %v907_v40 = vadd.f32 %v4603_v2, %v881_v48  ;;  %v932_v3 = vadd.f32 %v4604_v15, %v906_v24  ;;  %v4615_v24 = vld [vmem:[#allocation23_spill] sm:$0xff]  ;;  %v4618_v2 = vld [vmem:[#allocation26_spill] sm:$0xff]  ;;  %v2011_v15 = vmul.f32 %v3910_v8, %v2009_v37 }
 0x218   : > { %1968 = vrot.lane.b32.xlu1 %v1959_v14, %s2904_s4  ;;  %1966 = vrot.lane.b32.xlu0 %v1958_v60, %s2904_s4  ;;  %v4607_v14 = vld [vmem:[#allocation15_spill] sm:$0xff]  ;;  %v957_v33 = vadd.f32 %v4609_v34, %v931_v7  ;;  %v960_v36 = vadd.f32 %v4610_v4, %v934_v32  ;;  %v2860_v34 = vld [vmem:[%s2959_s26 + $0x1d] sm:$0xff] }
 0x219   : > { %v933_v60 = vadd.f32 %v4607_v14, %v907_v40  ;;  %v958_v52 = vadd.f32 %v4608_v10, %v932_v3  ;;  %v2010_v3 = vmul.f32 %v3913_v6, %v2009_v37  ;;  %v2859_v14 = vld [vmem:[%s2959_s26 + $0x5] sm:$0xff]  ;;  %v4621_v10 = vld [vmem:[#allocation29_spill] sm:$0xff] }
 0x21a   : > { %v4017_v17 = vpop.permute.xlu1 %1576  ;;  %v4019_v22 = vpop.permute.xlu0 %1574  ;;  %v986_v18 = vadd.f32 %v4614_v5, %v960_v36  ;;  %v4622_v4 = vld [vmem:[#allocation30_spill] sm:$0xff] }
 0x21b   : > { %v959_v41 = vadd.f32 %v4611_v54, %v933_v60  ;;  %v984_v62 = vadd.f32 %v4612_v19, %v958_v52  ;;  %v1045_v60 = vmul.f32 %v2859_v14, %v1044_v55  ;;  %v2861_v54 = vld [vmem:[%s2959_s26 + $0x15] sm:$0xff]  ;;  %v4623_v19 = vld [vmem:[#allocation31_spill] sm:$0xff] }
 0x21c   : > { %1972 = vrot.lane.b32.xlu1 %v1961_v20, %s2904_s4  ;;  %1970 = vrot.lane.b32.xlu0 %v1960_v29, %s2904_s4  ;;  %v4613_v20 = vld [vmem:[#allocation21_spill] sm:$0xff]  ;;  %v1012_v40 = vadd.f32 %v4618_v2, %v986_v18 }
 0x21d   : > { %v983_v29 = vadd.f32 %v4613_v20, %v957_v33  ;;  %v985_v35 = vadd.f32 %v4615_v24, %v959_v41  ;;  %v1010_v43 = vadd.f32 %v4616_v23, %v984_v62  ;;  %v1048_v33 = vmul.f32 %v2860_v34, %v1044_v55 }
 0x21e   : > { %v4032_v31 = vpop.permute.xlu1 %1580  ;;  %v4034_v38 = vpop.permute.xlu0 %1578  ;;  %v1038_v36 = vadd.f32 %v4622_v4, %v1012_v40  ;;  %v1047_v41 = vmul.f32 %v2861_v54, %v1044_v55  ;;  %v2013_v20 = vmul.f32 %v3936_v44, %v2009_v37  ;;  %v2035_v24 = vstv %s4047_s20  ;;  %v4626_v40 = vld [vmem:[#allocation34_spill] sm:$0xff]  ;;  %s2796_s20 = sld [smem:[#allocation3 + $0x5d]] }
 0x21f   : > { %v1009_v57 = vadd.f32 %v4617_v25, %v983_v29  ;;  %v1011_v7 = vadd.f32 %v4619_v45, %v985_v35  ;;  %v1036_v32 = vadd.f32 %v4620_v27, %v1010_v43  ;;  %v2012_v29 = vmul.f32 %v3939_v30, %v2009_v37  ;;  %v4624_v25 = vld [vmem:[#allocation32_spill] sm:$0xff] }
 0x220   : > { %1994 = vrot.lane.b32.xlu1 %v1985_v56, %s2905_s6  ;;  %1992 = vrot.lane.b32.xlu0 %v1984_v0, %s2905_s6  ;;  %v2858_v56 = vld [vmem:[%s2959_s26 + $0xd] sm:$0xff]  ;;  %v1052_v35 = vadd.f32 %v1048_v33, %v1038_v36  ;;  %v2037_v37 = vmul.f32 %v3910_v8, %v2035_v24 }
 0x221   : > { %v1046_v0 = vmul.f32 %v2858_v56, %v1044_v55  ;;  %v1035_v52 = vadd.f32 %v4621_v10, %v1009_v57  ;;  %v1037_v62 = vadd.f32 %v4623_v19, %v1011_v7  ;;  %v4625_v56 = vld [vmem:[#allocation33_spill] sm:$0xff]  ;;  %v4628_v7 = vld [vmem:[#allocation36_spill] sm:$0xff]  ;;  %v4631_v33 = vld [vmem:[#allocation39_spill] sm:$0xff] }
 0x222   : > { %v4050_v48 = vpop.permute.xlu1 %1602  ;;  %v4052_v46 = vpop.permute.xlu0 %1600  ;;  %v4632_v36 = vld [vmem:[#allocation40_spill] sm:$0xff] }
 0x223   : > { %v1050_v5 = vadd.f32 %v1046_v0, %v1036_v32  ;;  %v1049_v18 = vadd.f32 %v1045_v60, %v1035_v52  ;;  %v1051_v43 = vadd.f32 %v1047_v41, %v1037_v62  ;;  %v2036_v0 = vmul.f32 %v3913_v6, %v2035_v24  ;;  %v4629_v32 = vld [vmem:[#allocation37_spill] sm:$0xff]  ;;  %v4630_v60 = vld [vmem:[#allocation38_spill] sm:$0xff] }
 0x224   : > { %1998 = vrot.lane.b32.xlu1 %v1987_v1, %s2905_s6  ;;  %1996 = vrot.lane.b32.xlu0 %v1986_v39, %s2905_s6  ;;  %v4633_v41 = vld [vmem:[#allocation41_spill] sm:$0xff]  ;;  %v1214_v62 = vstv %s2717_s21  ;;  %s2797_s21 = sld [smem:[#allocation3 + $0x5e]] }
 0x225   : > { %v1076_v57 = vadd.f32 %v4624_v25, %v1050_v5  ;;  %v1075_v2 = vadd.f32 %v4625_v56, %v1049_v18  ;;  %v2039_v5 = vmul.f32 %v3936_v44, %v2035_v24  ;;  %v2038_v18 = vmul.f32 %v3939_v30, %v2035_v24  ;;  %v4636_v25 = vld [vmem:[#allocation44_spill] sm:$0xff]  ;;  %v4637_v56 = vld [vmem:[#allocation45_spill] sm:$0xff] }
 0x226   : > { %v4069_v1 = vpop.permute.xlu1 %1606  ;;  %v4071_v39 = vpop.permute.xlu0 %1604  ;;  %v2101_v30 = vstv %s4119_s23  ;;  %v4652_v44 = vld [vmem:[#allocation60_spill] sm:$0xff] }
 0x227   : > { %v1102_v27 = vadd.f32 %v4628_v7, %v1076_v57  ;;  %v1101_v14 = vadd.f32 %v4629_v32, %v1075_v2  ;;  %v4638_v7 = vld [vmem:[#allocation46_spill] sm:$0xff]  ;;  %v4639_v32 = vld [vmem:[#allocation47_spill] sm:$0xff] }
 0x228   : > { %2020 = vrot.lane.b32.xlu1 %v2011_v15, %s2906_s8  ;;  %2018 = vrot.lane.b32.xlu0 %v2010_v3, %s2906_s8  ;;  %v1078_v15 = vadd.f32 %v4626_v40, %v1052_v35  ;;  %v4627_v3 = vld [vmem:[#allocation35_spill] sm:$0xff]  ;;  %v4113_v40 = vld [vmem:[%s2959_s26 + $0x34] sm:$0xff] }
 0x229   : > { %v1077_v45 = vadd.f32 %v4627_v3, %v1051_v43  ;;  %v1128_v54 = vadd.f32 %v4632_v36, %v1102_v27  ;;  %v1127_v19 = vadd.f32 %v4633_v41, %v1101_v14  ;;  %v4635_v35 = vld [vmem:[#allocation43_spill] sm:$0xff] }
 0x22a   : > { %v4082_v23 = vpop.permute.xlu1 %1628  ;;  %v4084_v55 = vpop.permute.xlu0 %1626  ;;  %v1104_v10 = vadd.f32 %v4630_v60, %v1078_v15  ;;  %v2075_v15 = vstv %s4080_s22  ;;  %v4117_v3 = vld [vmem:[%s2959_s26 + $0x2c] sm:$0xff]  ;;  %s2768_s22 = sld [smem:[#allocation3 + $0x4d]] }
 0x22b   : > { %v1103_v4 = vadd.f32 %v4631_v33, %v1077_v45  ;;  %v1154_v57 = vadd.f32 %v4636_v25, %v1128_v54  ;;  %v1153_v2 = vadd.f32 %v4637_v56, %v1127_v19  ;;  %v4640_v60 = vld [vmem:[#allocation48_spill] sm:$0xff]  ;;  %v4641_v33 = vld [vmem:[#allocation49_spill] sm:$0xff]  ;;  %v2863_v36 = vld [vmem:[%s2959_s26 + $0x6] sm:$0xff]  ;;  %v2077_v41 = vmul.f32 %v4113_v40, %v2075_v15 }
 0x22c   : > { %2024 = vrot.lane.b32.xlu1 %v2013_v20, %s2906_s8  ;;  %2022 = vrot.lane.b32.xlu0 %v2012_v29, %s2906_s8  ;;  %v4634_v20 = vld [vmem:[#allocation42_spill] sm:$0xff]  ;;  %v1215_v54 = vmul.f32 %v2863_v36, %v1214_v62  ;;  %v2076_v19 = vmul.f32 %v4117_v3, %v2075_v15  ;;  %v4644_v25 = vld [vmem:[#allocation52_spill] sm:$0xff]  ;;  %v4645_v56 = vld [vmem:[#allocation53_spill] sm:$0xff] }
 0x22d   : > { %v1130_v29 = vadd.f32 %v4634_v20, %v1104_v10  ;;  %v1129_v43 = vadd.f32 %v4635_v35, %v1103_v4  ;;  %v1180_v10 = vadd.f32 %v4640_v60, %v1154_v57  ;;  %v1179_v4 = vadd.f32 %v4641_v33, %v1153_v2  ;;  %v4642_v20 = vld [vmem:[#allocation50_spill] sm:$0xff]  ;;  %v4643_v35 = vld [vmem:[#allocation51_spill] sm:$0xff] }
 0x22e   : > { %v4097_v52 = vpop.permute.xlu1 %1632  ;;  %v4099_v34 = vpop.permute.xlu0 %1630 }
 0x22f   : > { %v1156_v27 = vadd.f32 %v4638_v7, %v1130_v29  ;;  %v1155_v14 = vadd.f32 %v4639_v32, %v1129_v43  ;;  %v1206_v57 = vadd.f32 %v4644_v25, %v1180_v10  ;;  %v1205_v2 = vadd.f32 %v4645_v56, %v1179_v4  ;;  %v4143_v7 = vld [vmem:[%s2959_s26 + $0x3c] sm:$0xff]  ;;  %v4647_v10 = vld [vmem:[#allocation55_spill] sm:$0xff] }
 0x230   : > { %2046 = vrot.lane.b32.xlu1 %v2037_v37, %s2907_s10  ;;  %2044 = vrot.lane.b32.xlu0 %v2036_v0, %s2907_s10  ;;  %v2862_v37 = vld [vmem:[%s2959_s26 + $0xe] sm:$0xff]  ;;  %v2864_v32 = vld [vmem:[%s2959_s26 + $0x1e] sm:$0xff] }
 0x231   : > { %v1216_v0 = vmul.f32 %v2862_v37, %v1214_v62  ;;  %v1182_v29 = vadd.f32 %v4642_v20, %v1156_v27  ;;  %v1181_v43 = vadd.f32 %v4643_v35, %v1155_v14  ;;  %v4140_v37 = vld [vmem:[%s2959_s26 + $0x44] sm:$0xff]  ;;  %v1218_v60 = vmul.f32 %v2864_v32, %v1214_v62  ;;  %v2865_v14 = vld [vmem:[%s2959_s26 + $0x16] sm:$0xff] }
 0x232   : > { %v4122_v45 = vpop.permute.xlu1 %1654  ;;  %v4124_v24 = vpop.permute.xlu0 %1652  ;;  %v4646_v27 = vld [vmem:[#allocation54_spill] sm:$0xff]  ;;  %v1217_v36 = vmul.f32 %v2865_v14, %v1214_v62  ;;  %v2079_v4 = vmul.f32 %v4140_v37, %v2075_v15  ;;  %v2078_v35 = vmul.f32 %v4143_v7, %v2075_v15  ;;  %v1219_v56 = vadd.f32 %v1215_v54, %v1205_v2 }
 0x233   : > { %v1208_v33 = vadd.f32 %v4646_v27, %v1182_v29  ;;  %v1207_v20 = vadd.f32 %v4647_v10, %v1181_v43  ;;  %v1220_v25 = vadd.f32 %v1216_v0, %v1206_v57  ;;  %v4648_v43 = vld [vmem:[#allocation56_spill] sm:$0xff]  ;;  %v2103_v15 = vmul.f32 %v4113_v40, %v2101_v30  ;;  %v4650_v54 = vld [vmem:[#allocation58_spill] sm:$0xff]  ;;  %v4651_v57 = vld [vmem:[#allocation59_spill] sm:$0xff] }
 0x234   : > { %2050 = vrot.lane.b32.xlu1 %v2039_v5, %s2907_s10  ;;  %2048 = vrot.lane.b32.xlu0 %v2038_v18, %s2907_s10  ;;  %v2102_v0 = vmul.f32 %v4117_v3, %v2101_v30 }
 0x235   : > { %v1222_v62 = vadd.f32 %v1218_v60, %v1208_v33  ;;  %v1221_v27 = vadd.f32 %v1217_v36, %v1207_v20  ;;  %v1246_v14 = vadd.f32 %v4648_v43, %v1220_v25  ;;  %v4653_v60 = vld [vmem:[#allocation61_spill] sm:$0xff]  ;;  %v1385_v36 = vstv %s4145_s24 }
 0x236   : > { %v4147_v5 = vpop.permute.xlu1 %1658  ;;  %v4149_v18 = vpop.permute.xlu0 %1656 }
 0x237   : > { %v1247_v2 = vadd.f32 %v4651_v57, %v1221_v27  ;;  %v1272_v6 = vadd.f32 %v4652_v44, %v1246_v14  ;;  %v2105_v44 = vmul.f32 %v4140_v37, %v2101_v30  ;;  %v2104_v27 = vmul.f32 %v4143_v7, %v2101_v30  ;;  %v4661_v57 = vld [vmem:[#allocation67_spill] sm:$0xff]  ;;  %v4667_v30 = vld [vmem:[#allocation73_spill] sm:$0xff] }
 0x238   : > { %2086 = vrot.lane.b32.xlu1 %v2077_v41, %s2902_s27  ;;  %2084 = vrot.lane.b32.xlu0 %v2076_v19, %s2902_s27  ;;  %v4649_v41 = vld [vmem:[#allocation57_spill] sm:$0xff]  ;;  %v1248_v19 = vadd.f32 %v4650_v54, %v1222_v62  ;;  %v2127_v14 = vstv %s2775_s25 }
 0x239   : > { %v1245_v10 = vadd.f32 %v4649_v41, %v1219_v56  ;;  %v4657_v56 = vld [vmem:[#allocation63_spill] sm:$0xff]  ;;  %v4658_v41 = vld [vmem:[#allocation64_spill] sm:$0xff] }
 0x23a   : > { %v4160_v32 = vpop.permute.xlu1 %1680  ;;  %v4162_v29 = vpop.permute.xlu0 %1678  ;;  %v1273_v43 = vadd.f32 %v4657_v56, %v1247_v2  ;;  %v1298_v8 = vadd.f32 %v4658_v41, %v1272_v6  ;;  %v4666_v56 = vld [vmem:[#allocation72_spill] sm:$0xff] }
 0x23b   : > { %v1271_v33 = vadd.f32 %v4653_v60, %v1245_v10  ;;  %v4660_v10 = vld [vmem:[#allocation66_spill] sm:$0xff]  ;;  %v4662_v60 = vld [vmem:[#allocation68_spill] sm:$0xff] }
 0x23c   : > { %2090 = vrot.lane.b32.xlu1 %v2079_v4, %s2902_s27  ;;  %2088 = vrot.lane.b32.xlu0 %v2078_v35, %s2902_s27  ;;  %v4656_v4 = vld [vmem:[#allocation62_spill] sm:$0xff]  ;;  %v1324_v2 = vadd.f32 %v4662_v60, %v1298_v8  ;;  %v2867_v8 = vld [vmem:[%s2959_s26 + $0x28] sm:$0xff]  ;;  %v2128_v60 = vmul.f32 %v4117_v3, %v2127_v14 }
 0x23d   : > { %v1274_v35 = vadd.f32 %v4656_v4, %v1248_v19  ;;  %v1297_v62 = vadd.f32 %v4659_v16, %v1271_v33  ;;  %v1299_v19 = vadd.f32 %v4661_v57, %v1273_v43  ;;  %v4663_v4 = vld [vmem:[#allocation69_spill] sm:$0xff]  ;;  %v2866_v16 = vld [vmem:[%s2959_s26 + $0x30] sm:$0xff]  ;;  %v4669_v43 = vld [vmem:[#allocation75_spill] sm:$0xff]  ;;  %v2129_v57 = vmul.f32 %v4113_v40, %v2127_v14 }
 0x23e   : > { %v4175_v20 = vpop.permute.xlu1 %1684  ;;  %v4177_v25 = vpop.permute.xlu0 %1682 }
 0x23f   : > { %4654 = vst [vmem:[#allocation6_spill] sm:$0xff] %v4175_v20  ;;  %4655 = vst [vmem:[#allocation7_spill] sm:$0xff] %v4177_v25  ;;  %v1300_v54 = vadd.f32 %v4660_v10, %v1274_v35  ;;  %v1323_v6 = vadd.f32 %v4663_v4, %v1297_v62  ;;  %v1325_v53 = vadd.f32 %v4667_v30, %v1299_v19  ;;  %v4668_v25 = vld [vmem:[#allocation74_spill] sm:$0xff]  ;;  %v4670_v4 = vld [vmem:[#allocation76_spill] sm:$0xff] }
 0x240   : > { %2112 = vrot.lane.b32.xlu1 %v2103_v15, %s2903_s29  ;;  %2110 = vrot.lane.b32.xlu0 %v2102_v0, %s2903_s29  ;;  %v1387_v15 = vmul.f32 %v2866_v16, %v1385_v36  ;;  %v1350_v35 = vadd.f32 %v4668_v25, %v1324_v2  ;;  %v1386_v62 = vmul.f32 %v2867_v8, %v1385_v36  ;;  %v4671_v16 = vld [vmem:[#allocation77_spill] sm:$0xff]  ;;  %v4673_v25 = vld [vmem:[#allocation79_spill] sm:$0xff]  ;;  %v4675_v8 = vld [vmem:[#allocation80_spill] sm:$0xff] }
 0x241   : > { %v1326_v41 = vadd.f32 %v4666_v56, %v1300_v54  ;;  %v1349_v10 = vadd.f32 %v4669_v43, %v1323_v6  ;;  %v1351_v19 = vadd.f32 %v4671_v16, %v1325_v53  ;;  %v4672_v56 = vld [vmem:[#allocation78_spill] sm:$0xff]  ;;  %v2131_v53 = vmul.f32 %v4140_v37, %v2127_v14 }
 0x242   : > { %v4194_v33 = vpop.permute.xlu1 %1706  ;;  %v4196_v0 = vpop.permute.xlu0 %1704  ;;  %v1376_v30 = vadd.f32 %v4672_v56, %v1350_v35  ;;  %v2130_v35 = vmul.f32 %v4143_v7, %v2127_v14  ;;  %v2153_v56 = vstv %s4191_s28 }
 0x243   : > { %4664 = vst [vmem:[#allocation8_spill] sm:$0xff] %v4194_v33  ;;  %4665 = vst [vmem:[#allocation9_spill] sm:$0xff] %v4196_v0  ;;  %v1352_v54 = vadd.f32 %v4670_v4, %v1326_v41  ;;  %v1375_v2 = vadd.f32 %v4673_v25, %v1349_v10  ;;  %v2869_v33 = vld [vmem:[%s2959_s26 + $0x38] sm:$0xff]  ;;  %v2155_v14 = vmul.f32 %v4113_v40, %v2153_v56 }
 0x244   : > { %2116 = vrot.lane.b32.xlu1 %v2105_v44, %s2903_s29  ;;  %2114 = vrot.lane.b32.xlu0 %v2104_v27, %s2903_s29  ;;  %v2868_v27 = vld [vmem:[%s2959_s26 + $0x40] sm:$0xff]  ;;  %v1388_v20 = vmul.f32 %v2869_v33, %v1385_v36  ;;  %v4676_v41 = vld [vmem:[#allocation81_spill] sm:$0xff]  ;;  %v1391_v10 = vadd.f32 %v1387_v15, %v1376_v30  ;;  %v2154_v15 = vmul.f32 %v4117_v3, %v2153_v56 }
 0x245   : > { %v1389_v43 = vmul.f32 %v2868_v27, %v1385_v36  ;;  %v1378_v0 = vadd.f32 %v4675_v8, %v1352_v54  ;;  %v1377_v4 = vadd.f32 %v4676_v41, %v1351_v19  ;;  %v1390_v16 = vadd.f32 %v1386_v62, %v1375_v2  ;;  %v4679_v19 = vld [vmem:[#allocation82_spill] sm:$0xff]  ;;  %v4681_v62 = vld [vmem:[#allocation84_spill] sm:$0xff]  ;;  %v4682_v30 = vld [vmem:[#allocation85_spill] sm:$0xff] }
 0x246   : > { %v4213_v6 = vpop.permute.xlu1 %1710  ;;  %v4215_v44 = vpop.permute.xlu0 %1708  ;;  %v1417_v27 = vadd.f32 %v4679_v19, %v1391_v10  ;;  %v4683_v41 = vld [vmem:[#allocation86_spill] sm:$0xff] }
 0x247   : > { %4674 = vst [vmem:[#allocation10_spill] sm:$0xff] %v4215_v44  ;;  %v1393_v36 = vadd.f32 %v1389_v43, %v1378_v0  ;;  %v1392_v33 = vadd.f32 %v1388_v20, %v1377_v4  ;;  %v4684_v0 = vld [vmem:[#allocation87_spill] sm:$0xff]  ;;  %v1555_v43 = vstv %s4211_s30 }
 0x248   : > { %2138 = vrot.lane.b32.xlu1 %v2129_v57, %s2904_s4  ;;  %2136 = vrot.lane.b32.xlu0 %v2128_v60, %s2904_s4  ;;  %v4680_v57 = vld [vmem:[#allocation83_spill] sm:$0xff] }
 0x249   : > { %v1416_v8 = vadd.f32 %v4680_v57, %v1390_v16  ;;  %v1419_v60 = vadd.f32 %v4681_v62, %v1393_v36  ;;  %v1418_v2 = vadd.f32 %v4682_v30, %v1392_v33  ;;  %v4686_v16 = vld [vmem:[#allocation89_spill] sm:$0xff]  ;;  %v4687_v57 = vld [vmem:[#allocation90_spill] sm:$0xff]  ;;  %v4688_v44 = vld [vmem:[#allocation91_spill] sm:$0xff]  ;;  %v2157_v33 = vmul.f32 %v4140_v37, %v2153_v56 }
 0x24a   : > { %v4226_v25 = vpop.permute.xlu1 %1746  ;;  %v4228_v54 = vpop.permute.xlu0 %1744 }
 0x24b   : > { %4677 = vst [vmem:[#allocation11_spill] sm:$0xff] %v4226_v25  ;;  %4678 = vst [vmem:[#allocation12_spill] sm:$0xff] %v4228_v54  ;;  %v1443_v54 = vadd.f32 %v4683_v41, %v1417_v27  ;;  %v1442_v20 = vadd.f32 %v4684_v0, %v1416_v8  ;;  %v1444_v19 = vadd.f32 %v4686_v16, %v1418_v2  ;;  %v2179_v8 = vstv %s2777_s5 }
 0x24c   : > { %2142 = vrot.lane.b32.xlu1 %v2131_v53, %s2904_s4  ;;  %2140 = vrot.lane.b32.xlu0 %v2130_v35, %s2904_s4  ;;  %v4685_v53 = vld [vmem:[#allocation88_spill] sm:$0xff]  ;;  %v2156_v27 = vmul.f32 %v4143_v7, %v2153_v56  ;;  %v2180_v0 = vmul.f32 %v4117_v3, %v2179_v8 }
 0x24d   : > { %v1445_v35 = vadd.f32 %v4685_v53, %v1419_v60  ;;  %v1469_v25 = vadd.f32 %v4687_v57, %v1443_v54  ;;  %v1468_v36 = vadd.f32 %v4688_v44, %v1442_v20  ;;  %v1470_v60 = vadd.f32 %v3896_v49, %v1444_v19  ;;  %v2870_v44 = vld [vmem:[%s2959_s26 + $0x31] sm:$0xff]  ;;  %v2873_v57 = vld [vmem:[%s2959_s26 + $0x39] sm:$0xff] }
 0x24e   : > { %v4241_v4 = vpop.permute.xlu1 %1750  ;;  %v4243_v10 = vpop.permute.xlu0 %1748 }
 0x24f   : > { %v1471_v62 = vadd.f32 %v3894_v61, %v1445_v35  ;;  %v1495_v30 = vadd.f32 %v3918_v12, %v1469_v25  ;;  %v1494_v54 = vadd.f32 %v3920_v11, %v1468_v36  ;;  %v1496_v56 = vadd.f32 %v3945_v59, %v1470_v60  ;;  %v2871_v12 = vld [vmem:[%s2959_s26 + $0x29] sm:$0xff]  ;;  %v2872_v35 = vld [vmem:[%s2959_s26 + $0x41] sm:$0xff] }
 0x250   : > { %2164 = vrot.lane.b32.xlu1 %v2155_v14, %s2905_s6  ;;  %2162 = vrot.lane.b32.xlu0 %v2154_v15, %s2905_s6  ;;  %v1557_v14 = vmul.f32 %v2870_v44, %v1555_v43  ;;  %v1556_v11 = vmul.f32 %v2871_v12, %v1555_v43  ;;  %v2181_v25 = vmul.f32 %v4113_v40, %v2179_v8 }
 0x251   : > { %v1497_v41 = vadd.f32 %v3943_v28, %v1471_v62  ;;  %v1521_v61 = vadd.f32 %v3954_v9, %v1495_v30  ;;  %v1520_v49 = vadd.f32 %v3956_v51, %v1494_v54  ;;  %v1522_v59 = vadd.f32 %v3971_v50, %v1496_v56 }
 0x252   : > { %v4260_v2 = vpop.permute.xlu1 %1772  ;;  %v4262_v15 = vpop.permute.xlu0 %1770  ;;  %v1559_v16 = vmul.f32 %v2872_v35, %v1555_v43  ;;  %v1558_v36 = vmul.f32 %v2873_v57, %v1555_v43  ;;  %v2183_v50 = vmul.f32 %v4140_v37, %v2179_v8  ;;  %v4690_v57 = vld [vmem:[#allocation7_spill] sm:$0xff] }
 0x253   : > { %v1523_v28 = vadd.f32 %v3969_v21, %v1497_v41  ;;  %v1547_v20 = vadd.f32 %v3987_v26, %v1521_v61  ;;  %v1546_v9 = vadd.f32 %v3989_v63, %v1520_v49  ;;  %v1548_v21 = vadd.f32 %v4008_v58, %v1522_v59 }
 0x254   : > { %2168 = vrot.lane.b32.xlu1 %v2157_v33, %s2905_s6  ;;  %2166 = vrot.lane.b32.xlu0 %v2156_v27, %s2905_s6  ;;  %v2182_v26 = vmul.f32 %v4143_v7, %v2179_v8  ;;  %v2205_v27 = vstv %s4257_s7  ;;  %v1725_v61 = vstv %s4277_s9 }
 0x255   : > { %v1549_v19 = vadd.f32 %v4006_v13, %v1523_v28  ;;  %v1561_v63 = vadd.f32 %v1557_v14, %v1547_v20  ;;  %v1560_v33 = vadd.f32 %v1556_v11, %v1546_v9  ;;  %v1562_v60 = vadd.f32 %v1558_v36, %v1548_v21  ;;  %v4691_v36 = vld [vmem:[#allocation8_spill] sm:$0xff]  ;;  %v4692_v21 = vld [vmem:[#allocation9_spill] sm:$0xff] }
 0x256   : > { %v4279_v51 = vpop.permute.xlu1 %1776  ;;  %v4281_v53 = vpop.permute.xlu0 %1774  ;;  %v2207_v8 = vmul.f32 %v4113_v40, %v2205_v27  ;;  %v2206_v54 = vmul.f32 %v4117_v3, %v2205_v27  ;;  %v1727_v28 = vmul.f32 %v3784_v47, %v1725_v61  ;;  %v1726_v9 = vmul.f32 %v3787_v42, %v1725_v61  ;;  %v4349_v42 = vld [vmem:[%s2959_s26 + $0x3d] sm:$0xff] }
 0x257   : > { %v1563_v43 = vadd.f32 %v1559_v16, %v1549_v19  ;;  %v1587_v58 = vadd.f32 %v4017_v17, %v1561_v63  ;;  %v1586_v30 = vadd.f32 %v4019_v22, %v1560_v33  ;;  %v1588_v14 = vadd.f32 %v4034_v38, %v1562_v60  ;;  %v4689_v16 = vld [vmem:[#allocation6_spill] sm:$0xff] }
 0x258   : > { %2190 = vrot.lane.b32.xlu1 %v2181_v25, %s2906_s8  ;;  %2188 = vrot.lane.b32.xlu0 %v2180_v0, %s2906_s8  ;;  %v2209_v38 = vmul.f32 %v4140_v37, %v2205_v27  ;;  %v4693_v33 = vld [vmem:[#allocation10_spill] sm:$0xff] }
 0x259   : > { %v1589_v44 = vadd.f32 %v4032_v31, %v1563_v43  ;;  %v1613_v41 = vadd.f32 %v4050_v48, %v1587_v58  ;;  %v1612_v56 = vadd.f32 %v4052_v46, %v1586_v30  ;;  %v1614_v12 = vadd.f32 %v4071_v39, %v1588_v14  ;;  %v4694_v43 = vld [vmem:[#allocation70_spill] sm:$0xff]  ;;  %v4695_v58 = vld [vmem:[#allocation71_spill] sm:$0xff] }
 0x25a   : > { %v4292_v62 = vpop.permute.xlu1 %1798  ;;  %v4294_v13 = vpop.permute.xlu0 %1796  ;;  %v2208_v48 = vmul.f32 %v4143_v7, %v2205_v27  ;;  %v2245_v46 = vstv %s2784_s11  ;;  %v1729_v60 = vmul.f32 %v4694_v43, %v1725_v61  ;;  %v1728_v30 = vmul.f32 %v4695_v58, %v1725_v61 }
 0x25b   : > { %v1615_v49 = vadd.f32 %v4069_v1, %v1589_v44  ;;  %v1639_v11 = vadd.f32 %v4082_v23, %v1613_v41  ;;  %v1638_v31 = vadd.f32 %v4084_v55, %v1612_v56  ;;  %v1640_v0 = vadd.f32 %v4099_v34, %v1614_v12  ;;  %v4324_v23 = vld [vmem:[%s2959_s26 + $0x35] sm:$0xff]  ;;  %v4327_v55 = vld [vmem:[%s2959_s26 + $0x2d] sm:$0xff] }
 0x25c   : > { %2194 = vrot.lane.b32.xlu1 %v2183_v50, %s2906_s8  ;;  %2192 = vrot.lane.b32.xlu0 %v2182_v26, %s2906_s8  ;;  %v2247_v47 = vmul.f32 %v4324_v23, %v2245_v46  ;;  %v2246_v35 = vmul.f32 %v4327_v55, %v2245_v46  ;;  %v4346_v50 = vld [vmem:[%s2959_s26 + $0x45] sm:$0xff]  ;;  %v2271_v41 = vstv %s4329_s12 }
 0x25d   : > { %v1641_v25 = vadd.f32 %v4097_v52, %v1615_v49  ;;  %v1665_v1 = vadd.f32 %v4122_v45, %v1639_v11  ;;  %v1664_v39 = vadd.f32 %v4124_v24, %v1638_v31  ;;  %v1666_v34 = vadd.f32 %v4149_v18, %v1640_v0  ;;  %v4696_v49 = vld [vmem:[#allocation11_spill] sm:$0xff]  ;;  %v4697_v11 = vld [vmem:[#allocation12_spill] sm:$0xff] }
 0x25e   : > { %v4307_v17 = vpop.permute.xlu1 %1802  ;;  %v4309_v22 = vpop.permute.xlu0 %1800 }
 0x25f   : > { %v1667_v52 = vadd.f32 %v4147_v5, %v1641_v25  ;;  %v1691_v45 = vadd.f32 %v4160_v32, %v1665_v1  ;;  %v1690_v24 = vadd.f32 %v4162_v29, %v1664_v39  ;;  %v1692_v5 = vadd.f32 %v4690_v57, %v1666_v34 }
 0x260   : > { %2216 = vrot.lane.b32.xlu1 %v2207_v8, %s2907_s10  ;;  %2214 = vrot.lane.b32.xlu0 %v2206_v54, %s2907_s10  ;;  %v2249_v8 = vmul.f32 %v4346_v50, %v2245_v46  ;;  %v2248_v54 = vmul.f32 %v4349_v42, %v2245_v46  ;;  %v2272_v46 = vmul.f32 %v4327_v55, %v2271_v41  ;;  %v1895_v34 = vstv %s2757_s13 }
 0x261   : > { %v1693_v19 = vadd.f32 %v4689_v16, %v1667_v52  ;;  %v1717_v18 = vadd.f32 %v4691_v36, %v1691_v45  ;;  %v1716_v32 = vadd.f32 %v4692_v21, %v1690_v24  ;;  %v1718_v27 = vadd.f32 %v4693_v33, %v1692_v5 }
 0x262   : > { %v1825_v59 = vpop.permute.xlu1 %1824  ;;  %v1823_v20 = vpop.permute.xlu0 %1822 }
 0x263   : > { %v1719_v63 = vadd.f32 %v4213_v6, %v1693_v19  ;;  %v1731_v44 = vadd.f32 %v1727_v28, %v1717_v18  ;;  %v1730_v14 = vadd.f32 %v1726_v9, %v1716_v32  ;;  %v1732_v61 = vadd.f32 %v1728_v30, %v1718_v27  ;;  %v4698_v19 = vld [vmem:[#allocation92_spill] sm:$0xff]  ;;  %v4700_v30 = vld [vmem:[#allocation94_spill] sm:$0xff] }
 0x264   : > { %2220 = vrot.lane.b32.xlu1 %v2209_v38, %s2907_s10  ;;  %2218 = vrot.lane.b32.xlu0 %v2208_v48, %s2907_s10  ;;  %v2273_v48 = vmul.f32 %v4324_v23, %v2271_v41 }
 0x265   : > { %v1757_v12 = vadd.f32 %v4696_v49, %v1731_v44  ;;  %v1756_v31 = vadd.f32 %v4697_v11, %v1730_v14  ;;  %v1733_v38 = vadd.f32 %v1729_v60, %v1719_v63  ;;  %v1758_v0 = vadd.f32 %v4243_v10, %v1732_v61  ;;  %v4701_v14 = vld [vmem:[#allocation95_spill] sm:$0xff] }
 0x266   : > { %v1829_v29 = vpop.permute.xlu1 %1828  ;;  %v1827_v26 = vpop.permute.xlu0 %1826  ;;  %v2274_v10 = vmul.f32 %v4349_v42, %v2271_v41 }
 0x267   : > { %v1759_v25 = vadd.f32 %v4241_v4, %v1733_v38  ;;  %v1783_v1 = vadd.f32 %v4260_v2, %v1757_v12  ;;  %v1782_v39 = vadd.f32 %v4262_v15, %v1756_v31  ;;  %v1784_v24 = vadd.f32 %v4281_v53, %v1758_v0 }
 0x268   : > { %2256 = vrot.lane.b32.xlu1 %v2247_v47, %s2902_s27  ;;  %2254 = vrot.lane.b32.xlu0 %v2246_v35, %s2902_s27  ;;  %v2275_v4 = vmul.f32 %v4346_v50, %v2271_v41  ;;  %v2297_v2 = vstv %s2786_s16  ;;  %v1898_v41 = vmul.f32 %v4701_v14, %v1895_v34 }
 0x269   : > { %v1785_v45 = vadd.f32 %v4279_v51, %v1759_v25  ;;  %v1809_v9 = vadd.f32 %v4292_v62, %v1783_v1  ;;  %v1808_v47 = vadd.f32 %v4294_v13, %v1782_v39  ;;  %v1810_v35 = vadd.f32 %v4309_v22, %v1784_v24  ;;  %v4699_v22 = vld [vmem:[#allocation93_spill] sm:$0xff] }
 0x26a   : > { %v1851_v56 = vpop.permute.xlu1 %1850  ;;  %v1849_v6 = vpop.permute.xlu0 %1848  ;;  %v1897_v13 = vmul.f32 %v4698_v19, %v1895_v34  ;;  %v2299_v21 = vmul.f32 %v4324_v23, %v2297_v2  ;;  %v2301_v60 = vmul.f32 %v4346_v50, %v2297_v2  ;;  %v2300_v58 = vmul.f32 %v4349_v42, %v2297_v2 }
 0x26b   : > { %v1811_v15 = vadd.f32 %v4307_v17, %v1785_v45  ;;  %v1835_v51 = vadd.f32 %v1825_v59, %v1809_v9  ;;  %v1834_v16 = vadd.f32 %v1823_v20, %v1808_v47  ;;  %v1836_v5 = vadd.f32 %v1827_v26, %v1810_v35 }
 0x26c   : > { %2260 = vrot.lane.b32.xlu1 %v2249_v8, %s2902_s27  ;;  %2258 = vrot.lane.b32.xlu0 %v2248_v54, %s2902_s27  ;;  %v2298_v17 = vmul.f32 %v4327_v55, %v2297_v2  ;;  %v1896_v59 = vmul.f32 %v4699_v22, %v1895_v34  ;;  %v1899_v8 = vmul.f32 %v4700_v30, %v1895_v34  ;;  %v4427_v30 = vld [vmem:[%s2959_s26 + $0x46] sm:$0xff] }
 0x26d   : > { %v1837_v57 = vadd.f32 %v1829_v29, %v1811_v15  ;;  %v1861_v36 = vadd.f32 %v1851_v56, %v1835_v51  ;;  %v1860_v18 = vadd.f32 %v1849_v6, %v1834_v16  ;;  %v2323_v56 = vstv %s2787_s17 }
 0x26e   : > { %v1855_v28 = vpop.permute.xlu1 %1854  ;;  %v1853_v52 = vpop.permute.xlu0 %1852  ;;  %v2325_v31 = vmul.f32 %v4324_v23, %v2323_v56  ;;  %v2324_v38 = vmul.f32 %v4327_v55, %v2323_v56  ;;  %v2327_v39 = vmul.f32 %v4346_v50, %v2323_v56 }
 0x26f   : > { %v1863_v20 = vadd.f32 %v1855_v28, %v1837_v57  ;;  %v1862_v32 = vadd.f32 %v1853_v52, %v1836_v5  ;;  %v2326_v28 = vmul.f32 %v4349_v42, %v2323_v56  ;;  %v2349_v52 = vstv %s2788_s18 }
 0x270   : > { %2282 = vrot.lane.b32.xlu1 %v2273_v48, %s2903_s29  ;;  %2280 = vrot.lane.b32.xlu0 %v2272_v46, %s2903_s29  ;;  %v2351_v47 = vmul.f32 %v4324_v23, %v2349_v52  ;;  %v2353_v51 = vmul.f32 %v4346_v50, %v2349_v52  ;;  %v2352_v16 = vmul.f32 %v4349_v42, %v2349_v52 }
 0x272   : > { %v1877_v53 = vpop.permute.xlu1 %1876  ;;  %v1875_v62 = vpop.permute.xlu0 %1874 }
 0x273   : > { %v1887_v63 = vadd.f32 %v1877_v53, %v1861_v36  ;;  %v1886_v33 = vadd.f32 %v1875_v62, %v1860_v18  ;;  %v2375_v53 = vstv %s2789_s2 }
 0x274   : > { %2286 = vrot.lane.b32.xlu1 %v2275_v4, %s2903_s29  ;;  %2284 = vrot.lane.b32.xlu0 %v2274_v10, %s2903_s29  ;;  %v2350_v4 = vmul.f32 %v4327_v55, %v2349_v52  ;;  %v2377_v5 = vmul.f32 %v4324_v23, %v2375_v53  ;;  %v2376_v36 = vmul.f32 %v4327_v55, %v2375_v53  ;;  %v2467_v52 = vstv %s2797_s21 }
 0x275   : > { %v1901_v54 = vadd.f32 %v1897_v13, %v1887_v63  ;;  %v1900_v44 = vadd.f32 %v1896_v59, %v1886_v33  ;;  %v2379_v59 = vmul.f32 %v4346_v50, %v2375_v53  ;;  %v2415_v63 = vstv %s2795_s19  ;;  %v4420_v33 = vld [vmem:[%s2959_s26 + $0x2e] sm:$0xff] }
 0x276   : > { %v1881_v27 = vpop.permute.xlu1 %1880  ;;  %v1879_v43 = vpop.permute.xlu0 %1878  ;;  %v2419_v56 = vmul.f32 %v4427_v30, %v2415_v63 }
 0x277   : > { %v1889_v29 = vadd.f32 %v1881_v27, %v1863_v20  ;;  %v1888_v26 = vadd.f32 %v1879_v43, %v1862_v32  ;;  %v2378_v20 = vmul.f32 %v4349_v42, %v2375_v53  ;;  %v4417_v32 = vld [vmem:[%s2959_s26 + $0x36] sm:$0xff] }
 0x278   : > { %2308 = vrot.lane.b32.xlu1 %v2299_v21, %s2904_s4  ;;  %2306 = vrot.lane.b32.xlu0 %v2298_v17, %s2904_s4 }
 0x279   : > { %v1903_v61 = vadd.f32 %v1899_v8, %v1889_v29  ;;  %v1902_v48 = vadd.f32 %v1898_v41, %v1888_v26  ;;  %v4430_v8 = vld [vmem:[%s2959_s26 + $0x3e] sm:$0xff]  ;;  %s2798_s26 = sld [smem:[#allocation3 + $0x5f]] }
 0x27a   : > { %v1917_v6 = vpop.permute.xlu1 %1916  ;;  %v1915_v49 = vpop.permute.xlu0 %1914 }
 0x27b   : > { %v1927_v12 = vadd.f32 %v1917_v6, %v1901_v54  ;;  %v1926_v11 = vadd.f32 %v1915_v49, %v1900_v44  ;;  %v2418_v6 = vmul.f32 %v4430_v8, %v2415_v63  ;;  %v2441_v49 = vstv %s2796_s20 }
 0x27c   : > { %2312 = vrot.lane.b32.xlu1 %v2301_v60, %s2904_s4  ;;  %2310 = vrot.lane.b32.xlu0 %v2300_v58, %s2904_s4  ;;  %v2417_v60 = vmul.f32 %v4417_v32, %v2415_v63  ;;  %v2416_v58 = vmul.f32 %v4420_v33, %v2415_v63 }
 0x27e   : > { %v1921_v46 = vpop.permute.xlu1 %1920  ;;  %v1919_v25 = vpop.permute.xlu0 %1918 }
 0x27f   : > { %v1929_v0 = vadd.f32 %v1921_v46, %v1903_v61  ;;  %v1928_v1 = vadd.f32 %v1919_v25, %v1902_v48  ;;  %v2443_v61 = vmul.f32 %v4417_v32, %v2441_v49  ;;  %v2442_v48 = vmul.f32 %v4420_v33, %v2441_v49 }
 0x280   : > { %2334 = vrot.lane.b32.xlu1 %v2325_v31, %s2905_s6  ;;  %2332 = vrot.lane.b32.xlu0 %v2324_v38, %s2905_s6 }
 0x282   : > { %v1943_v34 = vpop.permute.xlu1 %1942  ;;  %v1941_v45 = vpop.permute.xlu0 %1940 }
 0x283   : > { %v1953_v24 = vadd.f32 %v1943_v34, %v1927_v12  ;;  %v1952_v9 = vadd.f32 %v1941_v45, %v1926_v11 }
 0x284   : > { %2338 = vrot.lane.b32.xlu1 %v2327_v39, %s2905_s6  ;;  %2336 = vrot.lane.b32.xlu0 %v2326_v28, %s2905_s6  ;;  %v2445_v39 = vmul.f32 %v4427_v30, %v2441_v49  ;;  %v2444_v28 = vmul.f32 %v4430_v8, %v2441_v49 }
 0x286   : > { %v1947_v10 = vpop.permute.xlu1 %1946  ;;  %v1945_v2 = vpop.permute.xlu0 %1944 }
 0x287   : > { %v1955_v15 = vadd.f32 %v1947_v10, %v1929_v0  ;;  %v1954_v35 = vadd.f32 %v1945_v2, %v1928_v1  ;;  %v2468_v10 = vmul.f32 %v4420_v33, %v2467_v52 }
 0x288   : > { %2360 = vrot.lane.b32.xlu1 %v2351_v47, %s2906_s8  ;;  %2358 = vrot.lane.b32.xlu0 %v2350_v4, %s2906_s8  ;;  %v2469_v4 = vmul.f32 %v4417_v32, %v2467_v52 }
 0x28a   : > { %v1969_v62 = vpop.permute.xlu1 %1968  ;;  %v1967_v19 = vpop.permute.xlu0 %1966 }
 0x28b   : > { %v1979_v13 = vadd.f32 %v1969_v62, %v1953_v24  ;;  %v1978_v57 = vadd.f32 %v1967_v19, %v1952_v9  ;;  %v2065_v24 = vstv %s2768_s22  ;;  %v2471_v62 = vmul.f32 %v4427_v30, %v2467_v52 }
 0x28c   : > { %2364 = vrot.lane.b32.xlu1 %v2353_v51, %s2906_s8  ;;  %2362 = vrot.lane.b32.xlu0 %v2352_v16, %s2906_s8  ;;  %v2067_v2 = vmul.f32 %v4113_v40, %v2065_v24  ;;  %v2470_v19 = vmul.f32 %v4430_v8, %v2467_v52  ;;  %v2068_v40 = vmul.f32 %v4143_v7, %v2065_v24 }
 0x28e   : > { %v1973_v18 = vpop.permute.xlu1 %1972  ;;  %v1971_v21 = vpop.permute.xlu0 %1970 }
 0x28f   : > { %v1981_v17 = vadd.f32 %v1973_v18, %v1955_v15  ;;  %v1980_v22 = vadd.f32 %v1971_v21, %v1954_v35  ;;  %v2066_v15 = vmul.f32 %v4117_v3, %v2065_v24 }
 0x290   : > { %2386 = vrot.lane.b32.xlu1 %v2377_v5, %s2907_s10  ;;  %2384 = vrot.lane.b32.xlu0 %v2376_v36, %s2907_s10  ;;  %v2493_v36 = vstv %s2798_s26 }
 0x292   : > { %v1995_v27 = vpop.permute.xlu1 %1994  ;;  %v1993_v43 = vpop.permute.xlu0 %1992 }
 0x293   : > { %v2005_v29 = vadd.f32 %v1995_v27, %v1979_v13  ;;  %v2004_v26 = vadd.f32 %v1993_v43, %v1978_v57  ;;  %v2069_v13 = vmul.f32 %v4140_v37, %v2065_v24 }
 0x294   : > { %2390 = vrot.lane.b32.xlu1 %v2379_v59, %s2907_s10  ;;  %2388 = vrot.lane.b32.xlu0 %v2378_v20, %s2907_s10  ;;  %v2494_v59 = vmul.f32 %v4420_v33, %v2493_v36 }
 0x296   : > { %v1999_v54 = vpop.permute.xlu1 %1998  ;;  %v1997_v44 = vpop.permute.xlu0 %1996 }
 0x297   : > { %v2007_v14 = vadd.f32 %v1999_v54, %v1981_v17  ;;  %v2006_v41 = vadd.f32 %v1997_v44, %v1980_v22  ;;  %v2495_v22 = vmul.f32 %v4417_v32, %v2493_v36 }
 0x298   : > { %2426 = vrot.lane.b32.xlu1 %v2417_v60, %s2902_s27  ;;  %2424 = vrot.lane.b32.xlu0 %v2416_v58, %s2902_s27 }
 0x29a   : > { %v2021_v12 = vpop.permute.xlu1 %2020  ;;  %v2019_v11 = vpop.permute.xlu0 %2018 }
 0x29b   : > { %v2031_v31 = vadd.f32 %v2021_v12, %v2005_v29  ;;  %v2030_v38 = vadd.f32 %v2019_v11, %v2004_v26  ;;  %v2497_v29 = vmul.f32 %v4427_v30, %v2493_v36  ;;  %v2496_v26 = vmul.f32 %v4430_v8, %v2493_v36 }
 0x29c   : > { %2430 = vrot.lane.b32.xlu1 %v2419_v56, %s2902_s27  ;;  %2428 = vrot.lane.b32.xlu0 %v2418_v6, %s2902_s27  ;;  %s2799_s27 = sld [smem:[#allocation3 + $0x60]] }
 0x29e   : > { %v2025_v46 = vpop.permute.xlu1 %2024  ;;  %v2023_v25 = vpop.permute.xlu0 %2022 }
 0x29f   : > { %v2033_v0 = vadd.f32 %v2025_v46, %v2007_v14  ;;  %v2032_v1 = vadd.f32 %v2023_v25, %v2006_v41 }
 0x2a0   : > { %2452 = vrot.lane.b32.xlu1 %v2443_v61, %s2903_s29  ;;  %2450 = vrot.lane.b32.xlu0 %v2442_v48, %s2903_s29 }
 0x2a2   : > { %v2047_v34 = vpop.permute.xlu1 %2046  ;;  %v2045_v45 = vpop.permute.xlu0 %2044  ;;  %v2519_v60 = vstv %s2799_s27 }
 0x2a3   : > { %v2057_v9 = vadd.f32 %v2047_v34, %v2031_v31  ;;  %v2056_v47 = vadd.f32 %v2045_v45, %v2030_v38  ;;  %v2521_v41 = vmul.f32 %v4417_v32, %v2519_v60  ;;  %v2520_v56 = vmul.f32 %v4420_v33, %v2519_v60 }
 0x2a4   : > { %2456 = vrot.lane.b32.xlu1 %v2445_v39, %s2903_s29  ;;  %2454 = vrot.lane.b32.xlu0 %v2444_v28, %s2903_s29  ;;  %s2800_s29 = sld [smem:[#allocation3 + $0x61]]  ;;  %v2523_v31 = vmul.f32 %v4427_v30, %v2519_v60  ;;  %v2522_v38 = vmul.f32 %v4430_v8, %v2519_v60 }
 0x2a5   : > { %v2071_v57 = vadd.f32 %v2067_v2, %v2057_v9  ;;  %v2070_v5 = vadd.f32 %v2066_v15, %v2056_v47 }
 0x2a6   : > { %v2051_v35 = vpop.permute.xlu1 %2050  ;;  %v2049_v51 = vpop.permute.xlu0 %2048 }
 0x2a7   : > { %v2059_v16 = vadd.f32 %v2051_v35, %v2033_v0  ;;  %v2058_v53 = vadd.f32 %v2049_v51, %v2032_v1 }
 0x2a8   : > { %2478 = vrot.lane.b32.xlu1 %v2469_v4, %s2904_s4  ;;  %2476 = vrot.lane.b32.xlu0 %v2468_v10, %s2904_s4 }
 0x2a9   : > { %v2073_v20 = vadd.f32 %v2069_v13, %v2059_v16  ;;  %v2072_v37 = vadd.f32 %v2068_v40, %v2058_v53 }
 0x2aa   : > { %v2087_v3 = vpop.permute.xlu1 %2086  ;;  %v2085_v18 = vpop.permute.xlu0 %2084  ;;  %v2545_v61 = vstv %s2800_s29 }
 0x2ab   : > { %v2097_v21 = vadd.f32 %v2087_v3, %v2071_v57  ;;  %v2096_v17 = vadd.f32 %v2085_v18, %v2070_v5  ;;  %v2547_v1 = vmul.f32 %v4417_v32, %v2545_v61  ;;  %v2546_v39 = vmul.f32 %v4420_v33, %v2545_v61 }
 0x2ac   : > { %2482 = vrot.lane.b32.xlu1 %v2471_v62, %s2904_s4  ;;  %2480 = vrot.lane.b32.xlu0 %v2470_v19, %s2904_s4  ;;  %v2549_v24 = vmul.f32 %v4427_v30, %v2545_v61  ;;  %v2548_v9 = vmul.f32 %v4430_v8, %v2545_v61  ;;  %s2779_s4 = sld [smem:[#allocation3 + $0x54]] }
 0x2ae   : > { %v2091_v63 = vpop.permute.xlu1 %2090  ;;  %v2089_v27 = vpop.permute.xlu0 %2088 }
 0x2af   : > { %v2099_v43 = vadd.f32 %v2091_v63, %v2073_v20  ;;  %v2098_v7 = vadd.f32 %v2089_v27, %v2072_v37 }
 0x2b0   : > { %2504 = vrot.lane.b32.xlu1 %v2495_v22, %s2905_s6  ;;  %2502 = vrot.lane.b32.xlu0 %v2494_v59, %s2905_s6 }
 0x2b2   : > { %v2113_v58 = vpop.permute.xlu1 %2112  ;;  %v2111_v54 = vpop.permute.xlu0 %2110 }
 0x2b3   : > { %v2123_v44 = vadd.f32 %v2113_v58, %v2097_v21  ;;  %v2122_v14 = vadd.f32 %v2111_v54, %v2096_v17  ;;  %v2235_v21 = vstv %s2779_s4 }
 0x2b4   : > { %2508 = vrot.lane.b32.xlu1 %v2497_v29, %s2905_s6  ;;  %2506 = vrot.lane.b32.xlu0 %v2496_v26, %s2905_s6  ;;  %v2237_v59 = vmul.f32 %v4324_v23, %v2235_v21  ;;  %v2236_v20 = vmul.f32 %v4327_v55, %v2235_v21  ;;  %v2239_v26 = vmul.f32 %v4346_v50, %v2235_v21  ;;  %s2790_s6 = sld [smem:[#allocation3 + $0x5b]] }
 0x2b5   : > { %v2238_v60 = vmul.f32 %v4349_v42, %v2235_v21 }
 0x2b6   : > { %v2117_v6 = vpop.permute.xlu1 %2116  ;;  %v2115_v49 = vpop.permute.xlu0 %2114 }
 0x2b7   : > { %v2125_v12 = vadd.f32 %v2117_v6, %v2099_v43  ;;  %v2124_v11 = vadd.f32 %v2115_v49, %v2098_v7 }
 0x2b8   : > { %2530 = vrot.lane.b32.xlu1 %v2521_v41, %s2906_s8  ;;  %2528 = vrot.lane.b32.xlu0 %v2520_v56, %s2906_s8 }
 0x2ba   : > { %v2139_v48 = vpop.permute.xlu1 %2138  ;;  %v2137_v46 = vpop.permute.xlu0 %2136 }
 0x2bb   : > { %v2149_v25 = vadd.f32 %v2139_v48, %v2123_v44  ;;  %v2148_v0 = vadd.f32 %v2137_v46, %v2122_v14 }
 0x2bc   : > { %2534 = vrot.lane.b32.xlu1 %v2523_v31, %s2906_s8  ;;  %2532 = vrot.lane.b32.xlu0 %v2522_v38, %s2906_s8  ;;  %s2807_s8 = sshll.u32 %s4703_s15, 5 }
 0x2bd   : > { %s185_s24 = scalar_lea.vmem %s4500_s3, %s2807_s8 }
 0x2be   : > { %v2143_v28 = vpop.permute.xlu1 %2142  ;;  %v2141_v52 = vpop.permute.xlu0 %2140 }
 0x2bf   : > { %v2151_v34 = vadd.f32 %v2143_v28, %v2125_v12  ;;  %v2150_v45 = vadd.f32 %v2141_v52, %v2124_v11 }
 0x2c0   : > { %2556 = vrot.lane.b32.xlu1 %v2547_v1, %s2907_s10  ;;  %2554 = vrot.lane.b32.xlu0 %v2546_v39, %s2907_s10 }
 0x2c2   : > { %v2165_v47 = vpop.permute.xlu1 %2164  ;;  %v2163_v4 = vpop.permute.xlu0 %2162 }
 0x2c3   : > { %v2175_v10 = vadd.f32 %v2165_v47, %v2149_v25  ;;  %v2174_v2 = vadd.f32 %v2163_v4, %v2148_v0 }
 0x2c4   : > { %2560 = vrot.lane.b32.xlu1 %v2549_v24, %s2907_s10  ;;  %2558 = vrot.lane.b32.xlu0 %v2548_v9, %s2907_s10 }
 0x2c6   : > { %v2169_v15 = vpop.permute.xlu1 %2168  ;;  %v2167_v35 = vpop.permute.xlu0 %2166 }
 0x2c7   : > { %v2177_v51 = vadd.f32 %v2169_v15, %v2151_v34  ;;  %v2176_v16 = vadd.f32 %v2167_v35, %v2150_v45 }
 0x2ca   : > { %v2191_v53 = vpop.permute.xlu1 %2190  ;;  %v2189_v62 = vpop.permute.xlu0 %2188 }
 0x2cb   : > { %v2201_v19 = vadd.f32 %v2191_v53, %v2175_v10  ;;  %v2200_v13 = vadd.f32 %v2189_v62, %v2174_v2 }
 0x2ce   : > { %v2195_v57 = vpop.permute.xlu1 %2194  ;;  %v2193_v5 = vpop.permute.xlu0 %2192 }
 0x2cf   : > { %v2203_v40 = vadd.f32 %v2195_v57, %v2177_v51  ;;  %v2202_v36 = vadd.f32 %v2193_v5, %v2176_v16 }
 0x2d2   : > { %v2217_v3 = vpop.permute.xlu1 %2216  ;;  %v2215_v18 = vpop.permute.xlu0 %2214 }
 0x2d3   : > { %v2227_v17 = vadd.f32 %v2217_v3, %v2201_v19  ;;  %v2226_v22 = vadd.f32 %v2215_v18, %v2200_v13 }
 0x2d5   : > { %v2241_v7 = vadd.f32 %v2237_v59, %v2227_v17  ;;  %v2240_v29 = vadd.f32 %v2236_v20, %v2226_v22 }
 0x2d6   : > { %v2221_v37 = vpop.permute.xlu1 %2220  ;;  %v2219_v63 = vpop.permute.xlu0 %2218 }
 0x2d7   : > { %v2229_v27 = vadd.f32 %v2221_v37, %v2203_v40  ;;  %v2228_v43 = vadd.f32 %v2219_v63, %v2202_v36  ;;  %v2405_v36 = vstv %s2790_s6 }
 0x2d9   : > { %v2243_v41 = vadd.f32 %v2239_v26, %v2229_v27  ;;  %v2242_v56 = vadd.f32 %v2238_v60, %v2228_v43  ;;  %v2407_v43 = vmul.f32 %v4417_v32, %v2405_v36 }
 0x2da   : > { %v2257_v58 = vpop.permute.xlu1 %2256  ;;  %v2255_v54 = vpop.permute.xlu0 %2254 }
 0x2db   : > { %v2267_v44 = vadd.f32 %v2257_v58, %v2241_v7  ;;  %v2266_v14 = vadd.f32 %v2255_v54, %v2240_v29  ;;  %v2406_v7 = vmul.f32 %v4420_v33, %v2405_v36 }
 0x2de   : > { %v2261_v6 = vpop.permute.xlu1 %2260  ;;  %v2259_v23 = vpop.permute.xlu0 %2258 }
 0x2df   : > { %v2269_v49 = vadd.f32 %v2261_v6, %v2243_v41  ;;  %v2268_v55 = vadd.f32 %v2259_v23, %v2242_v56  ;;  %v2409_v56 = vmul.f32 %v4427_v30, %v2405_v36  ;;  %v2408_v6 = vmul.f32 %v4430_v8, %v2405_v36 }
 0x2e2   : > { %v2283_v12 = vpop.permute.xlu1 %2282  ;;  %v2281_v11 = vpop.permute.xlu0 %2280 }
 0x2e3   : > { %v2293_v13 = vadd.f32 %v2283_v12, %v2267_v44  ;;  %v2292_v57 = vadd.f32 %v2281_v11, %v2266_v14 }
 0x2e6   : > { %v2287_v31 = vpop.permute.xlu1 %2286  ;;  %v2285_v38 = vpop.permute.xlu0 %2284 }
 0x2e7   : > { %v2295_v21 = vadd.f32 %v2287_v31, %v2269_v49  ;;  %v2294_v17 = vadd.f32 %v2285_v38, %v2268_v55 }
 0x2ea   : > { %v2309_v61 = vpop.permute.xlu1 %2308  ;;  %v2307_v48 = vpop.permute.xlu0 %2306 }
 0x2eb   : > { %v2319_v5 = vadd.f32 %v2309_v61, %v2293_v13  ;;  %v2318_v40 = vadd.f32 %v2307_v48, %v2292_v57 }
 0x2ee   : > { %v2313_v46 = vpop.permute.xlu1 %2312  ;;  %v2311_v50 = vpop.permute.xlu0 %2310 }
 0x2ef   : > { %v2321_v20 = vadd.f32 %v2313_v46, %v2295_v21  ;;  %v2320_v37 = vadd.f32 %v2311_v50, %v2294_v17 }
 0x2f2   : > { %v2335_v25 = vpop.permute.xlu1 %2334  ;;  %v2333_v42 = vpop.permute.xlu0 %2332 }
 0x2f3   : > { %v2345_v22 = vadd.f32 %v2335_v25, %v2319_v5  ;;  %v2344_v59 = vadd.f32 %v2333_v42, %v2318_v40 }
 0x2f6   : > { %v2339_v0 = vpop.permute.xlu1 %2338  ;;  %v2337_v1 = vpop.permute.xlu0 %2336 }
 0x2f7   : > { %v2347_v60 = vadd.f32 %v2339_v0, %v2321_v20  ;;  %v2346_v58 = vadd.f32 %v2337_v1, %v2320_v37 }
 0x2fa   : > { %v2361_v39 = vpop.permute.xlu1 %2360  ;;  %v2359_v28 = vpop.permute.xlu0 %2358 }
 0x2fb   : > { %v2371_v63 = vadd.f32 %v2361_v39, %v2345_v22  ;;  %v2370_v27 = vadd.f32 %v2359_v28, %v2344_v59 }
 0x2fe   : > { %v2365_v52 = vpop.permute.xlu1 %2364  ;;  %v2363_v34 = vpop.permute.xlu0 %2362 }
 0x2ff   : > { %v2373_v14 = vadd.f32 %v2365_v52, %v2347_v60  ;;  %v2372_v41 = vadd.f32 %v2363_v34, %v2346_v58 }
 0x302   : > { %v2387_v45 = vpop.permute.xlu1 %2386  ;;  %v2385_v24 = vpop.permute.xlu0 %2384 }
 0x303   : > { %v2397_v54 = vadd.f32 %v2387_v45, %v2371_v63  ;;  %v2396_v44 = vadd.f32 %v2385_v24, %v2370_v27 }
 0x305   : > { %v2411_v11 = vadd.f32 %v2407_v43, %v2397_v54  ;;  %v2410_v32 = vadd.f32 %v2406_v7, %v2396_v44 }
 0x306   : > { %v2391_v9 = vpop.permute.xlu1 %2390  ;;  %v2389_v47 = vpop.permute.xlu0 %2388 }
 0x307   : > { %v2399_v55 = vadd.f32 %v2391_v9, %v2373_v14  ;;  %v2398_v12 = vadd.f32 %v2389_v47, %v2372_v41 }
 0x309   : > { %v2413_v48 = vadd.f32 %v2409_v56, %v2399_v55  ;;  %v2412_v46 = vadd.f32 %v2408_v6, %v2398_v12 }
 0x30a   : > { %v2427_v4 = vpop.permute.xlu1 %2426  ;;  %v2425_v10 = vpop.permute.xlu0 %2424 }
 0x30b   : > { %v2437_v31 = vadd.f32 %v2427_v4, %v2411_v11  ;;  %v2436_v33 = vadd.f32 %v2425_v10, %v2410_v32 }
 0x30e   : > { %v2431_v2 = vpop.permute.xlu1 %2430  ;;  %v2429_v15 = vpop.permute.xlu0 %2428 }
 0x30f   : > { %v2439_v42 = vadd.f32 %v2431_v2, %v2413_v48  ;;  %v2438_v0 = vadd.f32 %v2429_v15, %v2412_v46 }
 0x312   : > { %v2453_v35 = vpop.permute.xlu1 %2452  ;;  %v2451_v51 = vpop.permute.xlu0 %2450 }
 0x313   : > { %v2463_v50 = vadd.f32 %v2453_v35, %v2437_v31  ;;  %v2462_v25 = vadd.f32 %v2451_v51, %v2436_v33 }
 0x316   : > { %v2457_v16 = vpop.permute.xlu1 %2456  ;;  %v2455_v53 = vpop.permute.xlu0 %2454 }
 0x317   : > { %v2465_v28 = vadd.f32 %v2457_v16, %v2439_v42  ;;  %v2464_v52 = vadd.f32 %v2455_v53, %v2438_v0 }
 0x31a   : > { %v2479_v62 = vpop.permute.xlu1 %2478  ;;  %v2477_v19 = vpop.permute.xlu0 %2476 }
 0x31b   : > { %v2489_v1 = vadd.f32 %v2479_v62, %v2463_v50  ;;  %v2488_v30 = vadd.f32 %v2477_v19, %v2462_v25 }
 0x31e   : > { %v2483_v3 = vpop.permute.xlu1 %2482  ;;  %v2481_v18 = vpop.permute.xlu0 %2480 }
 0x31f   : > { %v2491_v24 = vadd.f32 %v2483_v3, %v2465_v28  ;;  %v2490_v9 = vadd.f32 %v2481_v18, %v2464_v52 }
 0x322   : > { %v2505_v29 = vpop.permute.xlu1 %2504  ;;  %v2503_v26 = vpop.permute.xlu0 %2502 }
 0x323   : > { %v2515_v34 = vadd.f32 %v2505_v29, %v2489_v1  ;;  %v2514_v45 = vadd.f32 %v2503_v26, %v2488_v30 }
 0x326   : > { %v2509_v23 = vpop.permute.xlu1 %2508  ;;  %v2507_v49 = vpop.permute.xlu0 %2506 }
 0x327   : > { %v2517_v57 = vadd.f32 %v2509_v23, %v2491_v24  ;;  %v2516_v5 = vadd.f32 %v2507_v49, %v2490_v9 }
 0x32a   : > { %v2531_v38 = vpop.permute.xlu1 %2530  ;;  %v2529_v61 = vpop.permute.xlu0 %2528 }
 0x32b   : > { %v2541_v47 = vadd.f32 %v2531_v38, %v2515_v34  ;;  %v2540_v4 = vadd.f32 %v2529_v61, %v2514_v45 }
 0x32e   : > { %v2535_v39 = vpop.permute.xlu1 %2534  ;;  %v2533_v8 = vpop.permute.xlu0 %2532 }
 0x32f   : > { %v2543_v2 = vadd.f32 %v2535_v39, %v2517_v57  ;;  %v2542_v15 = vadd.f32 %v2533_v8, %v2516_v5 }
 0x332   : > { %v2557_v10 = vpop.permute.xlu1 %2556  ;;  %v2555_v13 = vpop.permute.xlu0 %2554 }
 0x333   : > { %v2567_v35 = vadd.f32 %v2557_v10, %v2541_v47  ;;  %v2566_v51 = vadd.f32 %v2555_v13, %v2540_v4 }
 0x335   : > { %v2802_v62 = vmul.f32 -1.442695, %v2567_v35  ;;  %v2801_v19 = vmul.f32 -1.442695, %v2566_v51 }
 0x336   : > { %v2561_v40 = vpop.permute.xlu1 %2560  ;;  %v2559_v36 = vpop.permute.xlu0 %2558 }
 0x337   : > { %2834 = vpow2.f32 %v2802_v62  ;;  %v2569_v16 = vadd.f32 %v2561_v40, %v2543_v2  ;;  %v2568_v53 = vadd.f32 %v2559_v36, %v2542_v15 }
 0x338   : > { %2836 = vpow2.f32 %v2801_v19 }
 0x339   : > { %v2804_v3 = vmul.f32 -1.442695, %v2569_v16  ;;  %v2803_v18 = vmul.f32 -1.442695, %v2568_v53 }
 0x33b   : > { %2838 = vpow2.f32 %v2804_v3 }
 0x33c   : > { %2840 = vpow2.f32 %v2803_v18 }
 0x341   : > { %v2835_v21 = vpop.eup %2834 }
 0x342   : > { %v2837_v17 = vpop.eup %2836  ;;  %v2583_v22 = vadd.f32 1.0, %v2835_v21 }
 0x343   : > { %v2582_v59 = vadd.f32 1.0, %v2837_v17 }
 0x344   : > { %2842 = vrcp.f32 %v2583_v22 }
 0x345   : > { %v2839_v20 = vpop.eup %2838  ;;  %2844 = vrcp.f32 %v2582_v59 }
 0x346   : > { %v2841_v37 = vpop.eup %2840  ;;  %v2585_v63 = vadd.f32 1.0, %v2839_v20 }
 0x347   : > { %v2584_v27 = vadd.f32 1.0, %v2841_v37 }
 0x348   : > { %2846 = vrcp.f32 %v2585_v63 }
 0x349   : > { %2848 = vrcp.f32 %v2584_v27 }
 0x34e   : > { %v2843_v43 = vpop.eup %2842 }
 0x34f   : > { %v2845_v7 = vpop.eup %2844  ;;  %2596 = vst.msk [vmem:[%s185_s24 + $0x8] sm:$0xff] %vm2594_vm0, %v2843_v43 }
 0x350   : > { %2595 = vst.msk [vmem:[%s185_s24] sm:$0xff] %vm2594_vm0, %v2845_v7 }
 0x352   : > { %v2847_v29 = vpop.eup %2846 }
 0x353   : > { %v2849_v26 = vpop.eup %2848  ;;  %2598 = vst.msk [vmem:[%s185_s24 + $0x18] sm:$0xff] %vm2594_vm0, %v2847_v29 }
 0x354   : > { %2597 = vst.msk [vmem:[%s185_s24 + $0x10] sm:$0xff] %vm2594_vm0, %v2849_v26 }
 0x355 PF: > { %s15_s14 = sadd.s32 1, %s2899_s14  }
 0x356   : > { %p12_p1 = scmp.ge.s32.totalorder %s15_s14, 4  }
 0x358   :  { %14 = sbr.rel (!%p12_p1) target bundleno = 3 (0x3), region = 68 }
 0x35f   :  { %2620 = vsyncpa [#allocation4], 1 }
 0x360   :  { %2622 = vsyncpa [#allocation4 + $0x1], 1 }

</bundles_post_ra>
